<compile_context>
chip_gen: v7x
topology: tpu7x:2x2x1
jax: 0.10.0
libtpu: 0.0.40
codegen_flags: <defaults>
</compile_context>

<pallas_src>
import functools

import jax
import jax.numpy as jnp
from jax.experimental import pallas as pl
from jax.experimental.pallas import tpu as pltpu

_BN_EPS = 1e-5
_LANE = 128
_TILE_M = 256          # node tile (MXU M); N is padded to a multiple of 2*_TILE_M
_MAX_TILE_K = 2048     # neighbor-tile upper bound for the A stream
_MAX_PW_ROWS = 4096    # pointwise row-tile upper bound


def _round_up(x, m):
    return (x + m - 1) // m * m


def _largest_divisor(n, candidates):
    for c in candidates:
        if c >= 1 and n % c == 0:
            return c
    return n


def _device_kind():
    try:
        return jax.devices()[0].device_kind.lower()
    except Exception:  # pragma: no cover - device query is best-effort
        return ""


def _vmem_limit_bytes():
    kind = _device_kind()
    if "v5" in kind or "v6" in kind:
        return 96 * 1024 * 1024    # 128 MiB physical per core on v5e/v6e
    return 44 * 1024 * 1024        # conservative for v7x (64 MiB physical) / unknown


def _x_resident_budget_bytes():
    kind = _device_kind()
    if "v5" in kind or "v6" in kind:
        return 16 * 1024 * 1024
    return 8 * 1024 * 1024


def _pick_tile_k(n_pad):
    return _largest_divisor(n_pad, (_MAX_TILE_K, 1024, 512))


def _pick_pw_rows(n_pad):
    cap = max(n_pad // 2, 512)     # keep >=2 row tiles when possible (v7x megacore)
    cands = [c for c in (_MAX_PW_ROWS, 2048, 1024, 512) if c <= cap]
    return _largest_divisor(n_pad, cands) if cands else n_pad


# ---------------------------------------------------------------------------
# Kernel 1: tiled aggregation  y = norm_i * sum_k A[i,k] @ X[k]  (+ @W) + b
#           plus masked per-tile BN partial sums (sum, sum of squares).
# Grid: (M node tiles [parallel], K neighbor tiles [arbitrary, reduction]).
# ---------------------------------------------------------------------------
def _aggregate_kernel(*refs, apply_w, x_resident, tile_m, tile_k, n_real):
    if apply_w:
        a_ref, x_ref, norm_ref, w_ref, b_ref, y_ref, s1_ref, s2_ref, acc_ref = refs
    else:
        a_ref, x_ref, norm_ref, b_ref, y_ref, s1_ref, s2_ref, acc_ref = refs
        w_ref = None

    # program_id / num_programs must stay OUTSIDE pl.when bodies (cond-branch lowering).
    i = pl.program_id(0)
    k = pl.program_id(1)
    k_last = pl.num_programs(1) - 1

    @pl.when(k == 0)
    def _():
        acc_ref[...] = jnp.zeros_like(acc_ref)

    # int8 A in HBM -> widen to bf16 on the VPU (hides under the A DMA), MXU f32 accumulate.
    a = a_ref[...].astype(jnp.bfloat16)
    if x_resident:
        xk = x_ref[pl.ds(k * tile_k, tile_k), :]      # X is VMEM-resident, DMA'd once
    else:
        xk = x_ref[...]                               # streamed (tile_k, F) neighbor block
    acc_ref[...] += jnp.dot(a, xk, preferred_element_type=jnp.float32)

    @pl.when(k == k_last)
    def _():
        # fold the output-side D^{-1/2} in f32 after the accumulate
        y = acc_ref[...] * norm_ref[...]
        if apply_w:                                   # aggregate-first layers project here
            y = jnp.dot(y.astype(jnp.bfloat16), w_ref[...],
                        preferred_element_type=jnp.float32)
        y = y + b_ref[...]
        y_ref[...] = y.astype(y_ref.dtype)            # bf16 round-trip of the intermediate

        # masked partial BN statistics in f32 (padded rows excluded)
        rows = i * tile_m + jax.lax.broadcasted_iota(jnp.int32, (tile_m, 1), 0)
        mask = (rows < n_real).astype(jnp.float32)
        ym = y * mask
        s1 = jnp.sum(ym, axis=0, keepdims=True)       # (1, Fout)
        s2 = jnp.sum(ym * y, axis=0, keepdims=True)   # mask is 0/1 -> y^2 * mask
        s1_ref[...] = jnp.broadcast_to(s1, s1_ref.shape)   # one lane-dense vreg store
        s2_ref[...] = jnp.broadcast_to(s2, s2_ref.shape)


def _run_aggregate(a, x, norm, w, b, *, apply_w, fout, n_real,
                   tile_m, tile_k, x_resident, vmem_limit):
    n_pad = a.shape[0]
    m_tiles = n_pad // tile_m
    k_tiles = n_pad // tile_k
    fx = x.shape[1]

    args = [a, x, norm]
    in_specs = [pl.BlockSpec((tile_m, tile_k), lambda i, k: (i, k))]   # A tile (int8)
    if x_resident:
        in_specs.append(pl.BlockSpec((n_pad, fx), lambda i, k: (0, 0)))   # resident X
    else:
        in_specs.append(pl.BlockSpec((tile_k, fx), lambda i, k: (k, 0)))  # streamed X
    in_specs.append(pl.BlockSpec((tile_m, 1), lambda i, k: (i, 0)))       # dest-side norm
    if apply_w:
        args.append(w)
        in_specs.append(pl.BlockSpec(w.shape, lambda i, k: (0, 0)))       # resident weight
    args.append(b)
    in_specs.append(pl.BlockSpec((1, fout), lambda i, k: (0, 0)))

    kernel = functools.partial(_aggregate_kernel, apply_w=apply_w,
                               x_resident=x_resident, tile_m=tile_m,
                               tile_k=tile_k, n_real=n_real)
    out_shape = (
        jax.ShapeDtypeStruct((n_pad, fout), jnp.bfloat16),       # pre-BN activations
        jax.ShapeDtypeStruct((m_tiles * 8, fout), jnp.float32),  # partial sums
        jax.ShapeDtypeStruct((m_tiles * 8, fout), jnp.float32),  # partial sums of squares
    )
    out_specs = (
        pl.BlockSpec((tile_m, fout), lambda i, k: (i, 0)),
        pl.BlockSpec((8, fout), lambda i, k: (i, 0)),
        pl.BlockSpec((8, fout), lambda i, k: (i, 0)),
    )
    return pl.pallas_call(
        kernel,
        grid=(m_tiles, k_tiles),
        out_shape=out_shape,
        in_specs=in_specs,
        out_specs=out_specs,
        scratch_shapes=[pltpu.VMEM((tile_m, fx), jnp.float32)],
        compiler_params=pltpu.CompilerParams(
            dimension_semantics=("parallel", "arbitrary"),
            vmem_limit_bytes=vmem_limit),
    )(*args)


# ---------------------------------------------------------------------------
# Kernel 2: fused pointwise stage.
#   optionally: BN (y*scale+shift) -> PReLU -> source-side degree norm -> next-layer proj.
# Used for: layer-0 input prep, inter-layer BN+act+prep, and the final BN.
# ---------------------------------------------------------------------------
def _pointwise_kernel(*refs, do_bn, do_act, apply_norm, do_proj):
    it = iter(refs)
    h_ref = next(it)
    scale_ref = next(it) if do_bn else None
    shift_ref = next(it) if do_bn else None
    alpha_ref = next(it) if do_act else None
    norm_ref = next(it) if apply_norm else None
    w_ref = next(it) if do_proj else None
    o_ref = next(it)

    h = h_ref[...].astype(jnp.float32)
    if do_bn:
        h = h * scale_ref[...] + shift_ref[...]
    if do_act:
        h = jnp.where(h > 0, h, h * alpha_ref[...])   # PReLU, broadcast (1, F) alpha
    if apply_norm:
        h = h * norm_ref[...]                         # source-side D^{-1/2}
    if do_proj:                                       # project-before-aggregate path
        h = jnp.dot(h.astype(jnp.bfloat16), w_ref[...],
                    preferred_element_type=jnp.float32)
    o_ref[...] = h.astype(o_ref.dtype)


def _run_pointwise(h, scale, shift, alpha, norm, w, *, out_dim, out_dtype,
                   do_bn, do_act, apply_norm, do_proj, rows, vmem_limit):
    n_pad, fin = h.shape
    m_tiles = n_pad // rows

    args = [h]
    in_specs = [pl.BlockSpec((rows, fin), lambda i: (i, 0))]
    if do_bn:
        args += [scale, shift]
        in_specs += [pl.BlockSpec((1, scale.shape[1]), lambda i: (0, 0)),
                     pl.BlockSpec((1, shift.shape[1]), lambda i: (0, 0))]
    if do_act:
        args.append(alpha)
        in_specs.append(pl.BlockSpec((1, alpha.shape[1]), lambda i: (0, 0)))
    if apply_norm:
        args.append(norm)
        in_specs.append(pl.BlockSpec((rows, 1), lambda i: (i, 0)))
    if do_proj:
        args.append(w)
        in_specs.append(pl.BlockSpec(w.shape, lambda i: (0, 0)))

    kernel = functools.partial(_pointwise_kernel, do_bn=do_bn, do_act=do_act,
                               apply_norm=apply_norm, do_proj=do_proj)
    return pl.pallas_call(
        kernel,
        grid=(m_tiles,),
        out_shape=jax.ShapeDtypeStruct((n_pad, out_dim), out_dtype),
        in_specs=in_specs,
        out_specs=pl.BlockSpec((rows, out_dim), lambda i: (i, 0)),
        compiler_params=pltpu.CompilerParams(
            dimension_semantics=("parallel",),
            vmem_limit_bytes=vmem_limit),
    )(*args)


class Encoder1Pallas:
    """Deterministic re-implementation of Encoder1 (forward only)."""

    def __init__(self, in_dim, out_dim, p1, hidden, num_layers, key):
        self.num_layers = num_layers
        self.p1 = p1  # dropout is identity in this deterministic forward
        dims = []
        for layer in range(num_layers):
            if layer == 0 and num_layers == 1:
                dims.append((in_dim, out_dim))
            elif layer == 0:
                dims.append((in_dim, hidden))
            else:
                dims.append((hidden, out_dim))
        self.dims = dims
        self.dims_pad = [(_round_up(fi, _LANE), _round_up(fo, _LANE)) for fi, fo in dims]

        self.weights_bf16, self.biases = [], []
        self.gammas, self.betas, self.alphas = [], [], []
        for (fi, fo), (fi_p, fo_p) in zip(dims, self.dims_pad):
            key, wk = jax.random.split(key)
            limit = (6.0 / (fi + fo)) ** 0.5  # xavier_uniform (DGL GraphConv default)
            w = jax.random.uniform(wk, (fi, fo), jnp.float32, -limit, limit)
            w_pad = jnp.zeros((fi_p, fo_p), jnp.float32).at[:fi, :fo].set(w)
            self.weights_bf16.append(w_pad.astype(jnp.bfloat16))        # bf16 MXU weights
            self.biases.append(jnp.zeros((1, fo_p), jnp.float32))
            gamma = jnp.zeros((1, fo_p), jnp.float32).at[:, :fo].set(1.0)
            self.gammas.append(gamma)                                   # BN weight (0 on pad)
            self.betas.append(jnp.zeros((1, fo_p), jnp.float32))        # BN bias
            self.alphas.append(jnp.full((1, fo_p), 0.25, jnp.float32))  # PReLU init

    def __call__(self, adj, feat):
        n = adj.shape[0]
        n_pad = _round_up(n, 2 * _TILE_M)       # even node-tile count (v7x megacore)
        pad_n = n_pad - n
        tile_m = _TILE_M
        tile_k = _pick_tile_k(n_pad)
        pw_rows = _pick_pw_rows(n_pad)
        vmem_limit = _vmem_limit_bytes()
        x_budget = _x_resident_budget_bytes()

        # GraphConv norm='both': deg^{-1/2} with clamp(min=1), computed on the real graph.
        deg = jnp.sum(adj, axis=1, keepdims=True)
        norm = jax.lax.rsqrt(jnp.maximum(deg, 1.0))

        # Pad; padded rows get norm=0 and A=0 so they never contaminate real nodes.
        # A lives in HBM as int8 (0/1 exact); widened to bf16 inside the kernel.
        adj_p = jnp.pad(adj, ((0, pad_n), (0, pad_n))).astype(jnp.int8)
        norm_p = jnp.pad(norm, ((0, pad_n), (0, 0)))

        fi0_p, fo0_p = self.dims_pad[0]
        h = jnp.pad(feat, ((0, pad_n), (0, fi0_p - feat.shape[1])))  # dropout (eval) -> id

        project_first = [fi > fo for (fi, fo) in self.dims]

        # Layer-0 input prep: X0 = bf16(norm * h)  (or bf16((norm * h) @ W0) if Fin > Fout).
        x = _run_pointwise(
            h, None, None, None, norm_p,
            self.weights_bf16[0] if project_first[0] else None,
            out_dim=(fo0_p if project_first[0] else fi0_p),
            out_dtype=jnp.bfloat16,
            do_bn=False, do_act=False, apply_norm=True,
            do_proj=project_first[0], rows=pw_rows, vmem_limit=vmem_limit)

        out = None
        for i in range(self.num_layers):
            fi_p, fo_p = self.dims_pad[i]
            x_resident = (n_pad * x.shape[1] * 2) <= x_budget
            y, s1_raw, s2_raw = _run_aggregate(
                adj_p, x, norm_p,
                self.weights_bf16[i] if not project_first[i] else None,
                self.biases[i],
                apply_w=not project_first[i], fout=fo_p, n_real=n,
                tile_m=tile_m, tile_k=tile_k, x_resident=x_resident,
                vmem_limit=vmem_limit)

            # Fold BN (training-mode biased stats over the real nodes) into scale/shift.
            # Each (8, F) tile holds its partial sum broadcast 8x -> sum all rows * 1/8.
            s1 = jnp.sum(s1_raw, axis=0) * 0.125
            s2 = jnp.sum(s2_raw, axis=0) * 0.125
            mean = s1 / n
            var = jnp.maximum(s2 / n - mean * mean, 0.0)   # f32 sums; clamp cancellation
            inv_std = jax.lax.rsqrt(var + _BN_EPS)
            scale = self.gammas[i] * inv_std               # (1, Fout); 0 on padded cols
            shift = self.betas[i] - mean * scale           # (1, Fout)

            apply_act = (self.num_layers > 1 and i == 0)
            if i == self.num_layers - 1:
                out = _run_pointwise(
                    y, scale, shift,
                    self.alphas[i] if apply_act else None,
                    None, None,
                    out_dim=fo_p, out_dtype=jnp.float32,
                    do_bn=True, do_act=apply_act, apply_norm=False,
                    do_proj=False, rows=pw_rows, vmem_limit=vmem_limit)
            else:
                nproj = project_first[i + 1]
                nfo_p = self.dims_pad[i + 1][1]
                x = _run_pointwise(
                    y, scale, shift,
                    self.alphas[i] if apply_act else None,
                    norm_p,
                    self.weights_bf16[i + 1] if nproj else None,
                    out_dim=(nfo_p if nproj else fo_p),
                    out_dtype=jnp.bfloat16,
                    do_bn=True, do_act=apply_act, apply_norm=True,
                    do_proj=nproj, rows=pw_rows, vmem_limit=vmem_limit)

        return out[:n, :self.dims[-1][1]]


if __name__ == "__main__":
    key = jax.random.PRNGKey(0)
    N, in_dim, hidden, out_dim, num_layers = 512, 32, 64, 16, 2

    # Build a small symmetric graph (ring + sparse extra edges), dense adjacency.
    k_adj, k_feat, k_params = jax.random.split(key, 3)
    idx = jnp.arange(N)
    adj = jnp.zeros((N, N), jnp.float32)
    adj = adj.at[idx, (idx + 1) % N].set(1.0)
    adj = adj.at[(idx + 1) % N, idx].set(1.0)
    extra = (jax.random.uniform(k_adj, (N, N)) > 0.99).astype(jnp.float32)
    adj = jnp.clip(adj + extra + extra.T, 0.0, 1.0)
    adj = adj.at[idx, idx].set(0.0)  # no self loops (DGL GraphConv does not add them)

    feat = jax.random.normal(k_feat, (N, in_dim), jnp.float32)

    model = Encoder1Pallas(in_dim, out_dim, p1=0.5, hidden=hidden,
                           num_layers=num_layers, key=k_params)
    fwd = jax.jit(model.__call__)
    out = fwd(adj, feat)
    jax.block_until_ready(out)
    assert out.shape == (N, out_dim)
    assert bool(jnp.all(jnp.isfinite(out)))
    print("KERNEL_OK")
</pallas_src>

<mosaic_0001>
module attributes {stable_mosaic.version = 11 : i64} {
  func.func @_pointwise_kernel(%arg0: i32, %arg1: memref<512x128xbf16, #tpu.memory_space<vmem>>, %arg2: memref<1x128xf32, #tpu.memory_space<vmem>>, %arg3: memref<1x128xf32, #tpu.memory_space<vmem>>, %arg4: memref<1x128xf32, #tpu.memory_space<vmem>>, %arg5: memref<512x1xf32, #tpu.memory_space<vmem>>, %arg6: memref<128x128xbf16, #tpu.memory_space<vmem>>, %arg7: memref<512x128xbf16, #tpu.memory_space<vmem>>) attributes {dimension_semantics = [#tpu.dimension_semantics<parallel>], iteration_bounds = array<i64: 1>, scalar_prefetch = 0 : i64, scratch_operands = 0 : i64, tpu.core_type = #tpu.core_type<tc>, window_params = [{transform_indices = @transform_0, window_bounds = array<i64: 512, 128>}, {pipeline_mode = #tpu.pipeline_mode<synchronous>, transform_indices = @transform_1, window_bounds = array<i64: 1, 128>}, {pipeline_mode = #tpu.pipeline_mode<synchronous>, transform_indices = @transform_2, window_bounds = array<i64: 1, 128>}, {pipeline_mode = #tpu.pipeline_mode<synchronous>, transform_indices = @transform_3, window_bounds = array<i64: 1, 128>}, {transform_indices = @transform_4, window_bounds = array<i64: 512, 1>}, {pipeline_mode = #tpu.pipeline_mode<synchronous>, transform_indices = @transform_5, window_bounds = array<i64: 128, 128>}, {transform_indices = @transform_6, window_bounds = array<i64: 512, 128>}]} {
    %c0 = arith.constant 0 : index
    %c0_0 = arith.constant 0 : index
    %0 = vector.load %arg1[%c0, %c0_0] : memref<512x128xbf16, #tpu.memory_space<vmem>>, vector<512x128xbf16>
    %1 = arith.extf %0 : vector<512x128xbf16> to vector<512x128xf32>
    %c0_1 = arith.constant 0 : index
    %c0_2 = arith.constant 0 : index
    %2 = vector.load %arg2[%c0_1, %c0_2] : memref<1x128xf32, #tpu.memory_space<vmem>>, vector<1x128xf32>
    %3 = vector.broadcast %2 : vector<1x128xf32> to vector<512x128xf32>
    %4 = arith.mulf %1, %3 : vector<512x128xf32>
    %c0_3 = arith.constant 0 : index
    %c0_4 = arith.constant 0 : index
    %5 = vector.load %arg3[%c0_3, %c0_4] : memref<1x128xf32, #tpu.memory_space<vmem>>, vector<1x128xf32>
    %6 = vector.broadcast %5 : vector<1x128xf32> to vector<512x128xf32>
    %7 = arith.addf %4, %6 : vector<512x128xf32>
    %cst = arith.constant 0.000000e+00 : f32
    %8 = vector.broadcast %cst : f32 to vector<512x128xf32>
    %9 = arith.cmpf ogt, %7, %8 : vector<512x128xf32>
    %c0_5 = arith.constant 0 : index
    %c0_6 = arith.constant 0 : index
    %10 = vector.load %arg4[%c0_5, %c0_6] : memref<1x128xf32, #tpu.memory_space<vmem>>, vector<1x128xf32>
    %11 = vector.broadcast %10 : vector<1x128xf32> to vector<512x128xf32>
    %12 = arith.mulf %7, %11 : vector<512x128xf32>
    %13 = arith.select %9, %7, %12 : vector<512x128xi1>, vector<512x128xf32>
    %c0_7 = arith.constant 0 : index
    %c0_8 = arith.constant 0 : index
    %14 = vector.load %arg5[%c0_7, %c0_8] : memref<512x1xf32, #tpu.memory_space<vmem>>, vector<512x1xf32>
    %15 = vector.broadcast %14 : vector<512x1xf32> to vector<512x128xf32>
    %16 = arith.mulf %13, %15 : vector<512x128xf32>
    %17 = arith.truncf %16 : vector<512x128xf32> to vector<512x128xbf16>
    %c0_9 = arith.constant 0 : index
    %c0_10 = arith.constant 0 : index
    %18 = vector.load %arg6[%c0_9, %c0_10] : memref<128x128xbf16, #tpu.memory_space<vmem>>, vector<128x128xbf16>
    %cst_11 = arith.constant dense<0.000000e+00> : vector<512x128xf32>
    %19 = tpu.matmul %17, %18, %cst_11 {dimension_numbers = #tpu.dot_dimension_numbers<[1], [0], [0], [1], [0, 0, 1, 1], [], []>} : vector<512x128xbf16>, vector<128x128xbf16>, vector<512x128xf32> -> vector<512x128xf32>
    %20 = arith.truncf %19 : vector<512x128xf32> to vector<512x128xbf16>
    %c0_12 = arith.constant 0 : index
    %c0_13 = arith.constant 0 : index
    %21 = vector.load %arg7[%c0_12, %c0_13] : memref<512x128xbf16, #tpu.memory_space<vmem>>, vector<512x128xbf16>
    tpu.vector_store %arg7[%c0_12, %c0_13], %20 {strides = array<i32>} : memref<512x128xbf16, #tpu.memory_space<vmem>>, vector<512x128xbf16>,
    return
  }
  func.func @transform_0(%arg0: i32) -> (i32, i32) {
    %c0_i32 = arith.constant 0 : i32
    %c0_i32_0 = arith.constant 0 : i32
    return %arg0, %c0_i32 : i32, i32
  }
  func.func @transform_1(%arg0: i32) -> (i32, i32) {
    %c0_i32 = arith.constant 0 : i32
    %c0_i32_0 = arith.constant 0 : i32
    %c0_i32_1 = arith.constant 0 : i32
    return %c0_i32, %c0_i32_0 : i32, i32
  }
  func.func @transform_2(%arg0: i32) -> (i32, i32) {
    %c0_i32 = arith.constant 0 : i32
    %c0_i32_0 = arith.constant 0 : i32
    %c0_i32_1 = arith.constant 0 : i32
    return %c0_i32, %c0_i32_0 : i32, i32
  }
  func.func @transform_3(%arg0: i32) -> (i32, i32) {
    %c0_i32 = arith.constant 0 : i32
    %c0_i32_0 = arith.constant 0 : i32
    %c0_i32_1 = arith.constant 0 : i32
    return %c0_i32, %c0_i32_0 : i32, i32
  }
  func.func @transform_4(%arg0: i32) -> (i32, i32) {
    %c0_i32 = arith.constant 0 : i32
    %c0_i32_0 = arith.constant 0 : i32
    return %arg0, %c0_i32 : i32, i32
  }
  func.func @transform_5(%arg0: i32) -> (i32, i32) {
    %c0_i32 = arith.constant 0 : i32
    %c0_i32_0 = arith.constant 0 : i32
    %c0_i32_1 = arith.constant 0 : i32
    return %c0_i32, %c0_i32_0 : i32, i32
  }
  func.func @transform_6(%arg0: i32) -> (i32, i32) {
    %c0_i32 = arith.constant 0 : i32
    %c0_i32_0 = arith.constant 0 : i32
    return %arg0, %c0_i32 : i32, i32
  }
}

module attributes {stable_mosaic.version = 11 : i64} {
  func.func @_aggregate_kernel(%arg0: i32, %arg1: i32, %arg2: memref<256x512xi8, #tpu.memory_space<vmem>>, %arg3: memref<512x128xbf16, #tpu.memory_space<vmem>>, %arg4: memref<256x1xf32, #tpu.memory_space<vmem>>, %arg5: memref<128x128xbf16, #tpu.memory_space<vmem>>, %arg6: memref<1x128xf32, #tpu.memory_space<vmem>>, %arg7: memref<256x128xbf16, #tpu.memory_space<vmem>>, %arg8: memref<8x128xf32, #tpu.memory_space<vmem>>, %arg9: memref<8x128xf32, #tpu.memory_space<vmem>>, %arg10: memref<256x128xf32, #tpu.memory_space<vmem>>) attributes {dimension_semantics = [#tpu.dimension_semantics<parallel>, #tpu.dimension_semantics<arbitrary>], iteration_bounds = array<i64: 2, 1>, scalar_prefetch = 0 : i64, scratch_operands = 1 : i64, tpu.core_type = #tpu.core_type<tc>, window_params = [{transform_indices = @transform_0, window_bounds = array<i64: 256, 512>}, {pipeline_mode = #tpu.pipeline_mode<synchronous>, transform_indices = @transform_1, window_bounds = array<i64: 512, 128>}, {transform_indices = @transform_2, window_bounds = array<i64: 256, 1>}, {pipeline_mode = #tpu.pipeline_mode<synchronous>, transform_indices = @transform_3, window_bounds = array<i64: 128, 128>}, {pipeline_mode = #tpu.pipeline_mode<synchronous>, transform_indices = @transform_4, window_bounds = array<i64: 1, 128>}, {transform_indices = @transform_5, window_bounds = array<i64: 256, 128>}, {transform_indices = @transform_6, window_bounds = array<i64: 8, 128>}, {transform_indices = @transform_7, window_bounds = array<i64: 8, 128>}]} {
    %c0_i32 = arith.constant 0 : i32
    %0 = arith.cmpi eq, %arg1, %c0_i32 : i32
    %1 = arith.extui %0 : i1 to i32
    %c0_i32_0 = arith.constant 0 : i32
    %2 = arith.cmpi ne, %1, %c0_i32_0 : i32
    scf.if %2 {
      %cst_9 = arith.constant 0.000000e+00 : f32
      %15 = vector.broadcast %cst_9 : f32 to vector<256x128xf32>
      %c0_10 = arith.constant 0 : index
      %c0_11 = arith.constant 0 : index
      %16 = vector.load %arg10[%c0_10, %c0_11] : memref<256x128xf32, #tpu.memory_space<vmem>>, vector<256x128xf32>
      tpu.vector_store %arg10[%c0_10, %c0_11], %15 {strides = array<i32>} : memref<256x128xf32, #tpu.memory_space<vmem>>, vector<256x128xf32>,
    } else {
    }
    %c0 = arith.constant 0 : index
    %c0_1 = arith.constant 0 : index
    %3 = vector.load %arg2[%c0, %c0_1] : memref<256x512xi8, #tpu.memory_space<vmem>>, vector<256x512xi8>
    %4 = arith.sitofp %3 : vector<256x512xi8> to vector<256x512xbf16>
    %c512_i32 = arith.constant 512 : i32
    %5 = arith.muli %arg1, %c512_i32 : i32
    %6 = arith.index_cast %5 : i32 to index
    %c0_2 = arith.constant 0 : index
    %7 = vector.load %arg3[%6, %c0_2] : memref<512x128xbf16, #tpu.memory_space<vmem>>, vector<512x128xbf16>
    %c0_3 = arith.constant 0 : index
    %c0_4 = arith.constant 0 : index
    %8 = vector.load %arg10[%c0_3, %c0_4] : memref<256x128xf32, #tpu.memory_space<vmem>>, vector<256x128xf32>
    %cst = arith.constant dense<0.000000e+00> : vector<256x128xf32>
    %9 = tpu.matmul %4, %7, %cst {dimension_numbers = #tpu.dot_dimension_numbers<[1], [0], [0], [1], [0, 0, 1, 1], [], []>} : vector<256x512xbf16>, vector<512x128xbf16>, vector<256x128xf32> -> vector<256x128xf32>
    %10 = arith.addf %8, %9 : vector<256x128xf32>
    %c0_5 = arith.constant 0 : index
    %c0_6 = arith.constant 0 : index
    %11 = vector.load %arg10[%c0_5, %c0_6] : memref<256x128xf32, #tpu.memory_space<vmem>>, vector<256x128xf32>
    tpu.vector_store %arg10[%c0_5, %c0_6], %10 {strides = array<i32>} : memref<256x128xf32, #tpu.memory_space<vmem>>, vector<256x128xf32>,
    %c0_i32_7 = arith.constant 0 : i32
    %12 = arith.cmpi eq, %arg1, %c0_i32_7 : i32
    %13 = arith.extui %12 : i1 to i32
    %c0_i32_8 = arith.constant 0 : i32
    %14 = arith.cmpi ne, %13, %c0_i32_8 : i32
    scf.if %14 {
      %c0_9 = arith.constant 0 : index
      %c0_10 = arith.constant 0 : index
      %15 = vector.load %arg10[%c0_9, %c0_10] : memref<256x128xf32, #tpu.memory_space<vmem>>, vector<256x128xf32>
      %c0_11 = arith.constant 0 : index
      %c0_12 = arith.constant 0 : index
      %16 = vector.load %arg4[%c0_11, %c0_12] : memref<256x1xf32, #tpu.memory_space<vmem>>, vector<256x1xf32>
      %17 = vector.broadcast %16 : vector<256x1xf32> to vector<256x128xf32>
      %18 = arith.mulf %15, %17 : vector<256x128xf32>
      %19 = arith.truncf %18 : vector<256x128xf32> to vector<256x128xbf16>
      %c0_13 = arith.constant 0 : index
      %c0_14 = arith.constant 0 : index
      %20 = vector.load %arg5[%c0_13, %c0_14] : memref<128x128xbf16, #tpu.memory_space<vmem>>, vector<128x128xbf16>
      %cst_15 = arith.constant dense<0.000000e+00> : vector<256x128xf32>
      %21 = tpu.matmul %19, %20, %cst_15 {dimension_numbers = #tpu.dot_dimension_numbers<[1], [0], [0], [1], [0, 0, 1, 1], [], []>} : vector<256x128xbf16>, vector<128x128xbf16>, vector<256x128xf32> -> vector<256x128xf32>
      %c0_16 = arith.constant 0 : index
      %c0_17 = arith.constant 0 : index
      %22 = vector.load %arg6[%c0_16, %c0_17] : memref<1x128xf32, #tpu.memory_space<vmem>>, vector<1x128xf32>
      %23 = vector.broadcast %22 : vector<1x128xf32> to vector<256x128xf32>
      %24 = arith.addf %21, %23 : vector<256x128xf32>
      %25 = arith.truncf %24 : vector<256x128xf32> to vector<256x128xbf16>
      %c0_18 = arith.constant 0 : index
      %c0_19 = arith.constant 0 : index
      %26 = vector.load %arg7[%c0_18, %c0_19] : memref<256x128xbf16, #tpu.memory_space<vmem>>, vector<256x128xbf16>
      tpu.vector_store %arg7[%c0_18, %c0_19], %25 {strides = array<i32>} : memref<256x128xbf16, #tpu.memory_space<vmem>>, vector<256x128xbf16>,
      %c256_i32 = arith.constant 256 : i32
      %27 = arith.muli %arg0, %c256_i32 : i32
      %28 = tpu.iota {dimensions = array<i32: 0>} : vector<256x1xi32>
      %29 = vector.broadcast %27 : i32 to vector<256x1xi32>
      %30 = arith.addi %29, %28 : vector<256x1xi32>
      %c512_i32_20 = arith.constant 512 : i32
      %31 = vector.broadcast %c512_i32_20 : i32 to vector<256x1xi32>
      %32 = arith.cmpi slt, %30, %31 : vector<256x1xi32>
      %33 = arith.extui %32 : vector<256x1xi1> to vector<256x1xi32>
      %34 = arith.sitofp %33 : vector<256x1xi32> to vector<256x1xf32>
      %35 = vector.broadcast %34 : vector<256x1xf32> to vector<256x128xf32>
      %36 = arith.mulf %24, %35 : vector<256x128xf32>
      %cst_21 = arith.constant dense<0.000000e+00> : vector<128xf32>
      %37 = vector.multi_reduction <add>, %36, %cst_21 [0] : vector<256x128xf32> to vector<128xf32>
      %38 = vector.shape_cast %37 : vector<128xf32> to vector<1x128xf32>
      %39 = arith.mulf %36, %24 : vector<256x128xf32>
      %cst_22 = arith.constant dense<0.000000e+00> : vector<128xf32>
      %40 = vector.multi_reduction <add>, %39, %cst_22 [0] : vector<256x128xf32> to vector<128xf32>
      %41 = vector.shape_cast %40 : vector<128xf32> to vector<1x128xf32>
      %42 = vector.shape_cast %38 : vector<1x128xf32> to vector<1x128xf32>
      %43 = vector.broadcast %42 : vector<1x128xf32> to vector<8x128xf32>
      %c0_23 = arith.constant 0 : index
      %c0_24 = arith.constant 0 : index
      %44 = vector.load %arg8[%c0_23, %c0_24] : memref<8x128xf32, #tpu.memory_space<vmem>>, vector<8x128xf32>
      tpu.vector_store %arg8[%c0_23, %c0_24], %43 {strides = array<i32>} : memref<8x128xf32, #tpu.memory_space<vmem>>, vector<8x128xf32>,
      %45 = vector.shape_cast %41 : vector<1x128xf32> to vector<1x128xf32>
      %46 = vector.broadcast %45 : vector<1x128xf32> to vector<8x128xf32>
      %c0_25 = arith.constant 0 : index
      %c0_26 = arith.constant 0 : index
      %47 = vector.load %arg9[%c0_25, %c0_26] : memref<8x128xf32, #tpu.memory_space<vmem>>, vector<8x128xf32>
      tpu.vector_store %arg9[%c0_25, %c0_26], %46 {strides = array<i32>} : memref<8x128xf32, #tpu.memory_space<vmem>>, vector<8x128xf32>,
    } else {
    }
    return
  }
  func.func @transform_0(%arg0: i32, %arg1: i32) -> (i32, i32) {
    %c0_i32 = arith.constant 0 : i32
    return %arg0, %arg1 : i32, i32
  }
  func.func @transform_1(%arg0: i32, %arg1: i32) -> (i32, i32) {
    %c0_i32 = arith.constant 0 : i32
    %c0_i32_0 = arith.constant 0 : i32
    %c0_i32_1 = arith.constant 0 : i32
    return %c0_i32, %c0_i32_0 : i32, i32
  }
  func.func @transform_2(%arg0: i32, %arg1: i32) -> (i32, i32) {
    %c0_i32 = arith.constant 0 : i32
    %c0_i32_0 = arith.constant 0 : i32
    return %arg0, %c0_i32 : i32, i32
  }
  func.func @transform_3(%arg0: i32, %arg1: i32) -> (i32, i32) {
    %c0_i32 = arith.constant 0 : i32
    %c0_i32_0 = arith.constant 0 : i32
    %c0_i32_1 = arith.constant 0 : i32
    return %c0_i32, %c0_i32_0 : i32, i32
  }
  func.func @transform_4(%arg0: i32, %arg1: i32) -> (i32, i32) {
    %c0_i32 = arith.constant 0 : i32
    %c0_i32_0 = arith.constant 0 : i32
    %c0_i32_1 = arith.constant 0 : i32
    return %c0_i32, %c0_i32_0 : i32, i32
  }
  func.func @transform_5(%arg0: i32, %arg1: i32) -> (i32, i32) {
    %c0_i32 = arith.constant 0 : i32
    %c0_i32_0 = arith.constant 0 : i32
    return %arg0, %c0_i32 : i32, i32
  }
  func.func @transform_6(%arg0: i32, %arg1: i32) -> (i32, i32) {
    %c0_i32 = arith.constant 0 : i32
    %c0_i32_0 = arith.constant 0 : i32
    return %arg0, %c0_i32 : i32, i32
  }
  func.func @transform_7(%arg0: i32, %arg1: i32) -> (i32, i32) {
    %c0_i32 = arith.constant 0 : i32
    %c0_i32_0 = arith.constant 0 : i32
    return %arg0, %c0_i32 : i32, i32
  }
}

module attributes {stable_mosaic.version = 11 : i64} {
  func.func @_pointwise_kernel(%arg0: i32, %arg1: memref<512x128xf32, #tpu.memory_space<vmem>>, %arg2: memref<512x1xf32, #tpu.memory_space<vmem>>, %arg3: memref<512x128xbf16, #tpu.memory_space<vmem>>) attributes {dimension_semantics = [#tpu.dimension_semantics<parallel>], iteration_bounds = array<i64: 1>, scalar_prefetch = 0 : i64, scratch_operands = 0 : i64, tpu.core_type = #tpu.core_type<tc>, window_params = [{transform_indices = @transform_0, window_bounds = array<i64: 512, 128>}, {transform_indices = @transform_1, window_bounds = array<i64: 512, 1>}, {transform_indices = @transform_2, window_bounds = array<i64: 512, 128>}]} {
    %c0 = arith.constant 0 : index
    %c0_0 = arith.constant 0 : index
    %0 = vector.load %arg1[%c0, %c0_0] : memref<512x128xf32, #tpu.memory_space<vmem>>, vector<512x128xf32>
    %c0_1 = arith.constant 0 : index
    %c0_2 = arith.constant 0 : index
    %1 = vector.load %arg2[%c0_1, %c0_2] : memref<512x1xf32, #tpu.memory_space<vmem>>, vector<512x1xf32>
    %2 = vector.broadcast %1 : vector<512x1xf32> to vector<512x128xf32>
    %3 = arith.mulf %0, %2 : vector<512x128xf32>
    %4 = arith.truncf %3 : vector<512x128xf32> to vector<512x128xbf16>
    %c0_3 = arith.constant 0 : index
    %c0_4 = arith.constant 0 : index
    %5 = vector.load %arg3[%c0_3, %c0_4] : memref<512x128xbf16, #tpu.memory_space<vmem>>, vector<512x128xbf16>
    tpu.vector_store %arg3[%c0_3, %c0_4], %4 {strides = array<i32>} : memref<512x128xbf16, #tpu.memory_space<vmem>>, vector<512x128xbf16>,
    return
  }
  func.func @transform_0(%arg0: i32) -> (i32, i32) {
    %c0_i32 = arith.constant 0 : i32
    %c0_i32_0 = arith.constant 0 : i32
    return %arg0, %c0_i32 : i32, i32
  }
  func.func @transform_1(%arg0: i32) -> (i32, i32) {
    %c0_i32 = arith.constant 0 : i32
    %c0_i32_0 = arith.constant 0 : i32
    return %arg0, %c0_i32 : i32, i32
  }
  func.func @transform_2(%arg0: i32) -> (i32, i32) {
    %c0_i32 = arith.constant 0 : i32
    %c0_i32_0 = arith.constant 0 : i32
    return %arg0, %c0_i32 : i32, i32
  }
}

module attributes {stable_mosaic.version = 11 : i64} {
  func.func @_aggregate_kernel(%arg0: i32, %arg1: i32, %arg2: memref<256x512xi8, #tpu.memory_space<vmem>>, %arg3: memref<512x128xbf16, #tpu.memory_space<vmem>>, %arg4: memref<256x1xf32, #tpu.memory_space<vmem>>, %arg5: memref<1x128xf32, #tpu.memory_space<vmem>>, %arg6: memref<256x128xbf16, #tpu.memory_space<vmem>>, %arg7: memref<8x128xf32, #tpu.memory_space<vmem>>, %arg8: memref<8x128xf32, #tpu.memory_space<vmem>>, %arg9: memref<256x128xf32, #tpu.memory_space<vmem>>) attributes {dimension_semantics = [#tpu.dimension_semantics<parallel>, #tpu.dimension_semantics<arbitrary>], iteration_bounds = array<i64: 2, 1>, scalar_prefetch = 0 : i64, scratch_operands = 1 : i64, tpu.core_type = #tpu.core_type<tc>, window_params = [{transform_indices = @transform_0, window_bounds = array<i64: 256, 512>}, {pipeline_mode = #tpu.pipeline_mode<synchronous>, transform_indices = @transform_1, window_bounds = array<i64: 512, 128>}, {transform_indices = @transform_2, window_bounds = array<i64: 256, 1>}, {pipeline_mode = #tpu.pipeline_mode<synchronous>, transform_indices = @transform_3, window_bounds = array<i64: 1, 128>}, {transform_indices = @transform_4, window_bounds = array<i64: 256, 128>}, {transform_indices = @transform_5, window_bounds = array<i64: 8, 128>}, {transform_indices = @transform_6, window_bounds = array<i64: 8, 128>}]} {
    %c0_i32 = arith.constant 0 : i32
    %0 = arith.cmpi eq, %arg1, %c0_i32 : i32
    %1 = arith.extui %0 : i1 to i32
    %c0_i32_0 = arith.constant 0 : i32
    %2 = arith.cmpi ne, %1, %c0_i32_0 : i32
    scf.if %2 {
      %cst_9 = arith.constant 0.000000e+00 : f32
      %15 = vector.broadcast %cst_9 : f32 to vector<256x128xf32>
      %c0_10 = arith.constant 0 : index
      %c0_11 = arith.constant 0 : index
      %16 = vector.load %arg9[%c0_10, %c0_11] : memref<256x128xf32, #tpu.memory_space<vmem>>, vector<256x128xf32>
      tpu.vector_store %arg9[%c0_10, %c0_11], %15 {strides = array<i32>} : memref<256x128xf32, #tpu.memory_space<vmem>>, vector<256x128xf32>,
    } else {
    }
    %c0 = arith.constant 0 : index
    %c0_1 = arith.constant 0 : index
    %3 = vector.load %arg2[%c0, %c0_1] : memref<256x512xi8, #tpu.memory_space<vmem>>, vector<256x512xi8>
    %4 = arith.sitofp %3 : vector<256x512xi8> to vector<256x512xbf16>
    %c512_i32 = arith.constant 512 : i32
    %5 = arith.muli %arg1, %c512_i32 : i32
    %6 = arith.index_cast %5 : i32 to index
    %c0_2 = arith.constant 0 : index
    %7 = vector.load %arg3[%6, %c0_2] : memref<512x128xbf16, #tpu.memory_space<vmem>>, vector<512x128xbf16>
    %c0_3 = arith.constant 0 : index
    %c0_4 = arith.constant 0 : index
    %8 = vector.load %arg9[%c0_3, %c0_4] : memref<256x128xf32, #tpu.memory_space<vmem>>, vector<256x128xf32>
    %cst = arith.constant dense<0.000000e+00> : vector<256x128xf32>
    %9 = tpu.matmul %4, %7, %cst {dimension_numbers = #tpu.dot_dimension_numbers<[1], [0], [0], [1], [0, 0, 1, 1], [], []>} : vector<256x512xbf16>, vector<512x128xbf16>, vector<256x128xf32> -> vector<256x128xf32>
    %10 = arith.addf %8, %9 : vector<256x128xf32>
    %c0_5 = arith.constant 0 : index
    %c0_6 = arith.constant 0 : index
    %11 = vector.load %arg9[%c0_5, %c0_6] : memref<256x128xf32, #tpu.memory_space<vmem>>, vector<256x128xf32>
    tpu.vector_store %arg9[%c0_5, %c0_6], %10 {strides = array<i32>} : memref<256x128xf32, #tpu.memory_space<vmem>>, vector<256x128xf32>,
    %c0_i32_7 = arith.constant 0 : i32
    %12 = arith.cmpi eq, %arg1, %c0_i32_7 : i32
    %13 = arith.extui %12 : i1 to i32
    %c0_i32_8 = arith.constant 0 : i32
    %14 = arith.cmpi ne, %13, %c0_i32_8 : i32
    scf.if %14 {
      %c0_9 = arith.constant 0 : index
      %c0_10 = arith.constant 0 : index
      %15 = vector.load %arg9[%c0_9, %c0_10] : memref<256x128xf32, #tpu.memory_space<vmem>>, vector<256x128xf32>
      %c0_11 = arith.constant 0 : index
      %c0_12 = arith.constant 0 : index
      %16 = vector.load %arg4[%c0_11, %c0_12] : memref<256x1xf32, #tpu.memory_space<vmem>>, vector<256x1xf32>
      %17 = vector.broadcast %16 : vector<256x1xf32> to vector<256x128xf32>
      %18 = arith.mulf %15, %17 : vector<256x128xf32>
      %c0_13 = arith.constant 0 : index
      %c0_14 = arith.constant 0 : index
      %19 = vector.load %arg5[%c0_13, %c0_14] : memref<1x128xf32, #tpu.memory_space<vmem>>, vector<1x128xf32>
      %20 = vector.broadcast %19 : vector<1x128xf32> to vector<256x128xf32>
      %21 = arith.addf %18, %20 : vector<256x128xf32>
      %22 = arith.truncf %21 : vector<256x128xf32> to vector<256x128xbf16>
      %c0_15 = arith.constant 0 : index
      %c0_16 = arith.constant 0 : index
      %23 = vector.load %arg6[%c0_15, %c0_16] : memref<256x128xbf16, #tpu.memory_space<vmem>>, vector<256x128xbf16>
      tpu.vector_store %arg6[%c0_15, %c0_16], %22 {strides = array<i32>} : memref<256x128xbf16, #tpu.memory_space<vmem>>, vector<256x128xbf16>,
      %c256_i32 = arith.constant 256 : i32
      %24 = arith.muli %arg0, %c256_i32 : i32
      %25 = tpu.iota {dimensions = array<i32: 0>} : vector<256x1xi32>
      %26 = vector.broadcast %24 : i32 to vector<256x1xi32>
      %27 = arith.addi %26, %25 : vector<256x1xi32>
      %c512_i32_17 = arith.constant 512 : i32
      %28 = vector.broadcast %c512_i32_17 : i32 to vector<256x1xi32>
      %29 = arith.cmpi slt, %27, %28 : vector<256x1xi32>
      %30 = arith.extui %29 : vector<256x1xi1> to vector<256x1xi32>
      %31 = arith.sitofp %30 : vector<256x1xi32> to vector<256x1xf32>
      %32 = vector.broadcast %31 : vector<256x1xf32> to vector<256x128xf32>
      %33 = arith.mulf %21, %32 : vector<256x128xf32>
      %cst_18 = arith.constant dense<0.000000e+00> : vector<128xf32>
      %34 = vector.multi_reduction <add>, %33, %cst_18 [0] : vector<256x128xf32> to vector<128xf32>
      %35 = vector.shape_cast %34 : vector<128xf32> to vector<1x128xf32>
      %36 = arith.mulf %33, %21 : vector<256x128xf32>
      %cst_19 = arith.constant dense<0.000000e+00> : vector<128xf32>
      %37 = vector.multi_reduction <add>, %36, %cst_19 [0] : vector<256x128xf32> to vector<128xf32>
      %38 = vector.shape_cast %37 : vector<128xf32> to vector<1x128xf32>
      %39 = vector.shape_cast %35 : vector<1x128xf32> to vector<1x128xf32>
      %40 = vector.broadcast %39 : vector<1x128xf32> to vector<8x128xf32>
      %c0_20 = arith.constant 0 : index
      %c0_21 = arith.constant 0 : index
      %41 = vector.load %arg7[%c0_20, %c0_21] : memref<8x128xf32, #tpu.memory_space<vmem>>, vector<8x128xf32>
      tpu.vector_store %arg7[%c0_20, %c0_21], %40 {strides = array<i32>} : memref<8x128xf32, #tpu.memory_space<vmem>>, vector<8x128xf32>,
      %42 = vector.shape_cast %38 : vector<1x128xf32> to vector<1x128xf32>
      %43 = vector.broadcast %42 : vector<1x128xf32> to vector<8x128xf32>
      %c0_22 = arith.constant 0 : index
      %c0_23 = arith.constant 0 : index
      %44 = vector.load %arg8[%c0_22, %c0_23] : memref<8x128xf32, #tpu.memory_space<vmem>>, vector<8x128xf32>
      tpu.vector_store %arg8[%c0_22, %c0_23], %43 {strides = array<i32>} : memref<8x128xf32, #tpu.memory_space<vmem>>, vector<8x128xf32>,
    } else {
    }
    return
  }
  func.func @transform_0(%arg0: i32, %arg1: i32) -> (i32, i32) {
    %c0_i32 = arith.constant 0 : i32
    return %arg0, %arg1 : i32, i32
  }
  func.func @transform_1(%arg0: i32, %arg1: i32) -> (i32, i32) {
    %c0_i32 = arith.constant 0 : i32
    %c0_i32_0 = arith.constant 0 : i32
    %c0_i32_1 = arith.constant 0 : i32
    return %c0_i32, %c0_i32_0 : i32, i32
  }
  func.func @transform_2(%arg0: i32, %arg1: i32) -> (i32, i32) {
    %c0_i32 = arith.constant 0 : i32
    %c0_i32_0 = arith.constant 0 : i32
    return %arg0, %c0_i32 : i32, i32
  }
  func.func @transform_3(%arg0: i32, %arg1: i32) -> (i32, i32) {
    %c0_i32 = arith.constant 0 : i32
    %c0_i32_0 = arith.constant 0 : i32
    %c0_i32_1 = arith.constant 0 : i32
    return %c0_i32, %c0_i32_0 : i32, i32
  }
  func.func @transform_4(%arg0: i32, %arg1: i32) -> (i32, i32) {
    %c0_i32 = arith.constant 0 : i32
    %c0_i32_0 = arith.constant 0 : i32
    return %arg0, %c0_i32 : i32, i32
  }
  func.func @transform_5(%arg0: i32, %arg1: i32) -> (i32, i32) {
    %c0_i32 = arith.constant 0 : i32
    %c0_i32_0 = arith.constant 0 : i32
    return %arg0, %c0_i32 : i32, i32
  }
  func.func @transform_6(%arg0: i32, %arg1: i32) -> (i32, i32) {
    %c0_i32 = arith.constant 0 : i32
    %c0_i32_0 = arith.constant 0 : i32
    return %arg0, %c0_i32 : i32, i32
  }
}

module attributes {stable_mosaic.version = 11 : i64} {
  func.func @_pointwise_kernel(%arg0: i32, %arg1: memref<512x128xbf16, #tpu.memory_space<vmem>>, %arg2: memref<1x128xf32, #tpu.memory_space<vmem>>, %arg3: memref<1x128xf32, #tpu.memory_space<vmem>>, %arg4: memref<512x128xf32, #tpu.memory_space<vmem>>) attributes {dimension_semantics = [#tpu.dimension_semantics<parallel>], iteration_bounds = array<i64: 1>, scalar_prefetch = 0 : i64, scratch_operands = 0 : i64, tpu.core_type = #tpu.core_type<tc>, window_params = [{transform_indices = @transform_0, window_bounds = array<i64: 512, 128>}, {pipeline_mode = #tpu.pipeline_mode<synchronous>, transform_indices = @transform_1, window_bounds = array<i64: 1, 128>}, {pipeline_mode = #tpu.pipeline_mode<synchronous>, transform_indices = @transform_2, window_bounds = array<i64: 1, 128>}, {transform_indices = @transform_3, window_bounds = array<i64: 512, 128>}]} {
    %c0 = arith.constant 0 : index
    %c0_0 = arith.constant 0 : index
    %0 = vector.load %arg1[%c0, %c0_0] : memref<512x128xbf16, #tpu.memory_space<vmem>>, vector<512x128xbf16>
    %1 = arith.extf %0 : vector<512x128xbf16> to vector<512x128xf32>
    %c0_1 = arith.constant 0 : index
    %c0_2 = arith.constant 0 : index
    %2 = vector.load %arg2[%c0_1, %c0_2] : memref<1x128xf32, #tpu.memory_space<vmem>>, vector<1x128xf32>
    %3 = vector.broadcast %2 : vector<1x128xf32> to vector<512x128xf32>
    %4 = arith.mulf %1, %3 : vector<512x128xf32>
    %c0_3 = arith.constant 0 : index
    %c0_4 = arith.constant 0 : index
    %5 = vector.load %arg3[%c0_3, %c0_4] : memref<1x128xf32, #tpu.memory_space<vmem>>, vector<1x128xf32>
    %6 = vector.broadcast %5 : vector<1x128xf32> to vector<512x128xf32>
    %7 = arith.addf %4, %6 : vector<512x128xf32>
    %c0_5 = arith.constant 0 : index
    %c0_6 = arith.constant 0 : index
    %8 = vector.load %arg4[%c0_5, %c0_6] : memref<512x128xf32, #tpu.memory_space<vmem>>, vector<512x128xf32>
    tpu.vector_store %arg4[%c0_5, %c0_6], %7 {strides = array<i32>} : memref<512x128xf32, #tpu.memory_space<vmem>>, vector<512x128xf32>,
    return
  }
  func.func @transform_0(%arg0: i32) -> (i32, i32) {
    %c0_i32 = arith.constant 0 : i32
    %c0_i32_0 = arith.constant 0 : i32
    return %arg0, %c0_i32 : i32, i32
  }
  func.func @transform_1(%arg0: i32) -> (i32, i32) {
    %c0_i32 = arith.constant 0 : i32
    %c0_i32_0 = arith.constant 0 : i32
    %c0_i32_1 = arith.constant 0 : i32
    return %c0_i32, %c0_i32_0 : i32, i32
  }
  func.func @transform_2(%arg0: i32) -> (i32, i32) {
    %c0_i32 = arith.constant 0 : i32
    %c0_i32_0 = arith.constant 0 : i32
    %c0_i32_1 = arith.constant 0 : i32
    return %c0_i32, %c0_i32_0 : i32, i32
  }
  func.func @transform_3(%arg0: i32) -> (i32, i32) {
    %c0_i32 = arith.constant 0 : i32
    %c0_i32_0 = arith.constant 0 : i32
    return %arg0, %c0_i32 : i32, i32
  }
}

</mosaic_0001>

<bundles_post_ra>
// kernel: a_call__.5
= control target key start
LH: loop header
LB: loop body
LE: loop exit
PB: predicated region body
PF: predicated region fallthrough
CT: control target
= control target key end

     0   :  { %v1169_v0 = vmov 0   ;;  %s1665_s1 = inlined_call_operand.vmem [shape: f32[512,1], index: 1, kind: input, shape index: {}]   ;;  %s1666_s0 = inlined_call_operand.vmem [shape: f32[512,128], index: 0, kind: input, shape index: {}]   ;;  %s1667_s2 = inlined_call_operand.vmem [shape: bf16[512,128], index: 2, kind: output, shape index: {}]  }
   0x1   :  { %1168 = vset.pattern.permute.xlu1 %v1169_v0  ;;  %1167 = vset.pattern.permute.xlu0 %v1169_v0  ;;  %v77_v1 = vld [vmem:[%s1665_s1 + $0x10] sm:$0xff]  ;;  %v75_v2 = vld [vmem:[%s1665_s1] sm:$0xff]  ;;  %v78_v3 = vld [vmem:[%s1665_s1 + $0x18] sm:$0xff] }
   0x2   :  { %151 = vperm.xlu1 %1168, %v77_v1   ;;  %141 = vperm.xlu0 %1167, %v75_v2   ;;  %v76_v4 = vld [vmem:[%s1665_s1 + $0x8] sm:$0xff]  ;;  %v79_v6 = vld [vmem:[%s1665_s1 + $0x20] sm:$0xff]  ;;  %v82_v7 = vld [vmem:[%s1665_s1 + $0x38] sm:$0xff] }
   0x3   :  { %v80_v5 = vld [vmem:[%s1665_s1 + $0x28] sm:$0xff]  ;;  %v81_v8 = vld [vmem:[%s1665_s1 + $0x30] sm:$0xff]  ;;  %v83_v10 = vld [vmem:[%s1665_s1 + $0x40] sm:$0xff] }
   0x4   :  { %v84_v9 = vld [vmem:[%s1665_s1 + $0x48] sm:$0xff]  ;;  %v86_v11 = vld [vmem:[%s1665_s1 + $0x58] sm:$0xff]  ;;  %v85_v12 = vld [vmem:[%s1665_s1 + $0x50] sm:$0xff] }
   0x5   :  { %v88_v13 = vld [vmem:[%s1665_s1 + $0x68] sm:$0xff]  ;;  %v87_v14 = vld [vmem:[%s1665_s1 + $0x60] sm:$0xff]  ;;  %v90_v15 = vld [vmem:[%s1665_s1 + $0x78] sm:$0xff] }
   0x6   :  { %156 = vperm.xlu1 %1168, %v78_v3   ;;  %146 = vperm.xlu0 %1167, %v76_v4   ;;  %v89_v16 = vld [vmem:[%s1665_s1 + $0x70] sm:$0xff]  ;;  %v92_v17 = vld [vmem:[%s1665_s1 + $0x88] sm:$0xff]  ;;  %v91_v18 = vld [vmem:[%s1665_s1 + $0x80] sm:$0xff] }
   0x7   :  { %v94_v19 = vld [vmem:[%s1665_s1 + $0x98] sm:$0xff]  ;;  %v93_v20 = vld [vmem:[%s1665_s1 + $0x90] sm:$0xff]  ;;  %v96_v21 = vld [vmem:[%s1665_s1 + $0xa8] sm:$0xff] }
   0x8   :  { %v95_v22 = vld [vmem:[%s1665_s1 + $0xa0] sm:$0xff]  ;;  %v98_v23 = vld [vmem:[%s1665_s1 + $0xb8] sm:$0xff]  ;;  %v97_v24 = vld [vmem:[%s1665_s1 + $0xb0] sm:$0xff] }
   0x9   :  { %v100_v25 = vld [vmem:[%s1665_s1 + $0xc8] sm:$0xff]  ;;  %v99_v26 = vld [vmem:[%s1665_s1 + $0xc0] sm:$0xff]  ;;  %v102_v27 = vld [vmem:[%s1665_s1 + $0xd8] sm:$0xff] }
   0xa   :  { %166 = vperm.xlu1 %1168, %v80_v5   ;;  %161 = vperm.xlu0 %1167, %v79_v6   ;;  %v101_v28 = vld [vmem:[%s1665_s1 + $0xd0] sm:$0xff]  ;;  %v104_v29 = vld [vmem:[%s1665_s1 + $0xe8] sm:$0xff]  ;;  %v103_v30 = vld [vmem:[%s1665_s1 + $0xe0] sm:$0xff] }
   0xb   :  { %v106_v31 = vld [vmem:[%s1665_s1 + $0xf8] sm:$0xff]  ;;  %v105_v32 = vld [vmem:[%s1665_s1 + $0xf0] sm:$0xff]  ;;  %v108_v33 = vld [vmem:[%s1665_s1 + $0x108] sm:$0xff] }
   0xc   :  { %v107_v34 = vld [vmem:[%s1665_s1 + $0x100] sm:$0xff]  ;;  %v110_v35 = vld [vmem:[%s1665_s1 + $0x118] sm:$0xff]  ;;  %v109_v36 = vld [vmem:[%s1665_s1 + $0x110] sm:$0xff] }
   0xd   :  { %v112_v37 = vld [vmem:[%s1665_s1 + $0x128] sm:$0xff]  ;;  %v111_v38 = vld [vmem:[%s1665_s1 + $0x120] sm:$0xff]  ;;  %v114_v39 = vld [vmem:[%s1665_s1 + $0x138] sm:$0xff] }
   0xe   :  { %176 = vperm.xlu1 %1168, %v82_v7   ;;  %171 = vperm.xlu0 %1167, %v81_v8   ;;  %v113_v40 = vld [vmem:[%s1665_s1 + $0x130] sm:$0xff]  ;;  %v116_v41 = vld [vmem:[%s1665_s1 + $0x148] sm:$0xff]  ;;  %v115_v42 = vld [vmem:[%s1665_s1 + $0x140] sm:$0xff] }
   0xf   :  { %v118_v43 = vld [vmem:[%s1665_s1 + $0x158] sm:$0xff]  ;;  %v117_v44 = vld [vmem:[%s1665_s1 + $0x150] sm:$0xff]  ;;  %v120_v45 = vld [vmem:[%s1665_s1 + $0x168] sm:$0xff] }
  0x10   :  { %v119_v46 = vld [vmem:[%s1665_s1 + $0x160] sm:$0xff]  ;;  %v122_v47 = vld [vmem:[%s1665_s1 + $0x178] sm:$0xff]  ;;  %v121_v48 = vld [vmem:[%s1665_s1 + $0x170] sm:$0xff] }
  0x11   :  { %v124_v49 = vld [vmem:[%s1665_s1 + $0x188] sm:$0xff]  ;;  %v123_v50 = vld [vmem:[%s1665_s1 + $0x180] sm:$0xff]  ;;  %v126_v51 = vld [vmem:[%s1665_s1 + $0x198] sm:$0xff] }
  0x12   :  { %186 = vperm.xlu1 %1168, %v84_v9   ;;  %181 = vperm.xlu0 %1167, %v83_v10   ;;  %v125_v52 = vld [vmem:[%s1665_s1 + $0x190] sm:$0xff]  ;;  %v128_v53 = vld [vmem:[%s1665_s1 + $0x1a8] sm:$0xff]  ;;  %v127_v54 = vld [vmem:[%s1665_s1 + $0x1a0] sm:$0xff] }
  0x13   :  { %v130_v55 = vld [vmem:[%s1665_s1 + $0x1b8] sm:$0xff]  ;;  %v129_v56 = vld [vmem:[%s1665_s1 + $0x1b0] sm:$0xff]  ;;  %v132_v57 = vld [vmem:[%s1665_s1 + $0x1c8] sm:$0xff] }
  0x14   :  { %v131_v58 = vld [vmem:[%s1665_s1 + $0x1c0] sm:$0xff]  ;;  %v134_v59 = vld [vmem:[%s1665_s1 + $0x1d8] sm:$0xff]  ;;  %v133_v60 = vld [vmem:[%s1665_s1 + $0x1d0] sm:$0xff] }
  0x15   :  { %v136_v61 = vld [vmem:[%s1665_s1 + $0x1e8] sm:$0xff]  ;;  %v135_v62 = vld [vmem:[%s1665_s1 + $0x1e0] sm:$0xff]  ;;  %v138_v63 = vld [vmem:[%s1665_s1 + $0x1f8] sm:$0xff] }
  0x16   :  { %196 = vperm.xlu1 %1168, %v86_v11   ;;  %191 = vperm.xlu0 %1167, %v85_v12   ;;  %v137_v0 = vld [vmem:[%s1665_s1 + $0x1f0] sm:$0xff]  ;;  %v11_v4 = vld [vmem:[%s1666_s0] sm:$0xff]  ;;  %v14_v5 = vld [vmem:[%s1666_s0 + $0x18] sm:$0xff] }
  0x17   :  { %v13_v3 = vld [vmem:[%s1666_s0 + $0x10] sm:$0xff]  ;;  %v12_v6 = vld [vmem:[%s1666_s0 + $0x8] sm:$0xff] }
  0x1a   :  { %206 = vperm.xlu1 %1168, %v88_v13   ;;  %201 = vperm.xlu0 %1167, %v87_v14   ;;  %v16_v13 = vld [vmem:[%s1666_s0 + $0x28] sm:$0xff]  ;;  %v15_v14 = vld [vmem:[%s1666_s0 + $0x20] sm:$0xff] }
  0x1e   :  { %216 = vperm.xlu1 %1168, %v90_v15   ;;  %211 = vperm.xlu0 %1167, %v89_v16  }
  0x22   :  { %226 = vperm.xlu1 %1168, %v92_v17   ;;  %221 = vperm.xlu0 %1167, %v91_v18  }
  0x26   :  { %236 = vperm.xlu1 %1168, %v94_v19   ;;  %231 = vperm.xlu0 %1167, %v93_v20  }
  0x2a   :  { %246 = vperm.xlu1 %1168, %v96_v21   ;;  %241 = vperm.xlu0 %1167, %v95_v22   ;;  %v18_v21 = vld [vmem:[%s1666_s0 + $0x38] sm:$0xff]  ;;  %v17_v22 = vld [vmem:[%s1666_s0 + $0x30] sm:$0xff] }
  0x2e   :  { %256 = vperm.xlu1 %1168, %v98_v23   ;;  %251 = vperm.xlu0 %1167, %v97_v24  }
  0x32   :  { %266 = vperm.xlu1 %1168, %v100_v25   ;;  %261 = vperm.xlu0 %1167, %v99_v26  }
  0x36   :  { %276 = vperm.xlu1 %1168, %v102_v27   ;;  %271 = vperm.xlu0 %1167, %v101_v28   ;;  %v20_v28 = vld [vmem:[%s1666_s0 + $0x48] sm:$0xff] }
  0x3a   :  { %286 = vperm.xlu1 %1168, %v104_v29   ;;  %281 = vperm.xlu0 %1167, %v103_v30   ;;  %v19_v29 = vld [vmem:[%s1666_s0 + $0x40] sm:$0xff] }
  0x3e   :  { %296 = vperm.xlu1 %1168, %v106_v31   ;;  %291 = vperm.xlu0 %1167, %v105_v32  }
  0x42   :  { %306 = vperm.xlu1 %1168, %v108_v33   ;;  %301 = vperm.xlu0 %1167, %v107_v34  }
  0x46   :  { %316 = vperm.xlu1 %1168, %v110_v35   ;;  %311 = vperm.xlu0 %1167, %v109_v36   ;;  %v22_v35 = vld [vmem:[%s1666_s0 + $0x58] sm:$0xff]  ;;  %v21_v36 = vld [vmem:[%s1666_s0 + $0x50] sm:$0xff] }
  0x4a   :  { %326 = vperm.xlu1 %1168, %v112_v37   ;;  %321 = vperm.xlu0 %1167, %v111_v38  }
  0x4e   :  { %336 = vperm.xlu1 %1168, %v114_v39   ;;  %331 = vperm.xlu0 %1167, %v113_v40  }
  0x52   :  { %346 = vperm.xlu1 %1168, %v116_v41   ;;  %341 = vperm.xlu0 %1167, %v115_v42   ;;  %v24_v42 = vld [vmem:[%s1666_s0 + $0x68] sm:$0xff] }
  0x56   :  { %356 = vperm.xlu1 %1168, %v118_v43   ;;  %351 = vperm.xlu0 %1167, %v117_v44   ;;  %v23_v43 = vld [vmem:[%s1666_s0 + $0x60] sm:$0xff] }
  0x5a   :  { %366 = vperm.xlu1 %1168, %v120_v45   ;;  %361 = vperm.xlu0 %1167, %v119_v46  }
  0x5e   :  { %376 = vperm.xlu1 %1168, %v122_v47   ;;  %371 = vperm.xlu0 %1167, %v121_v48  }
  0x62   :  { %386 = vperm.xlu1 %1168, %v124_v49   ;;  %381 = vperm.xlu0 %1167, %v123_v50   ;;  %v26_v49 = vld [vmem:[%s1666_s0 + $0x78] sm:$0xff]  ;;  %v25_v50 = vld [vmem:[%s1666_s0 + $0x70] sm:$0xff] }
  0x66   :  { %396 = vperm.xlu1 %1168, %v126_v51   ;;  %391 = vperm.xlu0 %1167, %v125_v52  }
  0x6a   :  { %406 = vperm.xlu1 %1168, %v128_v53   ;;  %401 = vperm.xlu0 %1167, %v127_v54  }
  0x6e   :  { %416 = vperm.xlu1 %1168, %v130_v55   ;;  %411 = vperm.xlu0 %1167, %v129_v56   ;;  %v28_v56 = vld [vmem:[%s1666_s0 + $0x88] sm:$0xff] }
  0x72   :  { %426 = vperm.xlu1 %1168, %v132_v57   ;;  %421 = vperm.xlu0 %1167, %v131_v58   ;;  %v27_v57 = vld [vmem:[%s1666_s0 + $0x80] sm:$0xff] }
  0x76   :  { %436 = vperm.xlu1 %1168, %v134_v59   ;;  %431 = vperm.xlu0 %1167, %v133_v60  }
  0x7a   :  { %446 = vperm.xlu1 %1168, %v136_v61   ;;  %441 = vperm.xlu0 %1167, %v135_v62  }
  0x7e   :  { %456 = vperm.xlu1 %1168, %v138_v63   ;;  %451 = vperm.xlu0 %1167, %v137_v0   ;;  %v30_v63 = vld [vmem:[%s1666_s0 + $0x98] sm:$0xff]  ;;  %v29_v0 = vld [vmem:[%s1666_s0 + $0x90] sm:$0xff] }
  0x81   :  { %v152_v1 = vpop.permute.xlu1 %151  ;;  %v142_v2 = vpop.permute.xlu0 %141 }
  0x82   :  { %v461_v9 = vmul.f32 %v152_v1, %v13_v3  ;;  %v459_v10 = vmul.f32 %v142_v2, %v11_v4 }
  0x85   :  { %v157_v7 = vpop.permute.xlu1 %156  ;;  %v147_v8 = vpop.permute.xlu0 %146 }
  0x86   :  { %v462_v11 = vmul.f32 %v157_v7, %v14_v5  ;;  %v460_v12 = vmul.f32 %v147_v8, %v12_v6  ;;  %v32_v6 = vld [vmem:[%s1666_s0 + $0xa8] sm:$0xff]  ;;  %v31_v7 = vld [vmem:[%s1666_s0 + $0xa0] sm:$0xff] }
  0x88   :  { %v983_v15 = vpack.c.bf16 %v462_v11, %v461_v9  ;;  %v978_v16 = vpack.c.bf16 %v460_v12, %v459_v10 }
  0x89   :  { %v167_v17 = vpop.permute.xlu1 %166  ;;  %v162_v18 = vpop.permute.xlu0 %161 }
  0x8a   :  { %1135 = vst [vmem:[%s1667_s2 + $0x8] sm:$0xff] %v983_v15   ;;  %979 = vst [vmem:[%s1667_s2] sm:$0xff] %v978_v16   ;;  %v464_v19 = vmul.f32 %v167_v17, %v16_v13  ;;  %v463_v20 = vmul.f32 %v162_v18, %v15_v14  ;;  %v34_v13 = vld [vmem:[%s1666_s0 + $0xb8] sm:$0xff]  ;;  %v33_v14 = vld [vmem:[%s1666_s0 + $0xb0] sm:$0xff] }
  0x8c   :  { %v988_v23 = vpack.c.bf16 %v464_v19, %v463_v20  ;;  %v36_v20 = vld [vmem:[%s1666_s0 + $0xc8] sm:$0xff] }
  0x8d   :  { %v177_v24 = vpop.permute.xlu1 %176  ;;  %v172_v25 = vpop.permute.xlu0 %171 }
  0x8e   :  { %1136 = vst [vmem:[%s1667_s2 + $0x10] sm:$0xff] %v988_v23   ;;  %v466_v26 = vmul.f32 %v177_v24, %v18_v21  ;;  %v465_v27 = vmul.f32 %v172_v25, %v17_v22  ;;  %v35_v21 = vld [vmem:[%s1666_s0 + $0xc0] sm:$0xff] }
  0x90   :  { %v993_v30 = vpack.c.bf16 %v466_v26, %v465_v27  ;;  %v38_v27 = vld [vmem:[%s1666_s0 + $0xd8] sm:$0xff] }
  0x91   :  { %v187_v31 = vpop.permute.xlu1 %186  ;;  %v182_v32 = vpop.permute.xlu0 %181 }
  0x92   :  { %1137 = vst [vmem:[%s1667_s2 + $0x18] sm:$0xff] %v993_v30   ;;  %v468_v33 = vmul.f32 %v187_v31, %v20_v28  ;;  %v467_v34 = vmul.f32 %v182_v32, %v19_v29  ;;  %v37_v28 = vld [vmem:[%s1666_s0 + $0xd0] sm:$0xff] }
  0x94   :  { %v998_v37 = vpack.c.bf16 %v468_v33, %v467_v34  ;;  %v40_v34 = vld [vmem:[%s1666_s0 + $0xe8] sm:$0xff] }
  0x95   :  { %v197_v38 = vpop.permute.xlu1 %196  ;;  %v192_v39 = vpop.permute.xlu0 %191 }
  0x96   :  { %1138 = vst [vmem:[%s1667_s2 + $0x20] sm:$0xff] %v998_v37   ;;  %v470_v40 = vmul.f32 %v197_v38, %v22_v35  ;;  %v469_v41 = vmul.f32 %v192_v39, %v21_v36  ;;  %v39_v35 = vld [vmem:[%s1666_s0 + $0xe0] sm:$0xff] }
  0x98   :  { %v1003_v44 = vpack.c.bf16 %v470_v40, %v469_v41  ;;  %v42_v41 = vld [vmem:[%s1666_s0 + $0xf8] sm:$0xff] }
  0x99   :  { %v207_v45 = vpop.permute.xlu1 %206  ;;  %v202_v46 = vpop.permute.xlu0 %201 }
  0x9a   :  { %1139 = vst [vmem:[%s1667_s2 + $0x28] sm:$0xff] %v1003_v44   ;;  %v472_v47 = vmul.f32 %v207_v45, %v24_v42  ;;  %v471_v48 = vmul.f32 %v202_v46, %v23_v43  ;;  %v41_v42 = vld [vmem:[%s1666_s0 + $0xf0] sm:$0xff] }
  0x9c   :  { %v1008_v51 = vpack.c.bf16 %v472_v47, %v471_v48  ;;  %v44_v48 = vld [vmem:[%s1666_s0 + $0x108] sm:$0xff] }
  0x9d   :  { %v217_v52 = vpop.permute.xlu1 %216  ;;  %v212_v53 = vpop.permute.xlu0 %211 }
  0x9e   :  { %1140 = vst [vmem:[%s1667_s2 + $0x30] sm:$0xff] %v1008_v51   ;;  %v474_v54 = vmul.f32 %v217_v52, %v26_v49  ;;  %v473_v55 = vmul.f32 %v212_v53, %v25_v50  ;;  %v43_v49 = vld [vmem:[%s1666_s0 + $0x100] sm:$0xff] }
  0xa0   :  { %v1013_v58 = vpack.c.bf16 %v474_v54, %v473_v55  ;;  %v46_v55 = vld [vmem:[%s1666_s0 + $0x118] sm:$0xff] }
  0xa1   :  { %v227_v59 = vpop.permute.xlu1 %226  ;;  %v222_v60 = vpop.permute.xlu0 %221 }
  0xa2   :  { %1141 = vst [vmem:[%s1667_s2 + $0x38] sm:$0xff] %v1013_v58   ;;  %v476_v61 = vmul.f32 %v227_v59, %v28_v56  ;;  %v475_v62 = vmul.f32 %v222_v60, %v27_v57  ;;  %v45_v56 = vld [vmem:[%s1666_s0 + $0x110] sm:$0xff] }
  0xa4   :  { %v1018_v1 = vpack.c.bf16 %v476_v61, %v475_v62  ;;  %v48_v62 = vld [vmem:[%s1666_s0 + $0x128] sm:$0xff] }
  0xa5   :  { %v237_v2 = vpop.permute.xlu1 %236  ;;  %v232_v3 = vpop.permute.xlu0 %231 }
  0xa6   :  { %1142 = vst [vmem:[%s1667_s2 + $0x40] sm:$0xff] %v1018_v1   ;;  %v478_v4 = vmul.f32 %v237_v2, %v30_v63  ;;  %v477_v5 = vmul.f32 %v232_v3, %v29_v0  ;;  %v47_v63 = vld [vmem:[%s1666_s0 + $0x120] sm:$0xff] }
  0xa8   :  { %v1023_v8 = vpack.c.bf16 %v478_v4, %v477_v5  ;;  %v50_v5 = vld [vmem:[%s1666_s0 + $0x138] sm:$0xff] }
  0xa9   :  { %v247_v9 = vpop.permute.xlu1 %246  ;;  %v242_v10 = vpop.permute.xlu0 %241 }
  0xaa   :  { %1143 = vst [vmem:[%s1667_s2 + $0x48] sm:$0xff] %v1023_v8   ;;  %v480_v11 = vmul.f32 %v247_v9, %v32_v6  ;;  %v479_v12 = vmul.f32 %v242_v10, %v31_v7  ;;  %v49_v6 = vld [vmem:[%s1666_s0 + $0x130] sm:$0xff] }
  0xac   :  { %v1028_v15 = vpack.c.bf16 %v480_v11, %v479_v12  ;;  %v52_v12 = vld [vmem:[%s1666_s0 + $0x148] sm:$0xff] }
  0xad   :  { %v257_v16 = vpop.permute.xlu1 %256  ;;  %v252_v17 = vpop.permute.xlu0 %251 }
  0xae   :  { %1144 = vst [vmem:[%s1667_s2 + $0x50] sm:$0xff] %v1028_v15   ;;  %v482_v18 = vmul.f32 %v257_v16, %v34_v13  ;;  %v481_v19 = vmul.f32 %v252_v17, %v33_v14  ;;  %v51_v13 = vld [vmem:[%s1666_s0 + $0x140] sm:$0xff] }
  0xb0   :  { %v1033_v22 = vpack.c.bf16 %v482_v18, %v481_v19  ;;  %v54_v19 = vld [vmem:[%s1666_s0 + $0x158] sm:$0xff] }
  0xb1   :  { %v267_v23 = vpop.permute.xlu1 %266  ;;  %v262_v24 = vpop.permute.xlu0 %261 }
  0xb2   :  { %1145 = vst [vmem:[%s1667_s2 + $0x58] sm:$0xff] %v1033_v22   ;;  %v484_v25 = vmul.f32 %v267_v23, %v36_v20  ;;  %v483_v26 = vmul.f32 %v262_v24, %v35_v21  ;;  %v53_v20 = vld [vmem:[%s1666_s0 + $0x150] sm:$0xff] }
  0xb4   :  { %v1038_v29 = vpack.c.bf16 %v484_v25, %v483_v26  ;;  %v56_v26 = vld [vmem:[%s1666_s0 + $0x168] sm:$0xff] }
  0xb5   :  { %v277_v30 = vpop.permute.xlu1 %276  ;;  %v272_v31 = vpop.permute.xlu0 %271 }
  0xb6   :  { %1146 = vst [vmem:[%s1667_s2 + $0x60] sm:$0xff] %v1038_v29   ;;  %v486_v32 = vmul.f32 %v277_v30, %v38_v27  ;;  %v485_v33 = vmul.f32 %v272_v31, %v37_v28  ;;  %v55_v27 = vld [vmem:[%s1666_s0 + $0x160] sm:$0xff] }
  0xb8   :  { %v1043_v36 = vpack.c.bf16 %v486_v32, %v485_v33  ;;  %v58_v33 = vld [vmem:[%s1666_s0 + $0x178] sm:$0xff] }
  0xb9   :  { %v287_v37 = vpop.permute.xlu1 %286  ;;  %v282_v38 = vpop.permute.xlu0 %281 }
  0xba   :  { %1147 = vst [vmem:[%s1667_s2 + $0x68] sm:$0xff] %v1043_v36   ;;  %v488_v39 = vmul.f32 %v287_v37, %v40_v34  ;;  %v487_v40 = vmul.f32 %v282_v38, %v39_v35  ;;  %v57_v34 = vld [vmem:[%s1666_s0 + $0x170] sm:$0xff] }
  0xbc   :  { %v1048_v43 = vpack.c.bf16 %v488_v39, %v487_v40  ;;  %v60_v40 = vld [vmem:[%s1666_s0 + $0x188] sm:$0xff] }
  0xbd   :  { %v297_v44 = vpop.permute.xlu1 %296  ;;  %v292_v45 = vpop.permute.xlu0 %291 }
  0xbe   :  { %1148 = vst [vmem:[%s1667_s2 + $0x70] sm:$0xff] %v1048_v43   ;;  %v490_v46 = vmul.f32 %v297_v44, %v42_v41  ;;  %v489_v47 = vmul.f32 %v292_v45, %v41_v42  ;;  %v59_v41 = vld [vmem:[%s1666_s0 + $0x180] sm:$0xff] }
  0xc0   :  { %v1053_v50 = vpack.c.bf16 %v490_v46, %v489_v47  ;;  %v62_v47 = vld [vmem:[%s1666_s0 + $0x198] sm:$0xff] }
  0xc1   :  { %v307_v51 = vpop.permute.xlu1 %306  ;;  %v302_v52 = vpop.permute.xlu0 %301 }
  0xc2   :  { %1149 = vst [vmem:[%s1667_s2 + $0x78] sm:$0xff] %v1053_v50   ;;  %v492_v53 = vmul.f32 %v307_v51, %v44_v48  ;;  %v491_v54 = vmul.f32 %v302_v52, %v43_v49  ;;  %v61_v48 = vld [vmem:[%s1666_s0 + $0x190] sm:$0xff] }
  0xc4   :  { %v1058_v57 = vpack.c.bf16 %v492_v53, %v491_v54  ;;  %v64_v54 = vld [vmem:[%s1666_s0 + $0x1a8] sm:$0xff] }
  0xc5   :  { %v317_v58 = vpop.permute.xlu1 %316  ;;  %v312_v59 = vpop.permute.xlu0 %311 }
  0xc6   :  { %1150 = vst [vmem:[%s1667_s2 + $0x80] sm:$0xff] %v1058_v57   ;;  %v494_v60 = vmul.f32 %v317_v58, %v46_v55  ;;  %v493_v61 = vmul.f32 %v312_v59, %v45_v56  ;;  %v63_v55 = vld [vmem:[%s1666_s0 + $0x1a0] sm:$0xff] }
  0xc8   :  { %v1063_v0 = vpack.c.bf16 %v494_v60, %v493_v61  ;;  %v66_v61 = vld [vmem:[%s1666_s0 + $0x1b8] sm:$0xff] }
  0xc9   :  { %v327_v1 = vpop.permute.xlu1 %326  ;;  %v322_v2 = vpop.permute.xlu0 %321 }
  0xca   :  { %1151 = vst [vmem:[%s1667_s2 + $0x88] sm:$0xff] %v1063_v0   ;;  %v496_v3 = vmul.f32 %v327_v1, %v48_v62  ;;  %v495_v4 = vmul.f32 %v322_v2, %v47_v63  ;;  %v65_v62 = vld [vmem:[%s1666_s0 + $0x1b0] sm:$0xff] }
  0xcc   :  { %v1068_v7 = vpack.c.bf16 %v496_v3, %v495_v4  ;;  %v68_v4 = vld [vmem:[%s1666_s0 + $0x1c8] sm:$0xff] }
  0xcd   :  { %v337_v8 = vpop.permute.xlu1 %336  ;;  %v332_v9 = vpop.permute.xlu0 %331 }
  0xce   :  { %1152 = vst [vmem:[%s1667_s2 + $0x90] sm:$0xff] %v1068_v7   ;;  %v498_v10 = vmul.f32 %v337_v8, %v50_v5  ;;  %v497_v11 = vmul.f32 %v332_v9, %v49_v6  ;;  %v67_v5 = vld [vmem:[%s1666_s0 + $0x1c0] sm:$0xff] }
  0xd0   :  { %v1073_v14 = vpack.c.bf16 %v498_v10, %v497_v11  ;;  %v70_v11 = vld [vmem:[%s1666_s0 + $0x1d8] sm:$0xff] }
  0xd1   :  { %v347_v15 = vpop.permute.xlu1 %346  ;;  %v342_v16 = vpop.permute.xlu0 %341 }
  0xd2   :  { %1153 = vst [vmem:[%s1667_s2 + $0x98] sm:$0xff] %v1073_v14   ;;  %v500_v17 = vmul.f32 %v347_v15, %v52_v12  ;;  %v499_v18 = vmul.f32 %v342_v16, %v51_v13  ;;  %v69_v12 = vld [vmem:[%s1666_s0 + $0x1d0] sm:$0xff] }
  0xd4   :  { %v1078_v21 = vpack.c.bf16 %v500_v17, %v499_v18  ;;  %v72_v18 = vld [vmem:[%s1666_s0 + $0x1e8] sm:$0xff] }
  0xd5   :  { %v357_v22 = vpop.permute.xlu1 %356  ;;  %v352_v23 = vpop.permute.xlu0 %351 }
  0xd6   :  { %1154 = vst [vmem:[%s1667_s2 + $0xa0] sm:$0xff] %v1078_v21   ;;  %v502_v24 = vmul.f32 %v357_v22, %v54_v19  ;;  %v501_v25 = vmul.f32 %v352_v23, %v53_v20  ;;  %v71_v19 = vld [vmem:[%s1666_s0 + $0x1e0] sm:$0xff] }
  0xd8   :  { %v1083_v28 = vpack.c.bf16 %v502_v24, %v501_v25  ;;  %v74_v25 = vld [vmem:[%s1666_s0 + $0x1f8] sm:$0xff] }
  0xd9   :  { %v367_v29 = vpop.permute.xlu1 %366  ;;  %v362_v30 = vpop.permute.xlu0 %361 }
  0xda   :  { %1155 = vst [vmem:[%s1667_s2 + $0xa8] sm:$0xff] %v1083_v28   ;;  %v504_v31 = vmul.f32 %v367_v29, %v56_v26  ;;  %v503_v32 = vmul.f32 %v362_v30, %v55_v27  ;;  %v73_v26 = vld [vmem:[%s1666_s0 + $0x1f0] sm:$0xff] }
  0xdc   :  { %v1088_v35 = vpack.c.bf16 %v504_v31, %v503_v32 }
  0xdd   :  { %v377_v36 = vpop.permute.xlu1 %376  ;;  %v372_v37 = vpop.permute.xlu0 %371 }
  0xde   :  { %1156 = vst [vmem:[%s1667_s2 + $0xb0] sm:$0xff] %v1088_v35   ;;  %v506_v38 = vmul.f32 %v377_v36, %v58_v33  ;;  %v505_v39 = vmul.f32 %v372_v37, %v57_v34 }
  0xe0   :  { %v1093_v42 = vpack.c.bf16 %v506_v38, %v505_v39 }
  0xe1   :  { %v387_v43 = vpop.permute.xlu1 %386  ;;  %v382_v44 = vpop.permute.xlu0 %381 }
  0xe2   :  { %1157 = vst [vmem:[%s1667_s2 + $0xb8] sm:$0xff] %v1093_v42   ;;  %v508_v45 = vmul.f32 %v387_v43, %v60_v40  ;;  %v507_v46 = vmul.f32 %v382_v44, %v59_v41 }
  0xe4   :  { %v1098_v49 = vpack.c.bf16 %v508_v45, %v507_v46 }
  0xe5   :  { %v397_v50 = vpop.permute.xlu1 %396  ;;  %v392_v51 = vpop.permute.xlu0 %391 }
  0xe6   :  { %1158 = vst [vmem:[%s1667_s2 + $0xc0] sm:$0xff] %v1098_v49   ;;  %v510_v52 = vmul.f32 %v397_v50, %v62_v47  ;;  %v509_v53 = vmul.f32 %v392_v51, %v61_v48 }
  0xe8   :  { %v1103_v56 = vpack.c.bf16 %v510_v52, %v509_v53 }
  0xe9   :  { %v407_v57 = vpop.permute.xlu1 %406  ;;  %v402_v58 = vpop.permute.xlu0 %401 }
  0xea   :  { %1159 = vst [vmem:[%s1667_s2 + $0xc8] sm:$0xff] %v1103_v56   ;;  %v512_v59 = vmul.f32 %v407_v57, %v64_v54  ;;  %v511_v60 = vmul.f32 %v402_v58, %v63_v55 }
  0xec   :  { %v1108_v63 = vpack.c.bf16 %v512_v59, %v511_v60 }
  0xed   :  { %v417_v0 = vpop.permute.xlu1 %416  ;;  %v412_v1 = vpop.permute.xlu0 %411 }
  0xee   :  { %1160 = vst [vmem:[%s1667_s2 + $0xd0] sm:$0xff] %v1108_v63   ;;  %v514_v2 = vmul.f32 %v417_v0, %v66_v61  ;;  %v513_v3 = vmul.f32 %v412_v1, %v65_v62 }
  0xf0   :  { %v1113_v6 = vpack.c.bf16 %v514_v2, %v513_v3 }
  0xf1   :  { %v427_v7 = vpop.permute.xlu1 %426  ;;  %v422_v8 = vpop.permute.xlu0 %421 }
  0xf2   :  { %1161 = vst [vmem:[%s1667_s2 + $0xd8] sm:$0xff] %v1113_v6   ;;  %v516_v9 = vmul.f32 %v427_v7, %v68_v4  ;;  %v515_v10 = vmul.f32 %v422_v8, %v67_v5 }
  0xf4   :  { %v1118_v13 = vpack.c.bf16 %v516_v9, %v515_v10 }
  0xf5   :  { %v437_v14 = vpop.permute.xlu1 %436  ;;  %v432_v15 = vpop.permute.xlu0 %431 }
  0xf6   :  { %1162 = vst [vmem:[%s1667_s2 + $0xe0] sm:$0xff] %v1118_v13   ;;  %v518_v16 = vmul.f32 %v437_v14, %v70_v11  ;;  %v517_v17 = vmul.f32 %v432_v15, %v69_v12 }
  0xf8   :  { %v1123_v20 = vpack.c.bf16 %v518_v16, %v517_v17 }
  0xf9   :  { %v447_v21 = vpop.permute.xlu1 %446  ;;  %v442_v22 = vpop.permute.xlu0 %441 }
  0xfa   :  { %1163 = vst [vmem:[%s1667_s2 + $0xe8] sm:$0xff] %v1123_v20   ;;  %v520_v23 = vmul.f32 %v447_v21, %v72_v18  ;;  %v519_v24 = vmul.f32 %v442_v22, %v71_v19 }
  0xfc   :  { %v1128_v27 = vpack.c.bf16 %v520_v23, %v519_v24 }
  0xfd   :  { %v457_v28 = vpop.permute.xlu1 %456  ;;  %v452_v29 = vpop.permute.xlu0 %451 }
  0xfe   :  { %1164 = vst [vmem:[%s1667_s2 + $0xf0] sm:$0xff] %v1128_v27   ;;  %v522_v30 = vmul.f32 %v457_v28, %v74_v25  ;;  %v521_v31 = vmul.f32 %v452_v29, %v73_v26 }
 0x100   :  { %v1133_v32 = vpack.c.bf16 %v522_v30, %v521_v31 }
 0x102   :  { %1165 = vst [vmem:[%s1667_s2 + $0xf8] sm:$0xff] %v1133_v32  }

// kernel: a_call__.7
= control target key start
LH: loop header
LB: loop body
LE: loop exit
PB: predicated region body
PF: predicated region fallthrough
CT: control target
= control target key end

     0   :  { %v2289_v0 = vmov 0   ;;  %s2963_s4 = inlined_call_operand.vmem [shape: f32[512,1], index: 4, kind: input, shape index: {}]   ;;  %s2964_s5 = inlined_call_operand.vmem [shape: bf16[128,128], index: 5, kind: input, shape index: {}]   ;;  %s2965_s0 = inlined_call_operand.vmem [shape: bf16[512,128], index: 0, kind: input, shape index: {}]   ;;  %s2966_s1 = inlined_call_operand.vmem [shape: f32[1,128], index: 1, kind: input, shape index: {}]   ;;  %s2967_s2 = inlined_call_operand.vmem [shape: f32[1,128], index: 2, kind: input, shape index: {}]   ;;  %s2968_s3 = inlined_call_operand.vmem [shape: f32[1,128], index: 3, kind: input, shape index: {}]   ;;  %s2969_s6 = inlined_call_operand.vmem [shape: bf16[512,128], index: 6, kind: output, shape index: {}]  }
   0x1   :  { %2277 = vset.pattern.permute.xlu1 %v2289_v0  ;;  %2276 = vset.pattern.permute.xlu0 %v2289_v0  ;;  %v525_v1 = vld [vmem:[%s2963_s4 + $0x100] sm:$0xff]  ;;  %v526_v3 = vld [vmem:[%s2963_s4 + $0x108] sm:$0xff]  ;;  %v496_v5 = vld [vmem:[%s2963_s4 + $0x18] sm:$0xff] }
   0x2   :  { %v493_v2 = vld [vmem:[%s2963_s4] sm:$0xff]  ;;  %719 = vperm.xlu1 %2277, %v525_v1   ;;  %v494_v4 = vld [vmem:[%s2963_s4 + $0x8] sm:$0xff]  ;;  %v495_v6 = vld [vmem:[%s2963_s4 + $0x10] sm:$0xff] }
   0x3   :  { %559 = vperm.xlu0 %2276, %v493_v2   ;;  %v528_v7 = vld [vmem:[%s2963_s4 + $0x118] sm:$0xff]  ;;  %v527_v8 = vld [vmem:[%s2963_s4 + $0x110] sm:$0xff]  ;;  %v498_v9 = vld [vmem:[%s2963_s4 + $0x28] sm:$0xff] }
   0x4   :  { %v497_v10 = vld [vmem:[%s2963_s4 + $0x20] sm:$0xff]  ;;  %v530_v11 = vld [vmem:[%s2963_s4 + $0x128] sm:$0xff]  ;;  %v500_v15 = vld [vmem:[%s2963_s4 + $0x38] sm:$0xff] }
   0x5   :  { %v529_v12 = vld [vmem:[%s2963_s4 + $0x120] sm:$0xff]  ;;  %v2279_v14 = vld [vmem:[%s2964_s5 + $0x8] sm:$0xff]   ;;  %v499_v16 = vld [vmem:[%s2963_s4 + $0x30] sm:$0xff] }
   0x6   :  { %724 = vperm.xlu1 %2277, %v526_v3   ;;  %v2278_v13 = vld [vmem:[%s2964_s5] sm:$0xff]   ;;  %v2280_v17 = vld [vmem:[%s2964_s5 + $0x10] sm:$0xff]   ;;  %v532_v18 = vld [vmem:[%s2963_s4 + $0x138] sm:$0xff] }
   0x7   :  { %564 = vperm.xlu0 %2276, %v494_v4   ;;  %2179 = vmatprep.subr.bf16.mxu0 %v2278_v13  ;;  %v531_v19 = vld [vmem:[%s2963_s4 + $0x130] sm:$0xff]  ;;  %v2281_v20 = vld [vmem:[%s2964_s5 + $0x18] sm:$0xff]   ;;  %v502_v21 = vld [vmem:[%s2963_s4 + $0x48] sm:$0xff] }
   0x8   :  { %2259 = vmatprep.subr.bf16.mxu1 %v2278_v13  ;;  %2180 = vmatpush3.bf16.msra.mxu0 %v2278_v13  ;;  %v501_v22 = vld [vmem:[%s2963_s4 + $0x40] sm:$0xff]  ;;  %v534_v24 = vld [vmem:[%s2963_s4 + $0x148] sm:$0xff]  ;;  %v504_v27 = vld [vmem:[%s2963_s4 + $0x58] sm:$0xff] }
   0x9   :  { %2267 = vmatpush3.bf16.msra.mxu1 %v2278_v13  ;;  %2181 = vmatprep.subr.bf16.mxu0 %v2279_v14  ;;  %v2282_v23 = vld [vmem:[%s2964_s5 + $0x20] sm:$0xff]   ;;  %v2283_v26 = vld [vmem:[%s2964_s5 + $0x28] sm:$0xff]   ;;  %v503_v28 = vld [vmem:[%s2963_s4 + $0x50] sm:$0xff] }
   0xa   :  { %574 = vperm.xlu1 %2277, %v496_v5   ;;  %2260 = vmatprep.subr.bf16.mxu1 %v2279_v14  ;;  %v533_v25 = vld [vmem:[%s2963_s4 + $0x140] sm:$0xff]  ;;  %v2284_v29 = vld [vmem:[%s2964_s5 + $0x30] sm:$0xff]   ;;  %v536_v30 = vld [vmem:[%s2963_s4 + $0x158] sm:$0xff] }
   0xb   :  { %569 = vperm.xlu0 %2276, %v495_v6   ;;  %v535_v31 = vld [vmem:[%s2963_s4 + $0x150] sm:$0xff]  ;;  %v2285_v32 = vld [vmem:[%s2964_s5 + $0x38] sm:$0xff]   ;;  %v506_v33 = vld [vmem:[%s2963_s4 + $0x68] sm:$0xff] }
   0xc   :  { %2182 = vmatpush3.bf16.msra.mxu0 %v2279_v14  ;;  %v505_v34 = vld [vmem:[%s2963_s4 + $0x60] sm:$0xff]  ;;  %v538_v35 = vld [vmem:[%s2963_s4 + $0x168] sm:$0xff]  ;;  %v508_v37 = vld [vmem:[%s2963_s4 + $0x78] sm:$0xff] }
   0xd   :  { %2268 = vmatpush3.bf16.msra.mxu1 %v2279_v14  ;;  %2183 = vmatprep.subr.bf16.mxu0 %v2280_v17  ;;  %v537_v36 = vld [vmem:[%s2963_s4 + $0x160] sm:$0xff]  ;;  %v507_v38 = vld [vmem:[%s2963_s4 + $0x70] sm:$0xff]  ;;  %v540_v39 = vld [vmem:[%s2963_s4 + $0x178] sm:$0xff] }
   0xe   :  { %734 = vperm.xlu1 %2277, %v528_v7   ;;  %2261 = vmatprep.subr.bf16.mxu1 %v2280_v17  ;;  %v539_v40 = vld [vmem:[%s2963_s4 + $0x170] sm:$0xff]  ;;  %v510_v41 = vld [vmem:[%s2963_s4 + $0x88] sm:$0xff]  ;;  %v509_v42 = vld [vmem:[%s2963_s4 + $0x80] sm:$0xff] }
   0xf   :  { %729 = vperm.xlu0 %2276, %v527_v8   ;;  %v542_v43 = vld [vmem:[%s2963_s4 + $0x188] sm:$0xff]  ;;  %v541_v44 = vld [vmem:[%s2963_s4 + $0x180] sm:$0xff]  ;;  %v512_v45 = vld [vmem:[%s2963_s4 + $0x98] sm:$0xff] }
  0x10   :  { %2184 = vmatpush3.bf16.msra.mxu0 %v2280_v17  ;;  %v511_v46 = vld [vmem:[%s2963_s4 + $0x90] sm:$0xff]  ;;  %v544_v47 = vld [vmem:[%s2963_s4 + $0x198] sm:$0xff]  ;;  %v514_v49 = vld [vmem:[%s2963_s4 + $0xa8] sm:$0xff] }
  0x11   :  { %2269 = vmatpush3.bf16.msra.mxu1 %v2280_v17  ;;  %2185 = vmatprep.subr.bf16.mxu0 %v2281_v20  ;;  %v543_v48 = vld [vmem:[%s2963_s4 + $0x190] sm:$0xff]  ;;  %v513_v50 = vld [vmem:[%s2963_s4 + $0xa0] sm:$0xff]  ;;  %v546_v51 = vld [vmem:[%s2963_s4 + $0x1a8] sm:$0xff] }
  0x12   :  { %584 = vperm.xlu1 %2277, %v498_v9   ;;  %2262 = vmatprep.subr.bf16.mxu1 %v2281_v20  ;;  %v545_v52 = vld [vmem:[%s2963_s4 + $0x1a0] sm:$0xff]  ;;  %v516_v53 = vld [vmem:[%s2963_s4 + $0xb8] sm:$0xff]  ;;  %v515_v54 = vld [vmem:[%s2963_s4 + $0xb0] sm:$0xff] }
  0x13   :  { %579 = vperm.xlu0 %2276, %v497_v10   ;;  %v548_v55 = vld [vmem:[%s2963_s4 + $0x1b8] sm:$0xff]  ;;  %v547_v56 = vld [vmem:[%s2963_s4 + $0x1b0] sm:$0xff]  ;;  %v518_v57 = vld [vmem:[%s2963_s4 + $0xc8] sm:$0xff] }
  0x14   :  { %2186 = vmatpush3.bf16.msra.mxu0 %v2281_v20  ;;  %v517_v58 = vld [vmem:[%s2963_s4 + $0xc0] sm:$0xff]  ;;  %v550_v59 = vld [vmem:[%s2963_s4 + $0x1c8] sm:$0xff]  ;;  %v520_v61 = vld [vmem:[%s2963_s4 + $0xd8] sm:$0xff] }
  0x15   :  { %2270 = vmatpush3.bf16.msra.mxu1 %v2281_v20  ;;  %2187 = vmatprep.subr.bf16.mxu0 %v2282_v23  ;;  %v549_v60 = vld [vmem:[%s2963_s4 + $0x1c0] sm:$0xff]  ;;  %v519_v62 = vld [vmem:[%s2963_s4 + $0xd0] sm:$0xff]  ;;  %v552_v63 = vld [vmem:[%s2963_s4 + $0x1d8] sm:$0xff] }
  0x16   :  { %744 = vperm.xlu1 %2277, %v530_v11   ;;  %2263 = vmatprep.subr.bf16.mxu1 %v2282_v23  ;;  %v551_v0 = vld [vmem:[%s2963_s4 + $0x1d0] sm:$0xff]  ;;  %v2092_v1 = vld [vmem:[%s2965_s0 + $0x80] sm:$0xff]   ;;  %v522_v2 = vld [vmem:[%s2963_s4 + $0xe8] sm:$0xff] }
  0x17   :  { %739 = vperm.xlu0 %2276, %v529_v12   ;;  %v521_v3 = vld [vmem:[%s2963_s4 + $0xe0] sm:$0xff]  ;;  %v1855_v5 = vunpack.c.l.bf16 %v2092_v1  ;;  %v1856_v6 = vunpack.c.h.bf16 %v2092_v1  ;;  %v2077_v7 = vld [vmem:[%s2965_s0 + $0x8] sm:$0xff]   ;;  %v524_v20 = vld [vmem:[%s2963_s4 + $0xf8] sm:$0xff] }
  0x18   :  { %2188 = vmatpush3.bf16.msra.mxu0 %v2282_v23  ;;  %v1790_v4 = vld [vmem:[%s2965_s0] sm:$0xff]   ;;  %v554_v11 = vld [vmem:[%s2963_s4 + $0x1e8] sm:$0xff]  ;;  %v1796_v13 = vunpack.c.h.bf16 %v2077_v7 }
  0x19   :  { %2271 = vmatpush3.bf16.msra.mxu1 %v2282_v23  ;;  %2189 = vmatprep.subr.bf16.mxu0 %v2283_v26  ;;  %v2535_v8 = vld [vmem:[%s2966_s1] ss:$0 sm:$0xff]  ;;  %v1791_v9 = vunpack.c.l.bf16 %v1790_v4  ;;  %v1792_v10 = vunpack.c.h.bf16 %v1790_v4 }
  0x1a   :  { %594 = vperm.xlu1 %2277, %v500_v15   ;;  %2264 = vmatprep.subr.bf16.mxu1 %v2283_v26  ;;  %v553_v12 = vld [vmem:[%s2963_s4 + $0x1e0] sm:$0xff]  ;;  %v191_v14 = vmul.f32 %v1855_v5, %v2535_v8  ;;  %v192_v15 = vmul.f32 %v1856_v6, %v2535_v8  ;;  %v162_v23 = vmul.f32 %v1796_v13, %v2535_v8  ;;  %v2095_v5 = vld [vmem:[%s2965_s0 + $0x98] sm:$0xff]  }
  0x1b   :  { %589 = vperm.xlu0 %2276, %v499_v16   ;;  %v2093_v16 = vld [vmem:[%s2965_s0 + $0x88] sm:$0xff]   ;;  %v2551_v17 = vld [vmem:[%s2967_s2] ss:$0 sm:$0xff] }
  0x1c   :  { %2190 = vmatpush3.bf16.msra.mxu0 %v2283_v26 }
  0x1d   :  { %2272 = vmatpush3.bf16.msra.mxu1 %v2283_v26  ;;  %2191 = vmatprep.subr.bf16.mxu0 %v2284_v29  ;;  %v262_v26 = vadd.f32 %v2551_v17, %v191_v14 }
  0x1e   :  { %754 = vperm.xlu1 %2277, %v532_v18   ;;  %2265 = vmatprep.subr.bf16.mxu1 %v2284_v29  ;;  %v159_v18 = vmul.f32 %v1791_v9, %v2535_v8 }
  0x1f   :  { %749 = vperm.xlu0 %2276, %v531_v19   ;;  %v160_v19 = vmul.f32 %v1792_v10, %v2535_v8  ;;  %vm326_vm0 = vcmp.gt.f32.partialorder %v262_v26, 0.0 }
  0x20   :  { %2192 = vmatpush3.bf16.msra.mxu0 %v2284_v29 }
  0x21   :  { %2273 = vmatpush3.bf16.msra.mxu1 %v2284_v29  ;;  %2193 = vmatprep.subr.bf16.mxu0 %v2285_v32  ;;  %v2570_v29 = vld [vmem:[%s2968_s3] ss:$0 sm:$0xff] }
  0x22   :  { %604 = vperm.xlu1 %2277, %v502_v21   ;;  %2266 = vmatprep.subr.bf16.mxu1 %v2285_v32  ;;  %v523_v21 = vld [vmem:[%s2963_s4 + $0xf0] sm:$0xff] }
  0x23   :  { %599 = vperm.xlu0 %2276, %v501_v22   ;;  %v1795_v22 = vunpack.c.l.bf16 %v2077_v7 }
  0x24   :  { %2194 = vmatpush3.bf16.msra.mxu0 %v2285_v32 }
  0x25   :  { %2274 = vmatpush3.bf16.msra.mxu1 %v2285_v32  ;;  %v556_v32 = vld [vmem:[%s2963_s4 + $0x1f8] sm:$0xff] }
  0x26   :  { %764 = vperm.xlu1 %2277, %v534_v24   ;;  %v1860_v24 = vunpack.c.h.bf16 %v2093_v16 }
  0x27   :  { %759 = vperm.xlu0 %2276, %v533_v25   ;;  %v2078_v25 = vld [vmem:[%s2965_s0 + $0x10] sm:$0xff]  }
  0x2a   :  { %614 = vperm.xlu1 %2277, %v504_v27   ;;  %v263_v27 = vadd.f32 %v2551_v17, %v192_v15 }
  0x2b   :  { %609 = vperm.xlu0 %2276, %v503_v28   ;;  %v1859_v28 = vunpack.c.l.bf16 %v2093_v16 }
  0x2c   :  { %vm327_vm1 = vcmp.gt.f32.partialorder %v263_v27, 0.0 }
  0x2e   :  { %774 = vperm.xlu1 %2277, %v536_v30   ;;  %v230_v30 = vadd.f32 %v2551_v17, %v159_v18  ;;  %v1868_v18 = vunpack.c.h.bf16 %v2095_v5 }
  0x2f   :  { %769 = vperm.xlu0 %2276, %v535_v31   ;;  %v231_v31 = vadd.f32 %v2551_v17, %v160_v19 }
  0x30   :  { %vm294_vm2 = vcmp.gt.f32.partialorder %v230_v30, 0.0 }
  0x31   :  { %vm295_vm3 = vcmp.gt.f32.partialorder %v231_v31, 0.0 }
  0x32   :  { %624 = vperm.xlu1 %2277, %v506_v33   ;;  %v555_v33 = vld [vmem:[%s2963_s4 + $0x1f0] sm:$0xff] }
  0x33   :  { %619 = vperm.xlu0 %2276, %v505_v34   ;;  %v161_v34 = vmul.f32 %v1795_v22, %v2535_v8 }
  0x36   :  { %784 = vperm.xlu1 %2277, %v538_v35   ;;  %v1800_v35 = vunpack.c.h.bf16 %v2078_v25 }
  0x37   :  { %779 = vperm.xlu0 %2276, %v537_v36   ;;  %v233_v36 = vadd.f32 %v2551_v17, %v162_v23 }
  0x39   :  { %vm297_vm4 = vcmp.gt.f32.partialorder %v233_v36, 0.0 }
  0x3a   :  { %634 = vperm.xlu1 %2277, %v508_v37   ;;  %v194_v37 = vmul.f32 %v1860_v24, %v2535_v8 }
  0x3b   :  { %629 = vperm.xlu0 %2276, %v507_v38   ;;  %v397_v38 = vmul.f32 %v2570_v29, %v262_v26 }
  0x3e   :  { %794 = vperm.xlu1 %2277, %v540_v39   ;;  %v193_v39 = vmul.f32 %v1859_v28, %v2535_v8  ;;  %v2080_v28 = vld [vmem:[%s2965_s0 + $0x20] sm:$0xff]  }
  0x3f   :  { %789 = vperm.xlu0 %2276, %v539_v40   ;;  %v365_v40 = vmul.f32 %v2570_v29, %v230_v30 }
  0x42   :  { %644 = vperm.xlu1 %2277, %v510_v41   ;;  %v398_v41 = vmul.f32 %v2570_v29, %v263_v27 }
  0x43   :  { %639 = vperm.xlu0 %2276, %v509_v42   ;;  %v366_v42 = vmul.f32 %v2570_v29, %v231_v31 }
  0x46   :  { %804 = vperm.xlu1 %2277, %v542_v43   ;;  %v2094_v43 = vld [vmem:[%s2965_s0 + $0x90] sm:$0xff]  }
  0x47   :  { %799 = vperm.xlu0 %2276, %v541_v44   ;;  %v232_v44 = vadd.f32 %v2551_v17, %v161_v34 }
  0x49   :  { %vm296_vm5 = vcmp.gt.f32.partialorder %v232_v44, 0.0 }
  0x4a   :  { %654 = vperm.xlu1 %2277, %v512_v45   ;;  %v164_v45 = vmul.f32 %v1800_v35, %v2535_v8  ;;  %v198_v35 = vmul.f32 %v1868_v18, %v2535_v8 }
  0x4b   :  { %649 = vperm.xlu0 %2276, %v511_v46   ;;  %v1799_v46 = vunpack.c.l.bf16 %v2078_v25 }
  0x4e   :  { %814 = vperm.xlu1 %2277, %v544_v47   ;;  %v368_v47 = vmul.f32 %v2570_v29, %v233_v36 }
  0x4f   :  { %809 = vperm.xlu0 %2276, %v543_v48   ;;  %v265_v48 = vadd.f32 %v2551_v17, %v194_v37 }
  0x51   :  { %vm329_vm6 = vcmp.gt.f32.partialorder %v265_v48, 0.0 }
  0x52   :  { %664 = vperm.xlu1 %2277, %v514_v49  }
  0x53   :  { %659 = vperm.xlu0 %2276, %v513_v50  }
  0x56   :  { %824 = vperm.xlu1 %2277, %v546_v51   ;;  %v264_v51 = vadd.f32 %v2551_v17, %v193_v39 }
  0x57   :  { %819 = vperm.xlu0 %2276, %v545_v52   ;;  %v1864_v52 = vunpack.c.h.bf16 %v2094_v43 }
  0x58   :  { %vm328_vm7 = vcmp.gt.f32.partialorder %v264_v51, 0.0 }
  0x5a   :  { %674 = vperm.xlu1 %2277, %v516_v53   ;;  %v461_v53 = vsel %vm326_vm0, %v262_v26, %v397_v38 }
  0x5b   :  { %669 = vperm.xlu0 %2276, %v515_v54   ;;  %v429_v54 = vsel %vm294_vm2, %v230_v30, %v365_v40  ;;  %v1808_v40 = vunpack.c.h.bf16 %v2080_v28 }
  0x5e   :  { %834 = vperm.xlu1 %2277, %v548_v55   ;;  %v462_v55 = vsel %vm327_vm1, %v263_v27, %v398_v41  ;;  %v2096_v41 = vld [vmem:[%s2965_s0 + $0xa0] sm:$0xff]  }
  0x5f   :  { %829 = vperm.xlu0 %2276, %v547_v56   ;;  %v430_v56 = vsel %vm295_vm3, %v231_v31, %v366_v42 }
  0x62   :  { %684 = vperm.xlu1 %2277, %v518_v57   ;;  %v2079_v57 = vld [vmem:[%s2965_s0 + $0x18] sm:$0xff]  }
  0x63   :  { %679 = vperm.xlu0 %2276, %v517_v58   ;;  %v367_v58 = vmul.f32 %v2570_v29, %v232_v44  ;;  %v1804_v4 = vunpack.c.h.bf16 %v2079_v57  ;;  %v1803_v14 = vunpack.c.l.bf16 %v2079_v57 }
  0x65   :  { %v166_v24 = vmul.f32 %v1804_v4, %v2535_v8 }
  0x66   :  { %844 = vperm.xlu1 %2277, %v550_v59   ;;  %v235_v59 = vadd.f32 %v2551_v17, %v164_v45  ;;  %v1807_v45 = vunpack.c.l.bf16 %v2080_v28  ;;  %v2082_v28 = vld [vmem:[%s2965_s0 + $0x30] sm:$0xff]  }
  0x67   :  { %839 = vperm.xlu0 %2276, %v549_v60   ;;  %v163_v60 = vmul.f32 %v1799_v46, %v2535_v8  ;;  %v237_v39 = vadd.f32 %v2551_v17, %v166_v24 }
  0x68   :  { %v370_v22 = vmul.f32 %v2570_v29, %v235_v59  ;;  %vm299_vm8 = vcmp.gt.f32.partialorder %v235_v59, 0.0 }
  0x69   :  { %vm301_vm12 = vcmp.gt.f32.partialorder %v237_v39, 0.0 }
  0x6a   :  { %694 = vperm.xlu1 %2277, %v520_v61   ;;  %v1863_v61 = vunpack.c.l.bf16 %v2094_v43  ;;  %v434_v38 = vsel %vm299_vm8, %v235_v59, %v370_v22  ;;  %v167_v59 = vmul.f32 %v1807_v45, %v2535_v8 }
  0x6b   :  { %689 = vperm.xlu0 %2276, %v519_v62   ;;  %v432_v62 = vsel %vm297_vm4, %v233_v36, %v368_v47 }
  0x6c   :  { %v195_v13 = vmul.f32 %v1863_v61, %v2535_v8  ;;  %v2081_v61 = vld [vmem:[%s2965_s0 + $0x28] sm:$0xff]  }
  0x6e   :  { %854 = vperm.xlu1 %2277, %v552_v63   ;;  %v400_v63 = vmul.f32 %v2570_v29, %v265_v48  ;;  %v266_v31 = vadd.f32 %v2551_v17, %v195_v13 }
  0x6f   :  { %849 = vperm.xlu0 %2276, %v551_v0  }
  0x70   :  { %v401_v47 = vmul.f32 %v2570_v29, %v266_v31  ;;  %vm330_vm11 = vcmp.gt.f32.partialorder %v266_v31, 0.0 }
  0x72   :  { %704 = vperm.xlu1 %2277, %v522_v2   ;;  %v399_v2 = vmul.f32 %v2570_v29, %v264_v51 }
  0x73   :  { %699 = vperm.xlu0 %2276, %v521_v3   ;;  %v196_v3 = vmul.f32 %v1864_v52, %v2535_v8  ;;  %v1872_v52 = vunpack.c.h.bf16 %v2096_v41 }
  0x74   :  { %v463_v27 = vsel %vm328_vm7, %v264_v51, %v399_v2  ;;  %v269_v51 = vadd.f32 %v2551_v17, %v198_v35 }
  0x75   :  { %v267_v23 = vadd.f32 %v2551_v17, %v196_v3  ;;  %v200_v4 = vmul.f32 %v1872_v52, %v2535_v8  ;;  %v1815_v52 = vunpack.c.l.bf16 %v2082_v28 }
  0x76   :  { %864 = vperm.xlu1 %2277, %v554_v11   ;;  %v431_v11 = vsel %vm296_vm5, %v232_v44, %v367_v58  ;;  %v404_v3 = vmul.f32 %v2570_v29, %v269_v51  ;;  %vm333_vm14 = vcmp.gt.f32.partialorder %v269_v51, 0.0 }
  0x77   :  { %859 = vperm.xlu0 %2276, %v553_v12   ;;  %v234_v12 = vadd.f32 %v2551_v17, %v163_v60  ;;  %vm331_vm10 = vcmp.gt.f32.partialorder %v267_v23, 0.0  ;;  %v402_v44 = vmul.f32 %v2570_v29, %v267_v23  ;;  %v1871_v60 = vunpack.c.l.bf16 %v2096_v41 }
  0x78   :  { %v271_v22 = vadd.f32 %v2551_v17, %v200_v4 }
  0x79   :  { %v369_v30 = vmul.f32 %v2570_v29, %v234_v12  ;;  %vm298_vm9 = vcmp.gt.f32.partialorder %v234_v12, 0.0  ;;  %v199_v13 = vmul.f32 %v1871_v60, %v2535_v8 }
  0x7a   :  { %714 = vperm.xlu1 %2277, %v524_v20   ;;  %vm335_vm2 = vcmp.gt.f32.partialorder %v271_v22, 0.0 }
  0x7b   :  { %709 = vperm.xlu0 %2276, %v523_v21   ;;  %v464_v21 = vsel %vm329_vm6, %v265_v48, %v400_v63  ;;  %v433_v46 = vsel %vm298_vm9, %v234_v12, %v369_v30  ;;  %v465_v63 = vsel %vm330_vm11, %v266_v31, %v401_v47  ;;  %v238_v12 = vadd.f32 %v2551_v17, %v167_v59 }
  0x7d   :  { %vm302_vm1 = vcmp.gt.f32.partialorder %v238_v12, 0.0 }
  0x7e   :  { %874 = vperm.xlu1 %2277, %v556_v32   ;;  %v165_v32 = vmul.f32 %v1803_v14, %v2535_v8  ;;  %v2097_v14 = vld [vmem:[%s2965_s0 + $0xa8] sm:$0xff]  }
  0x7f   :  { %869 = vperm.xlu0 %2276, %v555_v33   ;;  %v1867_v33 = vunpack.c.l.bf16 %v2095_v5 }
  0x80   :  { %v236_v48 = vadd.f32 %v2551_v17, %v165_v32  ;;  %v373_v32 = vmul.f32 %v2570_v29, %v238_v12 }
  0x81   :  { %v720_v49 = vpop.permute.xlu1 %719 }
  0x82   :  { %v560_v50 = vpop.permute.xlu0 %559  ;;  %v909_v6 = vmul.f32 %v720_v49, %v461_v53  ;;  %v197_v49 = vmul.f32 %v1867_v33, %v2535_v8  ;;  %vm300_vm13 = vcmp.gt.f32.partialorder %v236_v48, 0.0  ;;  %v270_v33 = vadd.f32 %v2551_v17, %v199_v13 }
  0x83   :  { %v877_v7 = vmul.f32 %v560_v50, %v429_v54  ;;  %v437_v47 = vsel %vm302_vm1, %v238_v12, %v373_v32 }
  0x84   :  { %vm334_vm3 = vcmp.gt.f32.partialorder %v270_v33, 0.0 }
  0x85   :  { %v725_v0 = vpop.permute.xlu1 %724 }
  0x86   :  { %v565_v1 = vpop.permute.xlu0 %564  ;;  %v910_v9 = vmul.f32 %v725_v0, %v462_v55  ;;  %v372_v55 = vmul.f32 %v2570_v29, %v237_v39  ;;  %v371_v0 = vmul.f32 %v2570_v29, %v236_v48 }
  0x87   :  { %v878_v10 = vmul.f32 %v565_v1, %v430_v56  ;;  %v168_v56 = vmul.f32 %v1808_v40, %v2535_v8  ;;  %v268_v1 = vadd.f32 %v2551_v17, %v197_v49  ;;  %v2098_v49 = vld [vmem:[%s2965_s0 + $0xb0] sm:$0xff]  }
  0x88   :  { %v957_v16 = vpack.c.bf16 %v910_v9, %v909_v6  ;;  %v1812_v9 = vunpack.c.h.bf16 %v2081_v61  ;;  %v1880_v60 = vunpack.c.h.bf16 %v2098_v49  ;;  %v1879_v4 = vunpack.c.l.bf16 %v2098_v49 }
  0x89   :  { %v941_v15 = vpack.c.bf16 %v878_v10, %v877_v7  ;;  %v575_v19 = vpop.permute.xlu1 %574  ;;  %v239_v7 = vadd.f32 %v2551_v17, %v168_v56  ;;  %v403_v18 = vmul.f32 %v2570_v29, %v268_v1  ;;  %vm332_vm15 = vcmp.gt.f32.partialorder %v268_v1, 0.0 }
  0x8a   :  { %v570_v20 = vpop.permute.xlu0 %569  ;;  %v880_v25 = vmul.f32 %v575_v19, %v432_v62  ;;  %2227 = vmatprep.mubr.bf16.mxu1 %v957_v16  ;;  %v466_v62 = vsel %vm331_vm10, %v267_v23, %v402_v44  ;;  %v435_v16 = vsel %vm300_vm13, %v236_v48, %v371_v0  ;;  %v1811_v19 = vunpack.c.l.bf16 %v2081_v61  ;;  %v2083_v0 = vld [vmem:[%s2965_s0 + $0x38] sm:$0xff]  }
  0x8b   :  { %v879_v26 = vmul.f32 %v570_v20, %v431_v11  ;;  %2195 = vmatprep.mubr.bf16.mxu0 %v941_v15  ;;  %v436_v15 = vsel %vm301_vm12, %v237_v39, %v372_v55  ;;  %vm303_vm0 = vcmp.gt.f32.partialorder %v239_v7, 0.0  ;;  %v405_v48 = vmul.f32 %v2570_v29, %v270_v33 }
  0x8c   :  { %v169_v35 = vmul.f32 %v1811_v19, %v2535_v8  ;;  %v1820_v12 = vunpack.c.h.bf16 %v2083_v0 }
  0x8d   :  { %v942_v34 = vpack.c.bf16 %v880_v25, %v879_v26  ;;  %v735_v36 = vpop.permute.xlu1 %734  ;;  %v374_v25 = vmul.f32 %v2570_v29, %v239_v7  ;;  %v170_v26 = vmul.f32 %v1812_v9, %v2535_v8 }
  0x8e   :  { %v730_v37 = vpop.permute.xlu0 %729  ;;  %v912_v42 = vmul.f32 %v735_v36, %v464_v21  ;;  %v468_v21 = vsel %vm333_vm14, %v269_v51, %v404_v3  ;;  %v1875_v36 = vunpack.c.l.bf16 %v2097_v14  ;;  %v171_v3 = vmul.f32 %v1815_v52, %v2535_v8 }
  0x8f   :  { %v911_v43 = vmul.f32 %v730_v37, %v463_v27  ;;  %2196 = vmatmul.mubr.bf16.vlgmr.msra.gmra.mrb[0].mxu0 %v942_v34  ;;  %v1876_v27 = vunpack.c.h.bf16 %v2097_v14  ;;  %v467_v34 = vsel %vm332_vm15, %v268_v1, %v403_v18  ;;  %v438_v41 = vsel %vm303_vm0, %v239_v7, %v374_v25  ;;  %v2099_v18 = vld [vmem:[%s2965_s0 + $0xb8] sm:$0xff]  }
  0x90   :  { %v201_v51 = vmul.f32 %v1875_v36, %v2535_v8 }
  0x91   :  { %v958_v50 = vpack.c.bf16 %v912_v42, %v911_v43  ;;  %v585_v53 = vpop.permute.xlu1 %584  ;;  %v406_v42 = vmul.f32 %v2570_v29, %v271_v22  ;;  %v241_v43 = vadd.f32 %v2551_v17, %v170_v26  ;;  %v202_v44 = vmul.f32 %v1876_v27, %v2535_v8 }
  0x92   :  { %v580_v54 = vpop.permute.xlu0 %579  ;;  %v882_v57 = vmul.f32 %v585_v53, %v434_v38  ;;  %v1816_v38 = vunpack.c.h.bf16 %v2082_v28  ;;  %v174_v28 = vmul.f32 %v1820_v12, %v2535_v8 }
  0x93   :  { %v881_v58 = vmul.f32 %v580_v54, %v433_v46  ;;  %2228 = vmatmul.mubr.bf16.vlgmr.msra.gmra.mrb[0].mxu1 %v958_v50  ;;  %v240_v50 = vadd.f32 %v2551_v17, %v169_v35  ;;  %v273_v59 = vadd.f32 %v2551_v17, %v202_v44  ;;  %vm305_vm4 = vcmp.gt.f32.partialorder %v241_v43, 0.0 }
  0x94   :  { %v172_v54 = vmul.f32 %v1816_v38, %v2535_v8  ;;  %v1883_v38 = vunpack.c.l.bf16 %v2099_v18 }
  0x95   :  { %v943_v2 = vpack.c.bf16 %v882_v57, %v881_v58  ;;  %v745_v5 = vpop.permute.xlu1 %744  ;;  %v470_v57 = vsel %vm335_vm2, %v271_v22, %v406_v42  ;;  %v376_v58 = vmul.f32 %v2570_v29, %v241_v43  ;;  %v375_v1 = vmul.f32 %v2570_v29, %v240_v50 }
  0x96   :  { %v740_v6 = vpop.permute.xlu0 %739  ;;  %v914_v10 = vmul.f32 %v745_v5, %v466_v62  ;;  %vm304_vm5 = vcmp.gt.f32.partialorder %v240_v50, 0.0  ;;  %vm337_vm6 = vcmp.gt.f32.partialorder %v273_v59, 0.0  ;;  %v203_v22 = vmul.f32 %v1879_v4, %v2535_v8 }
  0x97   :  { %v913_v11 = vmul.f32 %v740_v6, %v465_v63  ;;  %2199 = vmatprep.mubr.bf16.mxu0 %v943_v2  ;;  %v469_v63 = vsel %vm334_vm3, %v270_v33, %v405_v48  ;;  %v272_v2 = vadd.f32 %v2551_v17, %v201_v51  ;;  %v243_v6 = vadd.f32 %v2551_v17, %v172_v54 }
  0x98   :  { %v439_v19 = vsel %vm304_vm5, %v240_v50, %v375_v1  ;;  %v205_v54 = vmul.f32 %v1883_v38, %v2535_v8  ;;  %v2086_v38 = vld [vmem:[%s2965_s0 + $0x50] sm:$0xff]  }
  0x99   :  { %v959_v20 = vpack.c.bf16 %v914_v10, %v913_v11  ;;  %v595_v23 = vpop.permute.xlu1 %594  ;;  %v440_v10 = vsel %vm305_vm4, %v241_v43, %v376_v58  ;;  %v204_v11 = vmul.f32 %v1880_v60, %v2535_v8  ;;  %vm336_vm7 = vcmp.gt.f32.partialorder %v272_v2, 0.0 }
  0x9a   :  { %v590_v24 = vpop.permute.xlu0 %589  ;;  %v884_v30 = vmul.f32 %v595_v23, %v436_v15  ;;  %v408_v15 = vmul.f32 %v2570_v29, %v273_v59  ;;  %vm307_vm8 = vcmp.gt.f32.partialorder %v243_v6, 0.0 }
  0x9b   :  { %v883_v31 = vmul.f32 %v590_v24, %v435_v16  ;;  %2231 = vmatprep.mubr.bf16.mxu1 %v959_v20  ;;  %v1819_v16 = vunpack.c.l.bf16 %v2083_v0  ;;  %v407_v20 = vmul.f32 %v2570_v29, %v272_v2  ;;  %v378_v24 = vmul.f32 %v2570_v29, %v243_v6 }
  0x9c   :  { %v275_v27 = vadd.f32 %v2551_v17, %v204_v11  ;;  %v472_v33 = vsel %vm337_vm6, %v273_v59, %v408_v15 }
  0x9d   :  { %v944_v37 = vpack.c.bf16 %v884_v30, %v883_v31  ;;  %v755_v39 = vpop.permute.xlu1 %754  ;;  %v1884_v30 = vunpack.c.h.bf16 %v2099_v18  ;;  %v471_v35 = vsel %vm336_vm7, %v272_v2, %v407_v20 }
  0x9e   :  { %v750_v40 = vpop.permute.xlu0 %749  ;;  %v916_v45 = vmul.f32 %v755_v39, %v468_v21  ;;  %v242_v21 = vadd.f32 %v2551_v17, %v171_v3  ;;  %v2084_v39 = vld [vmem:[%s2965_s0 + $0x40] sm:$0xff]   ;;  %vm339_vm10 = vcmp.gt.f32.partialorder %v275_v27, 0.0  ;;  %v410_v44 = vmul.f32 %v2570_v29, %v275_v27 }
  0x9f   :  { %v915_v46 = vmul.f32 %v750_v40, %v467_v34  ;;  %2200 = vmatmul.mubr.bf16.gmra.mrb[4].mxu0 %v944_v37  ;;  %v173_v34 = vmul.f32 %v1819_v16, %v2535_v8  ;;  %v274_v37 = vadd.f32 %v2551_v17, %v203_v22  ;;  %v1824_v51 = vunpack.c.h.bf16 %v2084_v39 }
  0xa0   :  { %v377_v36 = vmul.f32 %v2570_v29, %v242_v21  ;;  %vm306_vm9 = vcmp.gt.f32.partialorder %v242_v21, 0.0  ;;  %v474_v60 = vsel %vm339_vm10, %v275_v27, %v410_v44 }
  0xa1   :  { %v960_v53 = vpack.c.bf16 %v916_v45, %v915_v46  ;;  %v605_v55 = vpop.permute.xlu1 %604  ;;  %v245_v45 = vadd.f32 %v2551_v17, %v174_v28  ;;  %v206_v46 = vmul.f32 %v1884_v30, %v2535_v8  ;;  %v244_v50 = vadd.f32 %v2551_v17, %v173_v34 }
  0xa2   :  { %v600_v56 = vpop.permute.xlu0 %599  ;;  %v886_v61 = vmul.f32 %v605_v55, %v438_v41  ;;  %v442_v41 = vsel %vm307_vm8, %v243_v6, %v378_v24  ;;  %v441_v52 = vsel %vm306_vm9, %v242_v21, %v377_v36  ;;  %v1823_v55 = vunpack.c.l.bf16 %v2084_v39  ;;  %v2101_v21 = vld [vmem:[%s2965_s0 + $0xc8] sm:$0xff]  }
  0xa3   :  { %v885_v62 = vmul.f32 %v600_v56, %v437_v47  ;;  %2232 = vmatmul.mubr.bf16.gmra.mrb[4].mxu1 %v960_v53  ;;  %v2100_v47 = vld [vmem:[%s2965_s0 + $0xc0] sm:$0xff]   ;;  %v409_v53 = vmul.f32 %v2570_v29, %v274_v37  ;;  %vm338_vm11 = vcmp.gt.f32.partialorder %v274_v37, 0.0  ;;  %vm309_vm12 = vcmp.gt.f32.partialorder %v245_v45, 0.0 }
  0xa4   :  { %v379_v2 = vmul.f32 %v2570_v29, %v244_v50  ;;  %v176_v3 = vmul.f32 %v1824_v51, %v2535_v8  ;;  %v175_v6 = vmul.f32 %v1823_v55, %v2535_v8  ;;  %vm308_vm13 = vcmp.gt.f32.partialorder %v244_v50, 0.0 }
  0xa5   :  { %v945_v5 = vpack.c.bf16 %v886_v61, %v885_v62  ;;  %v765_v7 = vpop.permute.xlu1 %764  ;;  %v380_v61 = vmul.f32 %v2570_v29, %v245_v45  ;;  %v277_v62 = vadd.f32 %v2551_v17, %v206_v46  ;;  %v473_v4 = vsel %vm338_vm11, %v274_v37, %v409_v53 }
  0xa6   :  { %v760_v9 = vpop.permute.xlu0 %759  ;;  %v918_v13 = vmul.f32 %v765_v7, %v470_v57  ;;  %v1888_v57 = vunpack.c.h.bf16 %v2100_v47  ;;  %v1887_v7 = vunpack.c.l.bf16 %v2100_v47  ;;  %v247_v20 = vadd.f32 %v2551_v17, %v176_v3 }
  0xa7   :  { %v917_v14 = vmul.f32 %v760_v9, %v469_v63  ;;  %2203 = vmatprep.mubr.bf16.mxu0 %v945_v5  ;;  %v2085_v63 = vld [vmem:[%s2965_s0 + $0x48] sm:$0xff]   ;;  %v276_v5 = vadd.f32 %v2551_v17, %v205_v54  ;;  %vm341_vm14 = vcmp.gt.f32.partialorder %v277_v62, 0.0  ;;  %v443_v22 = vsel %vm308_vm13, %v244_v50, %v379_v2  ;;  %v2087_v2 = vld [vmem:[%s2965_s0 + $0x58] sm:$0xff]  }
  0xa8   :  { %v1828_v11 = vunpack.c.h.bf16 %v2085_v63  ;;  %v1827_v15 = vunpack.c.l.bf16 %v2085_v63  ;;  %v246_v24 = vadd.f32 %v2551_v17, %v175_v6  ;;  %v1892_v34 = vunpack.c.h.bf16 %v2101_v21 }
  0xa9   :  { %v961_v23 = vpack.c.bf16 %v918_v13, %v917_v14  ;;  %v615_v25 = vpop.permute.xlu1 %614  ;;  %v412_v14 = vmul.f32 %v2570_v29, %v277_v62  ;;  %vm340_vm15 = vcmp.gt.f32.partialorder %v276_v5, 0.0  ;;  %vm311_vm0 = vcmp.gt.f32.partialorder %v247_v20, 0.0 }
  0xaa   :  { %v610_v26 = vpop.permute.xlu0 %609  ;;  %v888_v31 = vmul.f32 %v615_v25, %v440_v10  ;;  %v208_v10 = vmul.f32 %v1888_v57, %v2535_v8  ;;  %v207_v25 = vmul.f32 %v1887_v7, %v2535_v8  ;;  %v178_v28 = vmul.f32 %v1828_v11, %v2535_v8 }
  0xab   :  { %v887_v32 = vmul.f32 %v610_v26, %v439_v19  ;;  %2235 = vmatprep.mubr.bf16.mxu1 %v961_v23  ;;  %v444_v19 = vsel %vm309_vm12, %v245_v45, %v380_v61  ;;  %v411_v23 = vmul.f32 %v2570_v29, %v276_v5  ;;  %v382_v37 = vmul.f32 %v2570_v29, %v247_v20 }
  0xac   :  { %v279_v27 = vadd.f32 %v2551_v17, %v208_v10  ;;  %vm310_vm1 = vcmp.gt.f32.partialorder %v246_v24, 0.0  ;;  %v249_v45 = vadd.f32 %v2551_v17, %v178_v28  ;;  %v210_v53 = vmul.f32 %v1892_v34, %v2535_v8 }
  0xad   :  { %v946_v40 = vpack.c.bf16 %v888_v31, %v887_v32  ;;  %v775_v42 = vpop.permute.xlu1 %774  ;;  %v476_v32 = vsel %vm341_vm14, %v277_v62, %v412_v14  ;;  %v475_v39 = vsel %vm340_vm15, %v276_v5, %v411_v23  ;;  %v1831_v57 = vunpack.c.l.bf16 %v2086_v38 }
  0xae   :  { %v770_v43 = vpop.permute.xlu0 %769  ;;  %v920_v48 = vmul.f32 %v775_v42, %v472_v33  ;;  %v177_v33 = vmul.f32 %v1827_v15, %v2535_v8  ;;  %v1891_v42 = vunpack.c.l.bf16 %v2101_v21  ;;  %v414_v44 = vmul.f32 %v2570_v29, %v279_v27 }
  0xaf   :  { %v919_v49 = vmul.f32 %v770_v43, %v471_v35  ;;  %2204 = vmatmul.mubr.bf16.gmra.mrb[8].mxu0 %v946_v40  ;;  %v381_v40 = vmul.f32 %v2570_v29, %v246_v24  ;;  %vm343_vm2 = vcmp.gt.f32.partialorder %v279_v27, 0.0  ;;  %vm313_vm4 = vcmp.gt.f32.partialorder %v249_v45, 0.0 }
  0xb0   :  { %v384_v63 = vmul.f32 %v2570_v29, %v249_v45  ;;  %v281_v5 = vadd.f32 %v2551_v17, %v210_v53  ;;  %v179_v10 = vmul.f32 %v1831_v57, %v2535_v8  ;;  %v1835_v14 = vunpack.c.l.bf16 %v2087_v2 }
  0xb1   :  { %v962_v56 = vpack.c.bf16 %v920_v48, %v919_v49  ;;  %v625_v58 = vpop.permute.xlu1 %624  ;;  %v248_v48 = vadd.f32 %v2551_v17, %v177_v33  ;;  %v1832_v49 = vunpack.c.h.bf16 %v2086_v38  ;;  %v445_v54 = vsel %vm310_vm1, %v246_v24, %v381_v40  ;;  %v2103_v24 = vld [vmem:[%s2965_s0 + $0xd8] sm:$0xff]  }
  0xb2   :  { %v620_v59 = vpop.permute.xlu0 %619  ;;  %v890_v0 = vmul.f32 %v625_v58, %v442_v41  ;;  %v278_v41 = vadd.f32 %v2551_v17, %v207_v25  ;;  %v2102_v58 = vld [vmem:[%s2965_s0 + $0xd0] sm:$0xff]   ;;  %vm345_vm6 = vcmp.gt.f32.partialorder %v281_v5, 0.0  ;;  %v416_v25 = vmul.f32 %v2570_v29, %v281_v5 }
  0xb3   :  { %v889_v1 = vmul.f32 %v620_v59, %v441_v52  ;;  %2236 = vmatmul.mubr.bf16.gmra.mrb[8].mxu1 %v962_v56  ;;  %v446_v52 = vsel %vm311_vm0, %v247_v20, %v382_v37  ;;  %v209_v56 = vmul.f32 %v1891_v42, %v2535_v8  ;;  %vm312_vm5 = vcmp.gt.f32.partialorder %v248_v48, 0.0 }
  0xb4   :  { %v413_v55 = vmul.f32 %v2570_v29, %v278_v41  ;;  %vm342_vm3 = vcmp.gt.f32.partialorder %v278_v41, 0.0  ;;  %v1896_v6 = vunpack.c.h.bf16 %v2102_v58  ;;  %v1895_v11 = vunpack.c.l.bf16 %v2102_v58 }
  0xb5   :  { %v947_v9 = vpack.c.bf16 %v890_v0, %v889_v1  ;;  %v785_v12 = vpop.permute.xlu1 %784  ;;  %v383_v0 = vmul.f32 %v2570_v29, %v248_v48  ;;  %v180_v1 = vmul.f32 %v1832_v49, %v2535_v8  ;;  %v1899_v40 = vunpack.c.l.bf16 %v2103_v24 }
  0xb6   :  { %v780_v13 = vpop.permute.xlu0 %779  ;;  %v922_v16 = vmul.f32 %v785_v12, %v474_v60  ;;  %v478_v60 = vsel %vm343_vm2, %v279_v27, %v414_v44  ;;  %v477_v7 = vsel %vm342_vm3, %v278_v41, %v413_v55  ;;  %v212_v23 = vmul.f32 %v1896_v6, %v2535_v8  ;;  %v2088_v41 = vld [vmem:[%s2965_s0 + $0x60] sm:$0xff]  }
  0xb7   :  { %v921_v18 = vmul.f32 %v780_v13, %v473_v4  ;;  %2207 = vmatprep.mubr.bf16.mxu0 %v947_v9  ;;  %v280_v9 = vadd.f32 %v2551_v17, %v209_v56  ;;  %v1836_v13 = vunpack.c.h.bf16 %v2087_v2  ;;  %v251_v20 = vadd.f32 %v2551_v17, %v180_v1 }
  0xb8   :  { %v250_v27 = vadd.f32 %v2551_v17, %v179_v10  ;;  %v211_v28 = vmul.f32 %v1895_v11, %v2535_v8  ;;  %v480_v42 = vsel %vm345_vm6, %v281_v5, %v416_v25  ;;  %v1840_v53 = vunpack.c.h.bf16 %v2088_v41  ;;  %v2089_v10 = vld [vmem:[%s2965_s0 + $0x68] sm:$0xff]  }
  0xb9   :  { %v963_v26 = vpack.c.bf16 %v922_v16, %v921_v18  ;;  %v635_v30 = vpop.permute.xlu1 %634  ;;  %v448_v18 = vsel %vm313_vm4, %v249_v45, %v384_v63  ;;  %vm344_vm7 = vcmp.gt.f32.partialorder %v280_v9, 0.0  ;;  %vm315_vm8 = vcmp.gt.f32.partialorder %v251_v20, 0.0 }
  0xba   :  { %v630_v31 = vpop.permute.xlu0 %629  ;;  %v892_v35 = vmul.f32 %v635_v30, %v444_v19  ;;  %v447_v19 = vsel %vm312_vm5, %v248_v48, %v383_v0  ;;  %v385_v44 = vmul.f32 %v2570_v29, %v250_v27  ;;  %v282_v45 = vadd.f32 %v2551_v17, %v211_v28  ;;  %v2104_v0 = vld [vmem:[%s2965_s0 + $0xe0] sm:$0xff]  }
  0xbb   :  { %v891_v36 = vmul.f32 %v630_v31, %v443_v22  ;;  %2239 = vmatprep.mubr.bf16.mxu1 %v963_v26  ;;  %v415_v26 = vmul.f32 %v2570_v29, %v280_v9  ;;  %v182_v31 = vmul.f32 %v1836_v13, %v2535_v8  ;;  %vm314_vm9 = vcmp.gt.f32.partialorder %v250_v27, 0.0 }
  0xbc   :  { %v213_v57 = vmul.f32 %v1899_v40, %v2535_v8  ;;  %v449_v58 = vsel %vm314_vm9, %v250_v27, %v385_v44  ;;  %vm346_vm11 = vcmp.gt.f32.partialorder %v282_v45, 0.0  ;;  %v1904_v13 = vunpack.c.h.bf16 %v2104_v0  ;;  %v2090_v44 = vld [vmem:[%s2965_s0 + $0x70] sm:$0xff]  }
  0xbd   :  { %v948_v43 = vpack.c.bf16 %v892_v35, %v891_v36  ;;  %v795_v46 = vpop.permute.xlu1 %794  ;;  %v386_v35 = vmul.f32 %v2570_v29, %v251_v20  ;;  %v1900_v36 = vunpack.c.h.bf16 %v2103_v24  ;;  %v2105_v24 = vld [vmem:[%s2965_s0 + $0xe8] sm:$0xff]  }
  0xbe   :  { %v790_v47 = vpop.permute.xlu0 %789  ;;  %v924_v50 = vmul.f32 %v795_v46, %v476_v32  ;;  %v181_v32 = vmul.f32 %v1835_v14, %v2535_v8  ;;  %v1903_v14 = vunpack.c.l.bf16 %v2104_v0  ;;  %v2106_v0 = vld [vmem:[%s2965_s0 + $0xf0] sm:$0xff]  }
  0xbf   :  { %v923_v51 = vmul.f32 %v790_v47, %v475_v39  ;;  %2208 = vmatmul.mubr.bf16.gmra.mrb[12].mxu0 %v948_v43  ;;  %v283_v39 = vadd.f32 %v2551_v17, %v212_v23  ;;  %v479_v43 = vsel %vm344_vm7, %v280_v9, %v415_v26  ;;  %v253_v47 = vadd.f32 %v2551_v17, %v182_v31 }
  0xc0   :  { %v252_v48 = vadd.f32 %v2551_v17, %v181_v32  ;;  %v284_v9 = vadd.f32 %v2551_v17, %v213_v57  ;;  %v1844_v23 = vunpack.c.h.bf16 %v2089_v10  ;;  %v215_v31 = vmul.f32 %v1903_v14, %v2535_v8 }
  0xc1   :  { %v964_v59 = vpack.c.bf16 %v924_v50, %v923_v51  ;;  %v645_v61 = vpop.permute.xlu1 %644  ;;  %v450_v51 = vsel %vm315_vm8, %v251_v20, %v386_v35  ;;  %v418_v56 = vmul.f32 %v2570_v29, %v283_v39  ;;  %vm347_vm10 = vcmp.gt.f32.partialorder %v283_v39, 0.0 }
  0xc2   :  { %v640_v62 = vpop.permute.xlu0 %639  ;;  %v894_v3 = vmul.f32 %v645_v61, %v446_v52  ;;  %v214_v52 = vmul.f32 %v1900_v36, %v2535_v8  ;;  %v387_v63 = vmul.f32 %v2570_v29, %v252_v48  ;;  %vm317_vm12 = vcmp.gt.f32.partialorder %v253_v47, 0.0 }
  0xc3   :  { %v893_v4 = vmul.f32 %v640_v62, %v445_v54  ;;  %2240 = vmatmul.mubr.bf16.gmra.mrb[12].mxu1 %v964_v59  ;;  %v417_v59 = vmul.f32 %v2570_v29, %v282_v45  ;;  %v388_v62 = vmul.f32 %v2570_v29, %v253_v47  ;;  %vm316_vm13 = vcmp.gt.f32.partialorder %v252_v48, 0.0 }
  0xc4   :  { %vm348_vm15 = vcmp.gt.f32.partialorder %v284_v9, 0.0  ;;  %v419_v27 = vmul.f32 %v2570_v29, %v284_v9  ;;  %v1843_v32 = vunpack.c.l.bf16 %v2089_v10 }
  0xc5   :  { %v949_v12 = vpack.c.bf16 %v894_v3, %v893_v4  ;;  %v805_v15 = vpop.permute.xlu1 %804  ;;  %v285_v3 = vadd.f32 %v2551_v17, %v214_v52  ;;  %v184_v4 = vmul.f32 %v1840_v53, %v2535_v8  ;;  %v481_v11 = vsel %vm346_vm11, %v282_v45, %v417_v59 }
  0xc6   :  { %v800_v16 = vpop.permute.xlu0 %799  ;;  %v926_v21 = vmul.f32 %v805_v15, %v478_v60  ;;  %v1839_v60 = vunpack.c.l.bf16 %v2088_v41 }
  0xc7   :  { %v925_v22 = vmul.f32 %v800_v16, %v477_v7  ;;  %2211 = vmatprep.mubr.bf16.mxu0 %v949_v12  ;;  %v482_v7 = vsel %vm347_vm10, %v283_v39, %v418_v56  ;;  %v452_v16 = vsel %vm317_vm12, %v253_v47, %v388_v62  ;;  %vm349_vm14 = vcmp.gt.f32.partialorder %v285_v3, 0.0 }
  0xc8   :  { %v183_v12 = vmul.f32 %v1839_v60, %v2535_v8  ;;  %v186_v39 = vmul.f32 %v1844_v23, %v2535_v8  ;;  %v286_v47 = vadd.f32 %v2551_v17, %v215_v31 }
  0xc9   :  { %v965_v30 = vpack.c.bf16 %v926_v21, %v925_v22  ;;  %v655_v33 = vpop.permute.xlu1 %654  ;;  %v420_v21 = vmul.f32 %v2570_v29, %v285_v3  ;;  %v255_v22 = vadd.f32 %v2551_v17, %v184_v4 }
  0xca   :  { %v650_v34 = vpop.permute.xlu0 %649  ;;  %v896_v37 = vmul.f32 %v655_v33, %v448_v18  ;;  %v451_v18 = vsel %vm316_vm13, %v252_v48, %v387_v63  ;;  %v254_v28 = vadd.f32 %v2551_v17, %v183_v12  ;;  %v185_v48 = vmul.f32 %v1843_v32, %v2535_v8 }
  0xcb   :  { %v895_v38 = vmul.f32 %v650_v34, %v447_v19  ;;  %2243 = vmatprep.mubr.bf16.mxu1 %v965_v30  ;;  %v216_v30 = vmul.f32 %v1904_v13, %v2535_v8  ;;  %v1908_v34 = vunpack.c.h.bf16 %v2105_v24  ;;  %vm319_vm0 = vcmp.gt.f32.partialorder %v255_v22, 0.0 }
  0xcc   :  { %v389_v45 = vmul.f32 %v2570_v29, %v254_v28  ;;  %vm318_vm1 = vcmp.gt.f32.partialorder %v254_v28, 0.0  ;;  %v257_v53 = vadd.f32 %v2551_v17, %v186_v39  ;;  %v421_v62 = vmul.f32 %v2570_v29, %v286_v47 }
  0xcd   :  { %v950_v46 = vpack.c.bf16 %v896_v37, %v895_v38  ;;  %v815_v49 = vpop.permute.xlu1 %814  ;;  %v484_v37 = vsel %vm349_vm14, %v285_v3, %v420_v21  ;;  %v390_v38 = vmul.f32 %v2570_v29, %v255_v22  ;;  %v256_v63 = vadd.f32 %v2551_v17, %v185_v48 }
  0xce   :  { %v810_v50 = vpop.permute.xlu0 %809  ;;  %v928_v54 = vmul.f32 %v815_v49, %v480_v42  ;;  %v483_v42 = vsel %vm348_vm15, %v284_v9, %v419_v27  ;;  %v453_v60 = vsel %vm318_vm1, %v254_v28, %v389_v45  ;;  %vm350_vm3 = vcmp.gt.f32.partialorder %v286_v47, 0.0  ;;  %v2091_v9 = vld [vmem:[%s2965_s0 + $0x78] sm:$0xff]  }
  0xcf   :  { %v927_v55 = vmul.f32 %v810_v50, %v479_v43  ;;  %2212 = vmatmul.mubr.bf16.gmra.mrb[16].mxu0 %v950_v46  ;;  %v1907_v43 = vunpack.c.l.bf16 %v2105_v24  ;;  %v287_v46 = vadd.f32 %v2551_v17, %v216_v30  ;;  %v218_v50 = vmul.f32 %v1908_v34, %v2535_v8 }
  0xd0   :  { %vm321_vm4 = vcmp.gt.f32.partialorder %v257_v53, 0.0  ;;  %v1912_v13 = vunpack.c.h.bf16 %v2106_v0  ;;  %vm320_vm5 = vcmp.gt.f32.partialorder %v256_v63, 0.0  ;;  %v1852_v21 = vunpack.c.h.bf16 %v2091_v9 }
  0xd1   :  { %v966_v61 = vpack.c.bf16 %v928_v54, %v927_v55  ;;  %v665_v1 = vpop.permute.xlu1 %664  ;;  %v1848_v54 = vunpack.c.h.bf16 %v2090_v44  ;;  %v1847_v55 = vunpack.c.l.bf16 %v2090_v44  ;;  %v217_v59 = vmul.f32 %v1907_v43, %v2535_v8 }
  0xd2   :  { %v660_v2 = vpop.permute.xlu0 %659  ;;  %v898_v5 = vmul.f32 %v665_v1, %v450_v51  ;;  %vm351_vm2 = vcmp.gt.f32.partialorder %v287_v46, 0.0  ;;  %v392_v8 = vmul.f32 %v2570_v29, %v257_v53  ;;  %v1851_v34 = vunpack.c.l.bf16 %v2091_v9 }
  0xd3   :  { %v897_v6 = vmul.f32 %v660_v2, %v449_v58  ;;  %2244 = vmatmul.mubr.bf16.gmra.mrb[16].mxu1 %v966_v61  ;;  %v454_v58 = vsel %vm319_vm0, %v255_v22, %v390_v38  ;;  %v422_v61 = vmul.f32 %v2570_v29, %v287_v46  ;;  %v289_v2 = vadd.f32 %v2551_v17, %v218_v50  ;;  %v2107_v38 = vld [vmem:[%s2965_s0 + $0xf8] sm:$0xff]  }
  0xd4   :  { %v288_v12 = vadd.f32 %v2551_v17, %v217_v59  ;;  %v456_v24 = vsel %vm321_vm4, %v257_v53, %v392_v8  ;;  %v2287_v17 = vld [vmem:[%s2967_s2] ss:$0 sm:$0xff]  ;;  %v1915_v50 = vunpack.c.l.bf16 %v2107_v38 }
  0xd5   :  { %v951_v15 = vpack.c.bf16 %v898_v5, %v897_v6  ;;  %v825_v19 = vpop.permute.xlu1 %824  ;;  %v2836_v5 = vld [vmem:[%s2966_s1] ss:$0 sm:$0xff]  ;;  %v486_v14 = vsel %vm351_vm2, %v287_v46, %v422_v61  ;;  %vm353_vm6 = vcmp.gt.f32.partialorder %v289_v2, 0.0 }
  0xd6   :  { %v820_v20 = vpop.permute.xlu0 %819  ;;  %v930_v25 = vmul.f32 %v825_v19, %v482_v7  ;;  %v188_v6 = vmul.f32 %v2836_v5, %v1848_v54  ;;  %v187_v7 = vmul.f32 %v2836_v5, %v1847_v55  ;;  %v423_v30 = vmul.f32 %v2570_v29, %v288_v12 }
  0xd7   :  { %v929_v26 = vmul.f32 %v820_v20, %v481_v11  ;;  %2215 = vmatprep.mubr.bf16.mxu0 %v951_v15  ;;  %v485_v15 = vsel %vm350_vm3, %v286_v47, %v421_v62  ;;  %v424_v20 = vmul.f32 %v2570_v29, %v289_v2  ;;  %v220_v31 = vmul.f32 %v2836_v5, %v1912_v13 }
  0xd8   :  { %vm352_vm7 = vcmp.gt.f32.partialorder %v288_v12, 0.0  ;;  %v189_v48 = vmul.f32 %v2836_v5, %v1851_v34 }
  0xd9   :  { %v967_v33 = vpack.c.bf16 %v930_v25, %v929_v26  ;;  %v675_v35 = vpop.permute.xlu1 %674  ;;  %v259_v25 = vadd.f32 %v2287_v17, %v188_v6  ;;  %v258_v26 = vadd.f32 %v2287_v17, %v187_v7  ;;  %v487_v45 = vsel %vm352_vm7, %v288_v12, %v423_v30 }
  0xda   :  { %v670_v36 = vpop.permute.xlu0 %669  ;;  %v900_v40 = vmul.f32 %v675_v35, %v452_v16  ;;  %v391_v16 = vmul.f32 %v2570_v29, %v256_v63  ;;  %v2288_v29 = vld [vmem:[%s2968_s3] ss:$0 sm:$0xff]  ;;  %v291_v46 = vadd.f32 %v2287_v17, %v220_v31  ;;  %v260_v61 = vadd.f32 %v2287_v17, %v189_v48 }
  0xdb   :  { %v899_v41 = vmul.f32 %v670_v36, %v451_v18  ;;  %2247 = vmatprep.mubr.bf16.mxu1 %v967_v33  ;;  %v1911_v18 = vunpack.c.l.bf16 %v2106_v0  ;;  %v488_v36 = vsel %vm353_vm6, %v289_v2, %v424_v20  ;;  %vm323_vm8 = vcmp.gt.f32.partialorder %v259_v25, 0.0 }
  0xdc   :  { %v455_v32 = vsel %vm320_vm5, %v256_v63, %v391_v16  ;;  %vm322_vm9 = vcmp.gt.f32.partialorder %v258_v26, 0.0  ;;  %vm355_vm10 = vcmp.gt.f32.partialorder %v291_v46, 0.0  ;;  %v426_v59 = vmul.f32 %v2288_v29, %v291_v46 }
  0xdd   :  { %v952_v49 = vpack.c.bf16 %v900_v40, %v899_v41  ;;  %v835_v51 = vpop.permute.xlu1 %834  ;;  %v219_v33 = vmul.f32 %v2836_v5, %v1911_v18  ;;  %v394_v41 = vmul.f32 %v2288_v29, %v259_v25  ;;  %v221_v63 = vmul.f32 %v2836_v5, %v1915_v50 }
  0xde   :  { %v830_v52 = vpop.permute.xlu0 %829  ;;  %v932_v56 = vmul.f32 %v835_v51, %v484_v37  ;;  %v190_v37 = vmul.f32 %v2836_v5, %v1852_v21  ;;  %v490_v8 = vsel %vm355_vm10, %v291_v46, %v426_v59  ;;  %v395_v9 = vmul.f32 %v2288_v29, %v260_v61 }
  0xdf   :  { %v931_v57 = vmul.f32 %v830_v52, %v483_v42  ;;  %2216 = vmatmul.mubr.bf16.gmra.mrb[20].mxu0 %v952_v49  ;;  %v393_v42 = vmul.f32 %v2288_v29, %v258_v26  ;;  %v290_v47 = vadd.f32 %v2287_v17, %v219_v33  ;;  %v1916_v49 = vunpack.c.h.bf16 %v2107_v38 }
  0xe0   :  { %v458_v54 = vsel %vm323_vm8, %v259_v25, %v394_v41  ;;  %vm324_vm13 = vcmp.gt.f32.partialorder %v260_v61, 0.0 }
  0xe1   :  { %v968_v1 = vpack.c.bf16 %v932_v56, %v931_v57  ;;  %v685_v3 = vpop.permute.xlu1 %684  ;;  %v457_v55 = vsel %vm322_vm9, %v258_v26, %v393_v42  ;;  %v261_v56 = vadd.f32 %v2287_v17, %v190_v37  ;;  %v222_v62 = vmul.f32 %v2836_v5, %v1916_v49 }
  0xe2   :  { %v680_v4 = vpop.permute.xlu0 %679  ;;  %v902_v10 = vmul.f32 %v685_v3, %v454_v58  ;;  %vm354_vm11 = vcmp.gt.f32.partialorder %v290_v47, 0.0  ;;  %v459_v18 = vsel %vm324_vm13, %v260_v61, %v395_v9 }
  0xe3   :  { %v901_v11 = vmul.f32 %v680_v4, %v453_v60  ;;  %2248 = vmatmul.mubr.bf16.gmra.mrb[20].mxu1 %v968_v1  ;;  %v425_v60 = vmul.f32 %v2288_v29, %v290_v47  ;;  %v396_v6 = vmul.f32 %v2288_v29, %v261_v56  ;;  %vm325_vm12 = vcmp.gt.f32.partialorder %v261_v56, 0.0 }
  0xe5   :  { %v953_v19 = vpack.c.bf16 %v902_v10, %v901_v11  ;;  %v845_v22 = vpop.permute.xlu1 %844  ;;  %v489_v7 = vsel %vm354_vm11, %v290_v47, %v425_v60  ;;  %v293_v10 = vadd.f32 %v2287_v17, %v222_v62  ;;  %v292_v11 = vadd.f32 %v2287_v17, %v221_v63 }
  0xe6   :  { %v840_v23 = vpop.permute.xlu0 %839  ;;  %v934_v27 = vmul.f32 %v845_v22, %v486_v14  ;;  %v460_v16 = vsel %vm325_vm12, %v261_v56, %v396_v6 }
  0xe7   :  { %v933_v28 = vmul.f32 %v840_v23, %v485_v15  ;;  %2219 = vmatprep.mubr.bf16.mxu0 %v953_v19  ;;  %v428_v19 = vmul.f32 %v2288_v29, %v293_v10  ;;  %v427_v20 = vmul.f32 %v2288_v29, %v292_v11  ;;  %vm357_vm14 = vcmp.gt.f32.partialorder %v293_v10, 0.0 }
  0xe8   :  { %vm356_vm15 = vcmp.gt.f32.partialorder %v292_v11, 0.0 }
  0xe9   :  { %v969_v35 = vpack.c.bf16 %v934_v27, %v933_v28  ;;  %v695_v39 = vpop.permute.xlu1 %694  ;;  %v492_v17 = vsel %vm357_vm14, %v293_v10, %v428_v19  ;;  %v491_v26 = vsel %vm356_vm15, %v292_v11, %v427_v20 }
  0xea   :  { %v690_v40 = vpop.permute.xlu0 %689  ;;  %v904_v43 = vmul.f32 %v695_v39, %v456_v24 }
  0xeb   :  { %v903_v44 = vmul.f32 %v690_v40, %v455_v32  ;;  %2251 = vmatprep.mubr.bf16.mxu1 %v969_v35 }
  0xed   :  { %v954_v51 = vpack.c.bf16 %v904_v43, %v903_v44  ;;  %v855_v52 = vpop.permute.xlu1 %854 }
  0xee   :  { %v850_v53 = vpop.permute.xlu0 %849  ;;  %v936_v57 = vmul.f32 %v855_v52, %v488_v36 }
  0xef   :  { %v935_v58 = vmul.f32 %v850_v53, %v487_v45  ;;  %2220 = vmatmul.mubr.bf16.gmra.mrb[24].mxu0 %v954_v51 }
  0xf1   :  { %v970_v0 = vpack.c.bf16 %v936_v57, %v935_v58  ;;  %v705_v1 = vpop.permute.xlu1 %704 }
  0xf2   :  { %v700_v2 = vpop.permute.xlu0 %699  ;;  %v906_v3 = vmul.f32 %v705_v1, %v458_v54 }
  0xf3   :  { %v905_v4 = vmul.f32 %v700_v2, %v457_v55  ;;  %2252 = vmatmul.mubr.bf16.gmra.mrb[24].mxu1 %v970_v0 }
  0xf5   :  { %v955_v12 = vpack.c.bf16 %v906_v3, %v905_v4  ;;  %v865_v13 = vpop.permute.xlu1 %864 }
  0xf6   :  { %v860_v14 = vpop.permute.xlu0 %859  ;;  %v938_v15 = vmul.f32 %v865_v13, %v490_v8 }
  0xf7   :  { %v937_v5 = vmul.f32 %v860_v14, %v489_v7  ;;  %2223 = vmatprep.mubr.bf16.mxu0 %v955_v12 }
  0xf9   :  { %v971_v21 = vpack.c.bf16 %v938_v15, %v937_v5  ;;  %v715_v22 = vpop.permute.xlu1 %714 }
  0xfa   :  { %v710_v23 = vpop.permute.xlu0 %709  ;;  %v908_v24 = vmul.f32 %v715_v22, %v460_v16 }
  0xfb   :  { %v907_v25 = vmul.f32 %v710_v23, %v459_v18  ;;  %2255 = vmatprep.mubr.bf16.mxu1 %v971_v21 }
  0xfd   :  { %v956_v27 = vpack.c.bf16 %v908_v24, %v907_v25  ;;  %v875_v28 = vpop.permute.xlu1 %874 }
  0xfe   :  { %v870_v30 = vpop.permute.xlu0 %869  ;;  %v940_v31 = vmul.f32 %v875_v28, %v492_v17 }
  0xff   :  { %v939_v32 = vmul.f32 %v870_v30, %v491_v26  ;;  %2224 = vmatmul.mubr.bf16.gmra.mrb[28].mxu0 %v956_v27 }
 0x101   :  { %v972_v33 = vpack.c.bf16 %v940_v31, %v939_v32 }
 0x103   :  { %2256 = vmatmul.mubr.bf16.gmra.mrb[28].mxu1 %v972_v33 }
 0x162   :  { %v2197_v34 = vpop.f32.mrb[0].mxu0 }
 0x163   :  { %v1071_v35 = vpop.f32.mrb[1].mxu0 }
 0x164   :  { %v2198_v36 = vpop.f32.mrb[2].mxu0 }
 0x165   :  { %v1925_v37 = vpack.c.bf16 %v2198_v36, %v2197_v34  ;;  %v1074_v38 = vpop.f32.mrb[3].mxu0 }
 0x166   :  { %v1920_v39 = vpack.c.bf16 %v1074_v38, %v1071_v35  ;;  %v2229_v40 = vpop.f32.mrb[0].mxu1 }
 0x167   :  { %2108 = vst [vmem:[%s2969_s6 + $0x8] sm:$0xff] %v1925_v37   ;;  %v1199_v29 = vpop.f32.mrb[1].mxu1 }
 0x168   :  { %1921 = vst [vmem:[%s2969_s6] sm:$0xff] %v1920_v39   ;;  %v2230_v41 = vpop.f32.mrb[2].mxu1 }
 0x169   :  { %v2005_v42 = vpack.c.bf16 %v2230_v41, %v2229_v40  ;;  %v1202_v43 = vpop.f32.mrb[3].mxu1 }
 0x16a   :  { %v2000_v44 = vpack.c.bf16 %v1202_v43, %v1199_v29 }
 0x16b   :  { %2124 = vst [vmem:[%s2969_s6 + $0x88] sm:$0xff] %v2005_v42  }
 0x16c   :  { %2123 = vst [vmem:[%s2969_s6 + $0x80] sm:$0xff] %v2000_v44  }
 0x172   :  { %v2201_v45 = vpop.f32.mrb[4].mxu0 }
 0x173   :  { %v1087_v46 = vpop.f32.mrb[5].mxu0 }
 0x174   :  { %v2202_v47 = vpop.f32.mrb[6].mxu0 }
 0x175   :  { %v1935_v48 = vpack.c.bf16 %v2202_v47, %v2201_v45  ;;  %v1090_v49 = vpop.f32.mrb[7].mxu0 }
 0x176   :  { %v1930_v50 = vpack.c.bf16 %v1090_v49, %v1087_v46  ;;  %v2233_v51 = vpop.f32.mrb[4].mxu1 }
 0x177   :  { %2110 = vst [vmem:[%s2969_s6 + $0x18] sm:$0xff] %v1935_v48   ;;  %v1215_v52 = vpop.f32.mrb[5].mxu1 }
 0x178   :  { %2109 = vst [vmem:[%s2969_s6 + $0x10] sm:$0xff] %v1930_v50   ;;  %v2234_v53 = vpop.f32.mrb[6].mxu1 }
 0x179   :  { %v2015_v54 = vpack.c.bf16 %v2234_v53, %v2233_v51  ;;  %v1218_v55 = vpop.f32.mrb[7].mxu1 }
 0x17a   :  { %v2010_v56 = vpack.c.bf16 %v1218_v55, %v1215_v52 }
 0x17b   :  { %2126 = vst [vmem:[%s2969_s6 + $0x98] sm:$0xff] %v2015_v54  }
 0x17c   :  { %2125 = vst [vmem:[%s2969_s6 + $0x90] sm:$0xff] %v2010_v56  }
 0x182   :  { %v2205_v57 = vpop.f32.mrb[8].mxu0 }
 0x183   :  { %v1103_v58 = vpop.f32.mrb[9].mxu0 }
 0x184   :  { %v2206_v59 = vpop.f32.mrb[10].mxu0 }
 0x185   :  { %v1945_v60 = vpack.c.bf16 %v2206_v59, %v2205_v57  ;;  %v1106_v61 = vpop.f32.mrb[11].mxu0 }
 0x186   :  { %v1940_v62 = vpack.c.bf16 %v1106_v61, %v1103_v58  ;;  %v2237_v63 = vpop.f32.mrb[8].mxu1 }
 0x187   :  { %2112 = vst [vmem:[%s2969_s6 + $0x28] sm:$0xff] %v1945_v60   ;;  %v1231_v0 = vpop.f32.mrb[9].mxu1 }
 0x188   :  { %2111 = vst [vmem:[%s2969_s6 + $0x20] sm:$0xff] %v1940_v62   ;;  %v2238_v1 = vpop.f32.mrb[10].mxu1 }
 0x189   :  { %v2025_v2 = vpack.c.bf16 %v2238_v1, %v2237_v63  ;;  %v1234_v3 = vpop.f32.mrb[11].mxu1 }
 0x18a   :  { %v2020_v4 = vpack.c.bf16 %v1234_v3, %v1231_v0 }
 0x18b   :  { %2128 = vst [vmem:[%s2969_s6 + $0xa8] sm:$0xff] %v2025_v2  }
 0x18c   :  { %2127 = vst [vmem:[%s2969_s6 + $0xa0] sm:$0xff] %v2020_v4  }
 0x192   :  { %v2209_v8 = vpop.f32.mrb[12].mxu0 }
 0x193   :  { %v1119_v6 = vpop.f32.mrb[13].mxu0 }
 0x194   :  { %v2210_v7 = vpop.f32.mrb[14].mxu0 }
 0x195   :  { %v1955_v9 = vpack.c.bf16 %v2210_v7, %v2209_v8  ;;  %v1122_v10 = vpop.f32.mrb[15].mxu0 }
 0x196   :  { %v1950_v11 = vpack.c.bf16 %v1122_v10, %v1119_v6  ;;  %v2241_v12 = vpop.f32.mrb[12].mxu1 }
 0x197   :  { %2114 = vst [vmem:[%s2969_s6 + $0x38] sm:$0xff] %v1955_v9   ;;  %v1247_v13 = vpop.f32.mrb[13].mxu1 }
 0x198   :  { %2113 = vst [vmem:[%s2969_s6 + $0x30] sm:$0xff] %v1950_v11   ;;  %v2242_v14 = vpop.f32.mrb[14].mxu1 }
 0x199   :  { %v2035_v15 = vpack.c.bf16 %v2242_v14, %v2241_v12  ;;  %v1250_v5 = vpop.f32.mrb[15].mxu1 }
 0x19a   :  { %v2030_v16 = vpack.c.bf16 %v1250_v5, %v1247_v13 }
 0x19b   :  { %2130 = vst [vmem:[%s2969_s6 + $0xb8] sm:$0xff] %v2035_v15  }
 0x19c   :  { %2129 = vst [vmem:[%s2969_s6 + $0xb0] sm:$0xff] %v2030_v16  }
 0x1a2   :  { %v2213_v18 = vpop.f32.mrb[16].mxu0 }
 0x1a3   :  { %v1135_v19 = vpop.f32.mrb[17].mxu0 }
 0x1a4   :  { %v2214_v20 = vpop.f32.mrb[18].mxu0 }
 0x1a5   :  { %v1965_v21 = vpack.c.bf16 %v2214_v20, %v2213_v18  ;;  %v1138_v22 = vpop.f32.mrb[19].mxu0 }
 0x1a6   :  { %v1960_v23 = vpack.c.bf16 %v1138_v22, %v1135_v19  ;;  %v2245_v24 = vpop.f32.mrb[16].mxu1 }
 0x1a7   :  { %2116 = vst [vmem:[%s2969_s6 + $0x48] sm:$0xff] %v1965_v21   ;;  %v1263_v25 = vpop.f32.mrb[17].mxu1 }
 0x1a8   :  { %2115 = vst [vmem:[%s2969_s6 + $0x40] sm:$0xff] %v1960_v23   ;;  %v2246_v17 = vpop.f32.mrb[18].mxu1 }
 0x1a9   :  { %v2045_v26 = vpack.c.bf16 %v2246_v17, %v2245_v24  ;;  %v1266_v27 = vpop.f32.mrb[19].mxu1 }
 0x1aa   :  { %v2040_v28 = vpack.c.bf16 %v1266_v27, %v1263_v25 }
 0x1ab   :  { %2132 = vst [vmem:[%s2969_s6 + $0xc8] sm:$0xff] %v2045_v26  }
 0x1ac   :  { %2131 = vst [vmem:[%s2969_s6 + $0xc0] sm:$0xff] %v2040_v28  }
 0x1b2   :  { %v2217_v30 = vpop.f32.mrb[20].mxu0 }
 0x1b3   :  { %v1151_v31 = vpop.f32.mrb[21].mxu0 }
 0x1b4   :  { %v2218_v32 = vpop.f32.mrb[22].mxu0 }
 0x1b5   :  { %v1975_v33 = vpack.c.bf16 %v2218_v32, %v2217_v30  ;;  %v1154_v34 = vpop.f32.mrb[23].mxu0 }
 0x1b6   :  { %v1970_v35 = vpack.c.bf16 %v1154_v34, %v1151_v31  ;;  %v2249_v36 = vpop.f32.mrb[20].mxu1 }
 0x1b7   :  { %2118 = vst [vmem:[%s2969_s6 + $0x58] sm:$0xff] %v1975_v33   ;;  %v1279_v37 = vpop.f32.mrb[21].mxu1 }
 0x1b8   :  { %2117 = vst [vmem:[%s2969_s6 + $0x50] sm:$0xff] %v1970_v35   ;;  %v2250_v38 = vpop.f32.mrb[22].mxu1 }
 0x1b9   :  { %v2055_v39 = vpack.c.bf16 %v2250_v38, %v2249_v36  ;;  %v1282_v40 = vpop.f32.mrb[23].mxu1 }
 0x1ba   :  { %v2050_v29 = vpack.c.bf16 %v1282_v40, %v1279_v37 }
 0x1bb   :  { %2134 = vst [vmem:[%s2969_s6 + $0xd8] sm:$0xff] %v2055_v39  }
 0x1bc   :  { %2133 = vst [vmem:[%s2969_s6 + $0xd0] sm:$0xff] %v2050_v29  }
 0x1c2   :  { %v2221_v41 = vpop.f32.mrb[24].mxu0 }
 0x1c3   :  { %v1167_v42 = vpop.f32.mrb[25].mxu0 }
 0x1c4   :  { %v2222_v43 = vpop.f32.mrb[26].mxu0 }
 0x1c5   :  { %v1985_v44 = vpack.c.bf16 %v2222_v43, %v2221_v41  ;;  %v1170_v45 = vpop.f32.mrb[27].mxu0 }
 0x1c6   :  { %v1980_v46 = vpack.c.bf16 %v1170_v45, %v1167_v42  ;;  %v2253_v47 = vpop.f32.mrb[24].mxu1 }
 0x1c7   :  { %2120 = vst [vmem:[%s2969_s6 + $0x68] sm:$0xff] %v1985_v44   ;;  %v1295_v48 = vpop.f32.mrb[25].mxu1 }
 0x1c8   :  { %2119 = vst [vmem:[%s2969_s6 + $0x60] sm:$0xff] %v1980_v46   ;;  %v2254_v49 = vpop.f32.mrb[26].mxu1 }
 0x1c9   :  { %v2065_v50 = vpack.c.bf16 %v2254_v49, %v2253_v47  ;;  %v1298_v51 = vpop.f32.mrb[27].mxu1 }
 0x1ca   :  { %v2060_v52 = vpack.c.bf16 %v1298_v51, %v1295_v48 }
 0x1cb   :  { %2136 = vst [vmem:[%s2969_s6 + $0xe8] sm:$0xff] %v2065_v50  }
 0x1cc   :  { %2135 = vst [vmem:[%s2969_s6 + $0xe0] sm:$0xff] %v2060_v52  }
 0x1d2   :  { %v2225_v53 = vpop.f32.mrb[28].mxu0 }
 0x1d3   :  { %v1183_v54 = vpop.f32.mrb[29].mxu0 }
 0x1d4   :  { %v2226_v55 = vpop.f32.mrb[30].mxu0 }
 0x1d5   :  { %v1995_v56 = vpack.c.bf16 %v2226_v55, %v2225_v53  ;;  %v1186_v57 = vpop.f32.mrb[31].mxu0 }
 0x1d6   :  { %v1990_v58 = vpack.c.bf16 %v1186_v57, %v1183_v54  ;;  %v2257_v59 = vpop.f32.mrb[28].mxu1 }
 0x1d7   :  { %2122 = vst [vmem:[%s2969_s6 + $0x78] sm:$0xff] %v1995_v56   ;;  %v1311_v60 = vpop.f32.mrb[29].mxu1 }
 0x1d8   :  { %2121 = vst [vmem:[%s2969_s6 + $0x70] sm:$0xff] %v1990_v58   ;;  %v2258_v61 = vpop.f32.mrb[30].mxu1 }
 0x1d9   :  { %v2075_v62 = vpack.c.bf16 %v2258_v61, %v2257_v59  ;;  %v1314_v63 = vpop.f32.mrb[31].mxu1 }
 0x1da   :  { %v2070_v0 = vpack.c.bf16 %v1314_v63, %v1311_v60 }
 0x1db   :  { %2138 = vst [vmem:[%s2969_s6 + $0xf8] sm:$0xff] %v2075_v62  }
 0x1dc   :  { %2137 = vst [vmem:[%s2969_s6 + $0xf0] sm:$0xff] %v2070_v0  }

// kernel: a_call__.6
= control target key start
LH: loop header
LB: loop body
LE: loop exit
PB: predicated region body
PF: predicated region fallthrough
CT: control target
= control target key end

     0   :  { %s2981_s24 = smov 0   ;;  %s2983_s25 = smov 0   ;;  %s3449_s0 = inlined_call_operand.vmem [shape: s8[512,512], index: 0, kind: input, shape index: {}]   ;;  %s3450_s1 = inlined_call_operand.vmem [shape: bf16[512,128], index: 1, kind: input, shape index: {}]   ;;  %s3451_s2 = inlined_call_operand.vmem [shape: f32[512,1], index: 2, kind: input, shape index: {}]   ;;  %s3452_s3 = inlined_call_operand.vmem [shape: bf16[128,128], index: 3, kind: input, shape index: {}]   ;;  %s3453_s4 = inlined_call_operand.vmem [shape: f32[1,128], index: 4, kind: input, shape index: {}]   ;;  %s3454_s5 = inlined_call_operand.vmem [shape: bf16[512,128], index: 5, kind: output, shape index: {0}]   ;;  %s3455_s6 = inlined_call_operand.vmem [shape: f32[16,128], index: 6, kind: output, shape index: {1}]   ;;  %s3456_s7 = inlined_call_operand.vmem [shape: f32[16,128], index: 7, kind: output, shape index: {2}]  }
   0x1   :  { %s2985_s26 = smov 0  }
   0x2 LB: > { %s30_s27 = sadd.s32 1, %s2933_s25  ;;  %p2289_p0 = scmp.ge.s32.totalorder %s2937_s26, 1  ;;  %s2937_s26 = sphi %s2985_s26, %s18_s26   ;;  %s2933_s25 = sphi %s2983_s25, %s3458_s25   ;;  %s2929_s24 = sphi %s2981_s24, %s3457_s24  }
   0x3   : > { %p32_p1 = scmp.ge.s32.totalorder %s30_s27, 2  ;;  %p274_p2 = scmp.lt.s32.totalorder %s2937_s26, 3 }
   0x5   : > { %s3460_s27 = smov (%p32_p1, %s30_s27), 0  ;;  %p275_p3 = pnand %p2289_p0, %p274_p2 }
   0x6   : > { %v2875_v0 = vld [vmem:[%s3450_s1 + $0x40] sm:$0xff] (!%p275_p3)   ;;  %s2290_s30 = sshll.u32 (!%p275_p3), %s2929_s24, 3  ;;  %v2877_v2 = vld [vmem:[%s3450_s1 + $0x48] sm:$0xff] (!%p275_p3)   ;;  %v2879_v4 = vld [vmem:[%s3450_s1 + $0x50] sm:$0xff] (!%p275_p3)   ;;  %v2939_v15 = vmov (!%p275_p3), 0   ;;  %s2293_s21 = sshll.u32 (!%p275_p3), %s2929_s24, 5 }
   0x7   : > { %278 = sbr.rel (%p275_p3) target bundleno = 654 (0x28e), region = 40  ;;  %v2876_v1 = vld [vmem:[%s3450_s1] sm:$0xff] (!%p275_p3)   ;;  %2831 = vmatprep.subr.bf16.mxu1 (!%p275_p3), %v2875_v0  ;;  %p326_p4 = scmp.lt.s32.totalorder (!%p275_p3), %s2290_s30, 15  ;;  %2535 = vmatprep.subr.bf16.mxu0 (!%p275_p3), %v2875_v0  ;;  %v2878_v3 = vld [vmem:[%s3450_s1 + $0x8] sm:$0xff] (!%p275_p3)   ;;  %v2880_v5 = vld [vmem:[%s3450_s1 + $0x10] sm:$0xff] (!%p275_p3)  }
   0x8   : > { %2839 = vmatpush3.bf16.msra.mxu1 (!%p275_p3), %v2876_v1  ;;  %2536 = vmatpush3.bf16.msra.mxu0 (!%p275_p3), %v2876_v1  ;;  %v2881_v6 = vld [vmem:[%s3450_s1 + $0x58] sm:$0xff] (!%p275_p3)   ;;  %v2883_v8 = vld [vmem:[%s3450_s1 + $0x60] sm:$0xff] (!%p275_p3)   ;;  %v2885_v10 = vld [vmem:[%s3450_s1 + $0x68] sm:$0xff] (!%p275_p3)   ;;  %p337_p5 = scmp.lt.s32.totalorder (!%p275_p3), %s2293_s21, 63  ;;  %p348_p6 = scmp.lt.s32.totalorder (!%p275_p3), %s2929_s24, 1 }
   0x9   : > { %2832 = vmatprep.subr.bf16.mxu1 (!%p275_p3), %v2877_v2  ;;  %2537 = vmatprep.subr.bf16.mxu0 (!%p275_p3), %v2877_v2  ;;  %v2882_v7 = vld [vmem:[%s3450_s1 + $0x18] sm:$0xff] (!%p275_p3)   ;;  %v2884_v9 = vld [vmem:[%s3450_s1 + $0x20] sm:$0xff] (!%p275_p3)   ;;  %v2886_v13 = vld [vmem:[%s3450_s1 + $0x28] sm:$0xff] (!%p275_p3)  }
   0xa   : > { %v2887_v14 = vld [vmem:[%s3450_s1 + $0x70] sm:$0xff] (!%p275_p3)   ;;  %2873 = vset.pattern.permute.xlu0 (!%p275_p3), %v2939_v15  ;;  %2874 = vset.pattern.permute.xlu1 (!%p275_p3), %v2939_v15  ;;  %v2889_v17 = vld [vmem:[%s3450_s1 + $0x78] sm:$0xff] (!%p275_p3)   ;;  %v2891_v20 = vld [vmem:[%s3450_s1 + $0xc0] sm:$0xff] (!%p275_p3)  }
   0xb   : > { %v2888_v16 = vld [vmem:[%s3450_s1 + $0x30] sm:$0xff] (!%p275_p3)   ;;  %v2890_v18 = vld [vmem:[%s3450_s1 + $0x38] sm:$0xff] (!%p275_p3)   ;;  %v2892_v23 = vld [vmem:[%s3450_s1 + $0x80] sm:$0xff] (!%p275_p3)  }
   0xc   : > { %2840 = vmatpush3.bf16.msra.mxu1 (!%p275_p3), %v2878_v3  ;;  %2538 = vmatpush3.bf16.msra.mxu0 (!%p275_p3), %v2878_v3  ;;  %v2893_v24 = vld [vmem:[%s3450_s1 + $0xc8] sm:$0xff] (!%p275_p3)   ;;  %v2895_v31 = vld [vmem:[%s3450_s1 + $0xd0] sm:$0xff] (!%p275_p3)   ;;  %v2897_v37 = vld [vmem:[%s3450_s1 + $0xd8] sm:$0xff] (!%p275_p3)  }
   0xd   : > { %2833 = vmatprep.subr.bf16.mxu1 (!%p275_p3), %v2879_v4  ;;  %2539 = vmatprep.subr.bf16.mxu0 (!%p275_p3), %v2879_v4  ;;  %v2894_v29 = vld [vmem:[%s3450_s1 + $0x88] sm:$0xff] (!%p275_p3)   ;;  %v2896_v34 = vld [vmem:[%s3450_s1 + $0x90] sm:$0xff] (!%p275_p3)   ;;  %v2898_v42 = vld [vmem:[%s3450_s1 + $0x98] sm:$0xff] (!%p275_p3)  }
   0xe   : > { %s3462_s30 = smov (!%p326_p4, %s2290_s30), 15  ;;  %s3464_s21 = smov (!%p337_p5, %s2293_s21), 63  ;;  %v2899_v45 = vld [vmem:[%s3450_s1 + $0xe0] sm:$0xff]   ;;  %v2901_v49 = vld [vmem:[%s3450_s1 + $0xe8] sm:$0xff]   ;;  %v2903_v56 = vld [vmem:[%s3450_s1 + $0xf0] sm:$0xff]  }
   0xf   : > { %s2407_s20 = sshll.u32 %s3462_s30, 5  ;;  %s2294_s14 = sshll.u32 %s3464_s21, 3  ;;  %v2900_v46 = vld [vmem:[%s3450_s1 + $0xa0] sm:$0xff]   ;;  %v2902_v55 = vld [vmem:[%s3450_s1 + $0xa8] sm:$0xff]   ;;  %v2904_v62 = vld [vmem:[%s3450_s1 + $0xb0] sm:$0xff]  }
  0x10   : > { %2841 = vmatpush3.bf16.msra.mxu1 %v2880_v5  ;;  %2540 = vmatpush3.bf16.msra.mxu0 %v2880_v5  ;;  %s3032_s9 = scalar_lea.vmem %s3449_s0, %s2407_s20  ;;  %s3082_s19 = scalar_lea.vmem %s3451_s2, %s2294_s14  ;;  %v2905_v2 = vld [vmem:[%s3450_s1 + $0xf8] sm:$0xff]  }
  0x11   : > { %2834 = vmatprep.subr.bf16.mxu1 %v2881_v6  ;;  %2541 = vmatprep.subr.bf16.mxu0 %v2881_v6  ;;  %v418_v11 = vld [vmem:[%s3032_s9 + $0xc8] sm:$0xff]  ;;  %v417_v19 = vld [vmem:[%s3032_s9 + $0xc0] sm:$0xff]  ;;  %v1205_v41 = vld [vmem:[%s3082_s19 + $0x10] sm:$0xff]  ;;  %s2296_s30 = sshll.u32 %s3464_s21, 2 }
  0x12   : > { %v474_v12 = vunpack.c.l.s8.bf16 %v418_v11  ;;  %v473_v21 = vunpack.c.l.s8.bf16 %v417_v19  ;;  %v478_v22 = vunpack.c.h.s8.bf16 %v418_v11  ;;  %v394_v25 = vld [vmem:[%s3032_s9 + $0x8] sm:$0xff]  ;;  %v393_v28 = vld [vmem:[%s3032_s9] sm:$0xff]  ;;  %v477_v33 = vunpack.c.h.s8.bf16 %v417_v19  ;;  %1247 = vperm.xlu1 %2874, %v1205_v41   ;;  %v1206_v47 = vld [vmem:[%s3082_s19 + $0x18] sm:$0xff]  ;;  %s3301_s12 = scalar_lea.vmem %s3454_s5, %s2296_s30 }
  0x13   : > { %v426_v26 = vunpack.c.l.s8.bf16 %v394_v25  ;;  %v430_v27 = vunpack.c.h.s8.bf16 %v394_v25  ;;  %v425_v30 = vunpack.c.l.s8.bf16 %v393_v28  ;;  %v422_v32 = vld [vmem:[%s3032_s9 + $0xe8] sm:$0xff]  ;;  %v429_v38 = vunpack.c.h.s8.bf16 %v393_v28  ;;  %v1203_v39 = vld [vmem:[%s3082_s19] sm:$0xff]  ;;  %v396_v57 = vld [vmem:[%s3032_s9 + $0x18] sm:$0xff] }
  0x14   : > { %2842 = vmatpush3.bf16.msra.mxu1 %v2882_v7  ;;  %2542 = vmatpush3.bf16.msra.mxu0 %v2882_v7  ;;  %v482_v35 = vunpack.c.l.s8.bf16 %v422_v32  ;;  %v398_v36 = vld [vmem:[%s3032_s9 + $0x28] sm:$0xff]  ;;  %v421_v43 = vld [vmem:[%s3032_s9 + $0xe0] sm:$0xff]  ;;  %v486_v52 = vunpack.c.h.s8.bf16 %v422_v32  ;;  %v1209_v59 = vld [vmem:[%s3082_s19 + $0x30] sm:$0xff]  ;;  %v428_v63 = vunpack.c.l.s8.bf16 %v396_v57 }
  0x15   : > { %2835 = vmatprep.subr.bf16.mxu1 %v2883_v8  ;;  %2543 = vmatprep.subr.bf16.mxu0 %v2883_v8  ;;  %v434_v40 = vunpack.c.l.s8.bf16 %v398_v36  ;;  %v1204_v44 = vld [vmem:[%s3082_s19 + $0x8] sm:$0xff]  ;;  %v481_v48 = vunpack.c.l.s8.bf16 %v421_v43  ;;  %v397_v50 = vld [vmem:[%s3032_s9 + $0x20] sm:$0xff]  ;;  %v438_v58 = vunpack.c.h.s8.bf16 %v398_v36  ;;  %v1210_v60 = vld [vmem:[%s3082_s19 + $0x38] sm:$0xff]  ;;  %v485_v61 = vunpack.c.h.s8.bf16 %v421_v43 }
  0x16   : > { %910 = vmatprep.mubr.bf16.mxu1 %v474_v12  ;;  %814 = vmatprep.mubr.bf16.mxu0 %v426_v26  ;;  %v1207_v51 = vld [vmem:[%s3082_s19 + $0x20] sm:$0xff]  ;;  %v1208_v53 = vld [vmem:[%s3082_s19 + $0x28] sm:$0xff]  ;;  %v433_v54 = vunpack.c.l.s8.bf16 %v397_v50  ;;  %v437_v3 = vunpack.c.h.s8.bf16 %v397_v50  ;;  %v2906_v6 = vld [vmem:[%s3450_s1 + $0xb8] sm:$0xff]   ;;  %v432_v12 = vunpack.c.h.s8.bf16 %v396_v57 }
  0x17   : > { %1237 = vperm.xlu0 %2873, %v1203_v39   ;;  %1252 = vperm.xlu1 %2874, %v1206_v47   ;;  %v402_v0 = vld [vmem:[%s3032_s9 + $0x48] sm:$0xff]  ;;  %v1211_v1 = vld [vmem:[%s3082_s19 + $0x40] sm:$0xff]  ;;  %v395_v7 = vld [vmem:[%s3032_s9 + $0x10] sm:$0xff] }
  0x18   : > { %2843 = vmatpush3.bf16.msra.mxu1 %v2884_v9  ;;  %2544 = vmatpush3.bf16.msra.mxu0 %v2884_v9  ;;  %v1212_v4 = vld [vmem:[%s3082_s19 + $0x48] sm:$0xff]  ;;  %v442_v5 = vunpack.c.l.s8.bf16 %v402_v0  ;;  %v1213_v8 = vld [vmem:[%s3082_s19 + $0x50] sm:$0xff]  ;;  %v1214_v9 = vld [vmem:[%s3082_s19 + $0x58] sm:$0xff] }
  0x19   : > { %2836 = vmatprep.subr.bf16.mxu1 %v2885_v10  ;;  %2545 = vmatprep.subr.bf16.mxu0 %v2885_v10  ;;  %v427_v10 = vunpack.c.l.s8.bf16 %v395_v7  ;;  %v401_v11 = vld [vmem:[%s3032_s9 + $0x40] sm:$0xff]  ;;  %v1216_v15 = vld [vmem:[%s3082_s19 + $0x68] sm:$0xff]  ;;  %v1218_v19 = vld [vmem:[%s3082_s19 + $0x78] sm:$0xff] }
  0x1a   : > { %v1220_v25 = vld [vmem:[%s3082_s19 + $0x88] sm:$0xff]  ;;  %v1221_v28 = vld [vmem:[%s3082_s19 + $0x90] sm:$0xff]  ;;  %v1226_v39 = vld [vmem:[%s3082_s19 + $0xb8] sm:$0xff] }
  0x1b   : > { %1242 = vperm.xlu0 %2873, %v1204_v44   ;;  %1262 = vperm.xlu1 %2874, %v1208_v53   ;;  %v1227_v43 = vld [vmem:[%s3082_s19 + $0xc0] sm:$0xff]  ;;  %v403_v47 = vld [vmem:[%s3032_s9 + $0x50] sm:$0xff] }
  0x1c   : > { %2844 = vmatpush3.bf16.msra.mxu1 %v2886_v13  ;;  %2546 = vmatpush3.bf16.msra.mxu0 %v2886_v13  ;;  %v1215_v13 = vld [vmem:[%s3082_s19 + $0x60] sm:$0xff]  ;;  %v443_v50 = vunpack.c.l.s8.bf16 %v403_v47  ;;  %v1233_v57 = vld [vmem:[%s3082_s19 + $0xf0] sm:$0xff] }
  0x1d   : > { %2837 = vmatprep.subr.bf16.mxu1 %v2887_v14  ;;  %2547 = vmatprep.subr.bf16.mxu0 %v2887_v14  ;;  %v441_v14 = vunpack.c.l.s8.bf16 %v401_v11  ;;  %v1231_v53 = vld [vmem:[%s3082_s19 + $0xe0] sm:$0xff] }
  0x1f   : > { %1257 = vperm.xlu0 %2873, %v1207_v51   ;;  %1272 = vperm.xlu1 %2874, %v1210_v60   ;;  %v409_v51 = vld [vmem:[%s3032_s9 + $0x80] sm:$0xff]  ;;  %v447_v60 = vunpack.c.h.s8.bf16 %v403_v47 }
  0x20   : > { %2845 = vmatpush3.bf16.msra.mxu1 %v2888_v16  ;;  %2548 = vmatpush3.bf16.msra.mxu0 %v2888_v16  ;;  %v446_v16 = vunpack.c.h.s8.bf16 %v402_v0 }
  0x21   : > { %2838 = vmatprep.subr.bf16.mxu1 %v2889_v17  ;;  %2549 = vmatprep.subr.bf16.mxu0 %v2889_v17  ;;  %v1217_v17 = vld [vmem:[%s3082_s19 + $0x70] sm:$0xff] }
  0x23   : > { %1267 = vperm.xlu0 %2873, %v1209_v59   ;;  %1282 = vperm.xlu1 %2874, %v1212_v4   ;;  %v1234_v59 = vld [vmem:[%s3082_s19 + $0xf8] sm:$0xff] }
  0x24   : > { %2846 = vmatpush3.bf16.msra.mxu1 %v2890_v18  ;;  %2550 = vmatpush3.bf16.msra.mxu0 %v2890_v18  ;;  %v400_v18 = vld [vmem:[%s3032_s9 + $0x38] sm:$0xff] }
  0x25   : > { %2647 = vmatprep.subr.bf16.mxu1 %v2891_v20  ;;  %v431_v20 = vunpack.c.h.s8.bf16 %v395_v7  ;;  %v440_v32 = vunpack.c.h.s8.bf16 %v400_v18  ;;  %v412_v7 = vld [vmem:[%s3032_s9 + $0x98] sm:$0xff] }
  0x27   : > { %911 = vmatmul.mubr.bf16.vlgmr.msra.gmra.mrb[0].mxu1 %v473_v21  ;;  %815 = vmatmul.mubr.bf16.vlgmr.msra.gmra.mrb[0].mxu0 %v425_v30  ;;  %v436_v21 = vunpack.c.l.s8.bf16 %v400_v18  ;;  %v415_v18 = vld [vmem:[%s3032_s9 + $0xb0] sm:$0xff] }
  0x28   : > { %2648 = vmatpush3.bf16.msra.mxu1 %v2892_v23  ;;  %918 = vmatprep.mubr.bf16.mxu1 %v478_v22  ;;  %v406_v22 = vld [vmem:[%s3032_s9 + $0x68] sm:$0xff]  ;;  %v1219_v23 = vld [vmem:[%s3082_s19 + $0x80] sm:$0xff] }
  0x29   : > { %2649 = vmatprep.subr.bf16.mxu1 %v2893_v24  ;;  %822 = vmatprep.mubr.bf16.mxu0 %v430_v27  ;;  %v445_v24 = vunpack.c.h.s8.bf16 %v401_v11  ;;  %v450_v26 = vunpack.c.l.s8.bf16 %v406_v22  ;;  %v399_v27 = vld [vmem:[%s3032_s9 + $0x30] sm:$0xff]  ;;  %v454_v36 = vunpack.c.h.s8.bf16 %v406_v22 }
  0x2a   : > { %1277 = vperm.xlu0 %2873, %v1211_v1   ;;  %1292 = vperm.xlu1 %2874, %v1214_v9   ;;  %v435_v30 = vunpack.c.l.s8.bf16 %v399_v27  ;;  %v407_v1 = vld [vmem:[%s3032_s9 + $0x70] sm:$0xff]  ;;  %v460_v9 = vunpack.c.l.s8.bf16 %v412_v7 }
  0x2b   : > { %v411_v11 = vld [vmem:[%s3032_s9 + $0x90] sm:$0xff] }
  0x2c   : > { %2650 = vmatpush3.bf16.msra.mxu1 %v2894_v29  ;;  %v1222_v29 = vld [vmem:[%s3082_s19 + $0x98] sm:$0xff]  ;;  %v2909_v22 = vld [vmem:[%s3452_s3 + $0x10] sm:$0xff]  }
  0x2d   : > { %2651 = vmatprep.subr.bf16.mxu1 %v2895_v31  ;;  %v405_v31 = vld [vmem:[%s3032_s9 + $0x60] sm:$0xff] }
  0x2e   : > { %1287 = vperm.xlu0 %2873, %v1213_v8   ;;  %1302 = vperm.xlu1 %2874, %v1216_v15   ;;  %v453_v44 = vunpack.c.h.s8.bf16 %v405_v31  ;;  %v455_v8 = vunpack.c.h.s8.bf16 %v407_v1  ;;  %v416_v15 = vld [vmem:[%s3032_s9 + $0xb8] sm:$0xff] }
  0x2f   : > { %919 = vmatmul.mubr.bf16.gmra.mrb[4].mxu1 %v477_v33  ;;  %823 = vmatmul.mubr.bf16.gmra.mrb[4].mxu0 %v429_v38  ;;  %v1223_v33 = vld [vmem:[%s3082_s19 + $0xa0] sm:$0xff]  ;;  %v404_v38 = vld [vmem:[%s3032_s9 + $0x58] sm:$0xff] }
  0x30   : > { %2652 = vmatpush3.bf16.msra.mxu1 %v2896_v34  ;;  %926 = vmatprep.mubr.bf16.mxu1 %v482_v35  ;;  %v449_v34 = vunpack.c.l.s8.bf16 %v405_v31  ;;  %v1224_v35 = vld [vmem:[%s3082_s19 + $0xa8] sm:$0xff]  ;;  %v444_v41 = vunpack.c.l.s8.bf16 %v404_v38 }
  0x31   : > { %2653 = vmatprep.subr.bf16.mxu1 %v2897_v37  ;;  %830 = vmatprep.mubr.bf16.mxu0 %v434_v40  ;;  %v1225_v37 = vld [vmem:[%s3082_s19 + $0xb0] sm:$0xff]  ;;  %v439_v40 = vunpack.c.h.s8.bf16 %v399_v27  ;;  %v2911_v27 = vld [vmem:[%s3452_s3 + $0x20] sm:$0xff]  }
  0x32   : > { %1297 = vperm.xlu0 %2873, %v1215_v13   ;;  %1312 = vperm.xlu1 %2874, %v1218_v19   ;;  %v464_v13 = vunpack.c.h.s8.bf16 %v412_v7  ;;  %v2908_v19 = vld [vmem:[%s3452_s3 + $0x8] sm:$0xff]  }
  0x34   : > { %2654 = vmatpush3.bf16.msra.mxu1 %v2898_v42  ;;  %v410_v42 = vld [vmem:[%s3032_s9 + $0x88] sm:$0xff] }
  0x35   : > { %2655 = vmatprep.subr.bf16.mxu1 %v2899_v45  ;;  %v1228_v45 = vld [vmem:[%s3082_s19 + $0xc8] sm:$0xff] }
  0x36   : > { %1307 = vperm.xlu0 %2873, %v1217_v17   ;;  %1322 = vperm.xlu1 %2874, %v1220_v25   ;;  %v468_v17 = vunpack.c.l.s8.bf16 %v416_v15  ;;  %v471_v25 = vunpack.c.h.s8.bf16 %v415_v18 }
  0x37   : > { %927 = vmatmul.mubr.bf16.gmra.mrb[8].mxu1 %v481_v48  ;;  %831 = vmatmul.mubr.bf16.gmra.mrb[8].mxu0 %v433_v54  ;;  %v1229_v48 = vld [vmem:[%s3082_s19 + $0xd0] sm:$0xff]  ;;  %v457_v54 = vunpack.c.l.s8.bf16 %v409_v51 }
  0x38   : > { %2656 = vmatpush3.bf16.msra.mxu1 %v2900_v46  ;;  %934 = vmatprep.mubr.bf16.mxu1 %v486_v52  ;;  %v458_v46 = vunpack.c.l.s8.bf16 %v410_v42  ;;  %v448_v52 = vunpack.c.h.s8.bf16 %v404_v38 }
  0x39   : > { %2657 = vmatprep.subr.bf16.mxu1 %v2901_v49  ;;  %838 = vmatprep.mubr.bf16.mxu0 %v438_v58  ;;  %v1230_v49 = vld [vmem:[%s3082_s19 + $0xd8] sm:$0xff] }
  0x3a   : > { %1317 = vperm.xlu0 %2873, %v1219_v23   ;;  %1332 = vperm.xlu1 %2874, %v1222_v29   ;;  %v408_v58 = vld [vmem:[%s3032_s9 + $0x78] sm:$0xff]  ;;  %v2912_v29 = vld [vmem:[%s3452_s3 + $0x28] sm:$0xff]  }
  0x3b   : > { %v456_v4 = vunpack.c.h.s8.bf16 %v408_v58  ;;  %v2910_v23 = vld [vmem:[%s3452_s3 + $0x18] sm:$0xff]  }
  0x3c   : > { %2658 = vmatpush3.bf16.msra.mxu1 %v2902_v55  ;;  %v1232_v55 = vld [vmem:[%s3082_s19 + $0xe8] sm:$0xff] }
  0x3d   : > { %2659 = vmatprep.subr.bf16.mxu1 %v2903_v56  ;;  %v462_v56 = vunpack.c.h.s8.bf16 %v410_v42 }
  0x3e   : > { %1327 = vperm.xlu0 %2873, %v1221_v28   ;;  %1342 = vperm.xlu1 %2874, %v1224_v35   ;;  %v419_v28 = vld [vmem:[%s3032_s9 + $0xd0] sm:$0xff] }
  0x3f   : > { %935 = vmatmul.mubr.bf16.gmra.mrb[12].mxu1 %v485_v61  ;;  %839 = vmatmul.mubr.bf16.gmra.mrb[12].mxu0 %v437_v3  ;;  %v452_v61 = vunpack.c.l.s8.bf16 %v408_v58  ;;  %v413_v3 = vld [vmem:[%s3032_s9 + $0xa0] sm:$0xff]  ;;  %v479_v35 = vunpack.c.h.s8.bf16 %v419_v28 }
  0x40   : > { %2660 = vmatpush3.bf16.msra.mxu1 %v2904_v62  ;;  %975 = vmatprep.mubr.bf16.mxu1 %v428_v63  ;;  %v414_v62 = vld [vmem:[%s3032_s9 + $0xa8] sm:$0xff]  ;;  %v461_v63 = vunpack.c.h.s8.bf16 %v409_v51 }
  0x41   : > { %2661 = vmatprep.subr.bf16.mxu1 %v2905_v2  ;;  %846 = vmatprep.mubr.bf16.mxu0 %v442_v5  ;;  %v466_v0 = vunpack.c.l.s8.bf16 %v414_v62  ;;  %v451_v2 = vunpack.c.l.s8.bf16 %v407_v1  ;;  %v465_v5 = vunpack.c.l.s8.bf16 %v413_v3 }
  0x42   : > { %1337 = vperm.xlu0 %2873, %v1223_v33   ;;  %1352 = vperm.xlu1 %2874, %v1226_v39   ;;  %v2914_v33 = vld [vmem:[%s3452_s3 + $0x38] sm:$0xff]  }
  0x44   : > { %2662 = vmatpush3.bf16.msra.mxu1 %v2906_v6  ;;  %v470_v6 = vunpack.c.h.s8.bf16 %v414_v62 }
  0x46   : > { %1347 = vperm.xlu0 %2873, %v1225_v37   ;;  %1362 = vperm.xlu1 %2874, %v1228_v45   ;;  %v423_v37 = vld [vmem:[%s3032_s9 + $0xf0] sm:$0xff] }
  0x47   : > { %976 = vmatmul.mubr.bf16.vlgmr.msra.gmra.mrb[16].mxu1 %v427_v10  ;;  %847 = vmatmul.mubr.bf16.gmra.mrb[16].mxu0 %v441_v14  ;;  %v469_v10 = vunpack.c.h.s8.bf16 %v413_v3  ;;  %v2907_v14 = vld [vmem:[%s3452_s3] sm:$0xff]   ;;  %v483_v38 = vunpack.c.l.s8.bf16 %v423_v37 }
  0x48   : > { %983 = vmatprep.mubr.bf16.mxu1 %v432_v12  ;;  %854 = vmatprep.mubr.bf16.mxu0 %v446_v16  ;;  %v459_v12 = vunpack.c.l.s8.bf16 %v411_v11  ;;  %v463_v16 = vunpack.c.h.s8.bf16 %v411_v11 }
  0x49   : > { %2783 = vmatprep.subr.bf16.mxu0 %v2907_v14 }
  0x4a   : > { %1357 = vperm.xlu0 %2873, %v1227_v43   ;;  %1372 = vperm.xlu1 %2874, %v1230_v49  }
  0x4b   : > { %2784 = vmatpush3.bf16.msra.mxu0 %v2907_v14 }
  0x4c   : > { %2785 = vmatprep.subr.bf16.mxu0 %v2908_v19 }
  0x4e   : > { %1367 = vperm.xlu0 %2873, %v1229_v48   ;;  %1382 = vperm.xlu1 %2874, %v1232_v55  }
  0x4f   : > { %984 = vmatmul.mubr.bf16.gmra.mrb[20].mxu1 %v431_v20  ;;  %855 = vmatmul.mubr.bf16.gmra.mrb[20].mxu0 %v445_v24  ;;  %v467_v20 = vunpack.c.l.s8.bf16 %v415_v18  ;;  %v420_v24 = vld [vmem:[%s3032_s9 + $0xd8] sm:$0xff] }
  0x50   : > { %991 = vmatprep.mubr.bf16.mxu1 %v436_v21  ;;  %862 = vmatprep.mubr.bf16.mxu0 %v450_v26  ;;  %v472_v21 = vunpack.c.h.s8.bf16 %v416_v15  ;;  %v476_v26 = vunpack.c.l.s8.bf16 %v420_v24  ;;  %v480_v31 = vunpack.c.h.s8.bf16 %v420_v24 }
  0x51   : > { %2786 = vmatpush3.bf16.msra.mxu0 %v2908_v19 }
  0x52   : > { %1377 = vperm.xlu0 %2873, %v1231_v53   ;;  %1392 = vperm.xlu1 %2874, %v1234_v59  }
  0x53   : > { %2787 = vmatprep.subr.bf16.mxu0 %v2909_v22 }
  0x55   : > { %2788 = vmatpush3.bf16.msra.mxu0 %v2909_v22 }
  0x56   : > { %1387 = vperm.xlu0 %2873, %v1233_v57   ;;  %2789 = vmatprep.subr.bf16.mxu0 %v2910_v23 }
  0x57   : > { %992 = vmatmul.mubr.bf16.gmra.mrb[24].mxu1 %v435_v30  ;;  %863 = vmatmul.mubr.bf16.gmra.mrb[24].mxu0 %v449_v34  ;;  %v475_v30 = vunpack.c.l.s8.bf16 %v419_v28  ;;  %v424_v34 = vld [vmem:[%s3032_s9 + $0xf8] sm:$0xff]  ;;  %s2372_s9 = sshll.u32 %s2929_s24, 8  ;;  %s3466_s24 = smov (!%p348_p6, %s2929_s24), 1 }
  0x58   : > { %999 = vmatprep.mubr.bf16.mxu1 %v440_v32  ;;  %870 = vmatprep.mubr.bf16.mxu0 %v454_v36  ;;  %v2913_v32 = vld [vmem:[%s3452_s3 + $0x30] sm:$0xff]   ;;  %v484_v36 = vunpack.c.l.s8.bf16 %v424_v34  ;;  %v488_v39 = vunpack.c.h.s8.bf16 %v424_v34  ;;  %s2297_s21 = sshll.u32 %s3466_s24, 3 }
  0x59   : > { %2790 = vmatpush3.bf16.msra.mxu0 %v2910_v23  ;;  %s351_s15 = scalar_lea.vmem %s3455_s6, %s2297_s21  ;;  %s355_s18 = scalar_lea.vmem %s3456_s7, %s2297_s21 }
  0x5a   : > { %2791 = vmatprep.subr.bf16.mxu0 %v2911_v27 }
  0x5d   : > { %2792 = vmatpush3.bf16.msra.mxu0 %v2911_v27 }
  0x5e   : > { %2793 = vmatprep.subr.bf16.mxu0 %v2912_v29 }
  0x5f   : > { %1000 = vmatmul.mubr.bf16.gmra.mrb[28].mxu1 %v439_v40  ;;  %871 = vmatmul.mubr.bf16.gmra.mrb[28].mxu0 %v453_v44  ;;  %v487_v40 = vunpack.c.h.s8.bf16 %v423_v37 }
  0x60   : > { %1007 = vmatprep.mubr.bf16.mxu1 %v444_v41  ;;  %878 = vmatprep.mubr.bf16.mxu0 %v458_v46 }
  0x61   : > { %2794 = vmatpush3.bf16.msra.mxu0 %v2912_v29 }
  0x62   : > { %2795 = vmatprep.subr.bf16.mxu0 %v2913_v32 }
  0x65   : > { %2796 = vmatpush3.bf16.msra.mxu0 %v2913_v32 }
  0x66   : > { %2797 = vmatprep.subr.bf16.mxu0 %v2914_v33 }
  0x67   : > { %1008 = vmatmul.mubr.bf16.gmra.mrb[32].mxu1 %v443_v50  ;;  %879 = vmatmul.mubr.bf16.gmra.mrb[32].mxu0 %v457_v54 }
  0x68   : > { %1015 = vmatprep.mubr.bf16.mxu1 %v448_v52  ;;  %886 = vmatprep.mubr.bf16.mxu0 %v462_v56 }
  0x69   : > { %2798 = vmatpush3.bf16.msra.mxu0 %v2914_v33 }
  0x6f   : > { %1016 = vmatmul.mubr.bf16.gmra.mrb[36].mxu1 %v447_v60  ;;  %887 = vmatmul.mubr.bf16.gmra.mrb[36].mxu0 %v461_v63 }
  0x70   : > { %1023 = vmatprep.mubr.bf16.mxu1 %v452_v61  ;;  %894 = vmatprep.mubr.bf16.mxu0 %v466_v0 }
  0x77   : > { %1024 = vmatmul.mubr.bf16.gmra.mrb[40].mxu1 %v451_v2  ;;  %895 = vmatmul.mubr.bf16.gmra.mrb[40].mxu0 %v465_v5 }
  0x78   : > { %1031 = vmatprep.mubr.bf16.mxu1 %v456_v4  ;;  %902 = vmatprep.mubr.bf16.mxu0 %v470_v6 }
  0x7f   : > { %1032 = vmatmul.mubr.bf16.gmra.mrb[44].mxu1 %v455_v8  ;;  %903 = vmatmul.mubr.bf16.gmra.mrb[44].mxu0 %v469_v10 }
  0x80   : > { %1039 = vmatprep.mubr.bf16.mxu1 %v460_v9 }
  0x87   : > { %1040 = vmatmul.mubr.bf16.gmra.mrb[48].mxu1 %v459_v12 }
  0x88   : > { %1047 = vmatprep.mubr.bf16.mxu1 %v464_v13 }
  0x8f   : > { %1048 = vmatmul.mubr.bf16.gmra.mrb[52].mxu1 %v463_v16 }
  0x90   : > { %1055 = vmatprep.mubr.bf16.mxu1 %v468_v17 }
  0x96   : > { %v1238_v24 = vpop.permute.xlu0 %1237 }
  0x97   : > { %1056 = vmatmul.mubr.bf16.gmra.mrb[56].mxu1 %v467_v20 }
  0x98   : > { %1063 = vmatprep.mubr.bf16.mxu1 %v472_v21 }
  0x9f   : > { %1064 = vmatmul.mubr.bf16.gmra.mrb[60].mxu1 %v471_v25 }
  0xa0   : > { %1071 = vmatprep.mubr.bf16.mxu1 %v476_v26 }
  0xa7   : > { %1072 = vmatmul.mubr.bf16.gmra.mrb[64].mxu1 %v475_v30 }
  0xa8   : > { %1079 = vmatprep.mubr.bf16.mxu1 %v480_v31 }
  0xaf   : > { %1080 = vmatmul.mubr.bf16.gmra.mrb[68].mxu1 %v479_v35  ;;  %v1243_v35 = vpop.permute.xlu0 %1242 }
  0xb0   : > { %1087 = vmatprep.mubr.bf16.mxu1 %v484_v36 }
  0xb7   : > { %1088 = vmatmul.mubr.bf16.gmra.mrb[72].mxu1 %v483_v38 }
  0xb8   : > { %1095 = vmatprep.mubr.bf16.mxu1 %v488_v39 }
  0xbf   : > { %1096 = vmatmul.mubr.bf16.gmra.mrb[76].mxu1 %v487_v40 }
  0xfa   : > { %v2623_v41 = vpop.f32.mrb[0].mxu1  ;;  %v2551_v46 = vpop.f32.mrb[0].mxu0 }
  0xfb   : > { %v2624_v42 = vpop.f32.mrb[1].mxu1  ;;  %v2552_v48 = vpop.f32.mrb[1].mxu0 }
  0xfc   : > { %v3200_v43 = vadd.f32 %v2624_v42, %v2623_v41  ;;  %v2626_v44 = vpop.f32.mrb[2].mxu1  ;;  %v2553_v49 = vadd.f32 %v2552_v48, %v2551_v46  ;;  %v2554_v50 = vpop.f32.mrb[2].mxu0 }
  0xfd   : > { %v2627_v45 = vpop.f32.mrb[3].mxu1  ;;  %v2555_v51 = vpop.f32.mrb[3].mxu0 }
  0xfe   : > { %v3202_v47 = vadd.f32 %v2627_v45, %v2626_v44  ;;  %v2556_v52 = vadd.f32 %v2555_v51, %v2554_v50  ;;  %v1248_v45 = vpop.permute.xlu1 %1247 }
 0x102   : > { %v2629_v53 = vpop.f32.mrb[4].mxu1  ;;  %v2557_v58 = vpop.f32.mrb[4].mxu0 }
 0x103   : > { %v2630_v54 = vpop.f32.mrb[5].mxu1  ;;  %v2558_v60 = vpop.f32.mrb[5].mxu0 }
 0x104   : > { %v3204_v55 = vadd.f32 %v2630_v54, %v2629_v53  ;;  %v2632_v56 = vpop.f32.mrb[6].mxu1  ;;  %v2559_v61 = vadd.f32 %v2558_v60, %v2557_v58  ;;  %v2560_v62 = vpop.f32.mrb[6].mxu0 }
 0x105   : > { %v2633_v57 = vpop.f32.mrb[7].mxu1  ;;  %v2561_v63 = vpop.f32.mrb[7].mxu0 }
 0x106   : > { %v3206_v59 = vadd.f32 %v2633_v57, %v2632_v56  ;;  %v2562_v0 = vadd.f32 %v2561_v63, %v2560_v62  ;;  %v1253_v63 = vpop.permute.xlu1 %1252 }
 0x10a   : > { %v2635_v1 = vpop.f32.mrb[8].mxu1  ;;  %v2563_v6 = vpop.f32.mrb[8].mxu0 }
 0x10b   : > { %v2636_v2 = vpop.f32.mrb[9].mxu1  ;;  %v2564_v8 = vpop.f32.mrb[9].mxu0 }
 0x10c   : > { %v3208_v3 = vadd.f32 %v2636_v2, %v2635_v1  ;;  %v2638_v4 = vpop.f32.mrb[10].mxu1  ;;  %v2565_v9 = vadd.f32 %v2564_v8, %v2563_v6  ;;  %v2566_v10 = vpop.f32.mrb[10].mxu0 }
 0x10d   : > { %v2639_v5 = vpop.f32.mrb[11].mxu1  ;;  %v2567_v11 = vpop.f32.mrb[11].mxu0 }
 0x10e   : > { %v3210_v7 = vadd.f32 %v2639_v5, %v2638_v4  ;;  %v3212_v12 = vadd.f32 %v2567_v11, %v2566_v10 }
 0x112   : > { %v2641_v13 = vpop.f32.mrb[12].mxu1  ;;  %v2569_v18 = vpop.f32.mrb[12].mxu0 }
 0x113   : > { %v2642_v14 = vpop.f32.mrb[13].mxu1  ;;  %v2570_v20 = vpop.f32.mrb[13].mxu0 }
 0x114   : > { %v3214_v15 = vadd.f32 %v2642_v14, %v2641_v13  ;;  %v2644_v16 = vpop.f32.mrb[14].mxu1  ;;  %v3218_v21 = vadd.f32 %v2570_v20, %v2569_v18  ;;  %v2572_v22 = vpop.f32.mrb[14].mxu0 }
 0x115   : > { %v2645_v17 = vpop.f32.mrb[15].mxu1  ;;  %v2573_v23 = vpop.f32.mrb[15].mxu0 }
 0x116   : > { %v3216_v19 = vadd.f32 %v2645_v17, %v2644_v16  ;;  %v3220_v25 = vadd.f32 %v2573_v23, %v2572_v22  ;;  %v1258_v23 = vpop.permute.xlu0 %1257 }
 0x11a   : > { %v2663_v26 = vpop.f32.mrb[16].mxu1  ;;  %v2575_v31 = vpop.f32.mrb[16].mxu0 }
 0x11b   : > { %v2664_v27 = vpop.f32.mrb[17].mxu1  ;;  %v2576_v34 = vpop.f32.mrb[17].mxu0 }
 0x11c   : > { %v2665_v28 = vadd.f32 %v2664_v27, %v2663_v26  ;;  %v2666_v29 = vpop.f32.mrb[18].mxu1  ;;  %v3222_v36 = vadd.f32 %v2576_v34, %v2575_v31  ;;  %v2578_v37 = vpop.f32.mrb[18].mxu0 }
 0x11d   : > { %v2667_v30 = vpop.f32.mrb[19].mxu1  ;;  %v2579_v39 = vpop.f32.mrb[19].mxu0 }
 0x11e   : > { %v978_v32 = vadd.f32 %v2665_v28, %v2553_v49  ;;  %v2668_v33 = vadd.f32 %v2667_v30, %v2666_v29  ;;  %v3224_v40 = vadd.f32 %v2579_v39, %v2578_v37 }
 0x120   : > { %v981_v38 = vadd.f32 %v2668_v33, %v2556_v52  ;;  %v1395_v41 = vmul.f32 %v1238_v24, %v978_v32  ;;  %v1263_v24 = vpop.permute.xlu1 %1262 }
 0x122   : > { %v1396_v42 = vmul.f32 %v1243_v35, %v981_v38  ;;  %v2669_v44 = vpop.f32.mrb[20].mxu1  ;;  %v2581_v49 = vpop.f32.mrb[20].mxu0 }
 0x123   : > { %v2670_v46 = vpop.f32.mrb[21].mxu1  ;;  %v2582_v57 = vpop.f32.mrb[21].mxu0 }
 0x124   : > { %v1427_v48 = vpack.c.bf16 %v1396_v42, %v1395_v41  ;;  %v2671_v50 = vadd.f32 %v2670_v46, %v2669_v44  ;;  %v2672_v51 = vpop.f32.mrb[22].mxu1  ;;  %v3226_v58 = vadd.f32 %v2582_v57, %v2581_v49  ;;  %v2584_v52 = vpop.f32.mrb[22].mxu0 }
 0x125   : > { %v2673_v53 = vpop.f32.mrb[23].mxu1  ;;  %v2585_v62 = vpop.f32.mrb[23].mxu0 }
 0x126   : > { %v986_v54 = vadd.f32 %v2671_v50, %v2559_v61  ;;  %v2674_v56 = vadd.f32 %v2673_v53, %v2672_v51  ;;  %2799 = vmatprep.mubr.bf16.mxu0 %v1427_v48  ;;  %v3228_v1 = vadd.f32 %v2585_v62, %v2584_v52  ;;  %v1268_v44 = vpop.permute.xlu0 %1267 }
 0x128   : > { %v989_v60 = vadd.f32 %v2674_v56, %v2562_v0  ;;  %v1397_v2 = vmul.f32 %v1248_v45, %v986_v54  ;;  %v1273_v45 = vpop.permute.xlu1 %1272 }
 0x12a   : > { %v1398_v4 = vmul.f32 %v1253_v63, %v989_v60  ;;  %v2675_v5 = vpop.f32.mrb[24].mxu1  ;;  %v2587_v61 = vpop.f32.mrb[24].mxu0 }
 0x12b   : > { %v2676_v6 = vpop.f32.mrb[25].mxu1  ;;  %v2588_v17 = vpop.f32.mrb[25].mxu0 }
 0x12c   : > { %v1428_v8 = vpack.c.bf16 %v1398_v4, %v1397_v2  ;;  %v2677_v10 = vadd.f32 %v2676_v6, %v2675_v5  ;;  %v2678_v11 = vpop.f32.mrb[26].mxu1  ;;  %v3230_v18 = vadd.f32 %v2588_v17, %v2587_v61  ;;  %v2590_v0 = vpop.f32.mrb[26].mxu0 }
 0x12d   : > { %v2679_v13 = vpop.f32.mrb[27].mxu1  ;;  %v2591_v22 = vpop.f32.mrb[27].mxu0 }
 0x12e   : > { %v994_v14 = vadd.f32 %v2677_v10, %v2565_v9  ;;  %v2680_v16 = vadd.f32 %v2679_v13, %v2678_v11  ;;  %2800 = vmatmul.mubr.bf16.vlgmr.msra.gmra.mrb[48].mxu0 %v1428_v8  ;;  %v3233_v26 = vadd.f32 %v2591_v22, %v2590_v0  ;;  %v1278_v5 = vpop.permute.xlu0 %1277  ;;  %v1283_v6 = vpop.permute.xlu1 %1282 }
 0x130   : > { %v997_v20 = vadd.f32 %v2680_v16, %v3212_v12  ;;  %v1399_v27 = vmul.f32 %v1258_v23, %v994_v14 }
 0x132   : > { %v1400_v28 = vmul.f32 %v1263_v24, %v997_v20  ;;  %v2681_v29 = vpop.f32.mrb[28].mxu1  ;;  %v2593_v34 = vpop.f32.mrb[28].mxu0 }
 0x133   : > { %v2682_v30 = vpop.f32.mrb[29].mxu1  ;;  %v2594_v38 = vpop.f32.mrb[29].mxu0 }
 0x134   : > { %v2683_v31 = vadd.f32 %v2682_v30, %v2681_v29  ;;  %v2684_v32 = vpop.f32.mrb[30].mxu1  ;;  %v1429_v9 = vpack.c.bf16 %v1400_v28, %v1399_v27  ;;  %v3236_v12 = vadd.f32 %v2594_v38, %v2593_v34  ;;  %v2596_v39 = vpop.f32.mrb[30].mxu0 }
 0x135   : > { %v2685_v33 = vpop.f32.mrb[31].mxu1  ;;  %v2597_v42 = vpop.f32.mrb[31].mxu0 }
 0x136   : > { %v1002_v35 = vadd.f32 %v2683_v31, %v3218_v21  ;;  %v2686_v37 = vadd.f32 %v2685_v33, %v2684_v32  ;;  %2803 = vmatprep.mubr.bf16.mxu0 %v1429_v9  ;;  %v3239_v46 = vadd.f32 %v2597_v42, %v2596_v39  ;;  %v1288_v29 = vpop.permute.xlu0 %1287  ;;  %v1293_v30 = vpop.permute.xlu1 %1292 }
 0x138   : > { %v1005_v41 = vadd.f32 %v2686_v37, %v3220_v25  ;;  %v1401_v48 = vmul.f32 %v1268_v44, %v1002_v35 }
 0x13a   : > { %v1402_v50 = vmul.f32 %v1273_v45, %v1005_v41  ;;  %v2687_v51 = vpop.f32.mrb[32].mxu1  ;;  %v2599_v57 = vpop.f32.mrb[32].mxu0 }
 0x13b   : > { %v2688_v53 = vpop.f32.mrb[33].mxu1  ;;  %v2600_v62 = vpop.f32.mrb[33].mxu0 }
 0x13c   : > { %v2689_v49 = vadd.f32 %v2688_v53, %v2687_v51  ;;  %v2690_v54 = vpop.f32.mrb[34].mxu1  ;;  %v1430_v21 = vpack.c.bf16 %v1402_v50, %v1401_v48  ;;  %v3242_v25 = vadd.f32 %v2600_v62, %v2599_v57  ;;  %v2602_v63 = vpop.f32.mrb[34].mxu0 }
 0x13d   : > { %v2691_v56 = vpop.f32.mrb[35].mxu1  ;;  %v2603_v4 = vpop.f32.mrb[35].mxu0 }
 0x13e   : > { %v1010_v52 = vadd.f32 %v2689_v49, %v3222_v36  ;;  %v2692_v60 = vadd.f32 %v2691_v56, %v2690_v54  ;;  %2804 = vmatmul.mubr.bf16.gmra.mrb[52].mxu0 %v1430_v21  ;;  %v3245_v8 = vadd.f32 %v2603_v4, %v2602_v63  ;;  %v1298_v51 = vpop.permute.xlu0 %1297  ;;  %v1303_v53 = vpop.permute.xlu1 %1302 }
 0x140   : > { %v1013_v2 = vadd.f32 %v2692_v60, %v3224_v40  ;;  %v1403_v10 = vmul.f32 %v1278_v5, %v1010_v52 }
 0x142   : > { %v1404_v11 = vmul.f32 %v1283_v6, %v1013_v2  ;;  %v2693_v13 = vpop.f32.mrb[36].mxu1  ;;  %v2605_v0 = vpop.f32.mrb[36].mxu0 }
 0x143   : > { %v2694_v61 = vpop.f32.mrb[37].mxu1  ;;  %v2606_v23 = vpop.f32.mrb[37].mxu0 }
 0x144   : > { %v2695_v14 = vadd.f32 %v2694_v61, %v2693_v13  ;;  %v2696_v16 = vpop.f32.mrb[38].mxu1  ;;  %v1431_v36 = vpack.c.bf16 %v1404_v11, %v1403_v10  ;;  %v3248_v40 = vadd.f32 %v2606_v23, %v2605_v0  ;;  %v2608_v24 = vpop.f32.mrb[38].mxu0 }
 0x145   : > { %v2697_v17 = vpop.f32.mrb[39].mxu1  ;;  %v2609_v28 = vpop.f32.mrb[39].mxu0 }
 0x146   : > { %v1018_v20 = vadd.f32 %v2695_v14, %v3226_v58  ;;  %v2698_v22 = vadd.f32 %v2697_v17, %v2696_v16  ;;  %2807 = vmatprep.mubr.bf16.mxu0 %v1431_v36  ;;  %v3251_v31 = vadd.f32 %v2609_v28, %v2608_v24  ;;  %v1308_v13 = vpop.permute.xlu0 %1307  ;;  %v1313_v61 = vpop.permute.xlu1 %1312 }
 0x148   : > { %v1021_v27 = vadd.f32 %v2698_v22, %v3228_v1  ;;  %v1405_v32 = vmul.f32 %v1288_v29, %v1018_v20 }
 0x14a   : > { %v1406_v9 = vmul.f32 %v1293_v30, %v1021_v27  ;;  %v2699_v33 = vpop.f32.mrb[40].mxu1  ;;  %v2611_v39 = vpop.f32.mrb[40].mxu0 }
 0x14b   : > { %v2700_v34 = vpop.f32.mrb[41].mxu1  ;;  %v2612_v44 = vpop.f32.mrb[41].mxu0 }
 0x14c   : > { %v2701_v35 = vadd.f32 %v2700_v34, %v2699_v33  ;;  %v2702_v37 = vpop.f32.mrb[42].mxu1  ;;  %v1432_v58 = vpack.c.bf16 %v1406_v9, %v1405_v32  ;;  %v3254_v1 = vadd.f32 %v2612_v44, %v2611_v39  ;;  %v2614_v45 = vpop.f32.mrb[42].mxu0 }
 0x14d   : > { %v2703_v38 = vpop.f32.mrb[43].mxu1  ;;  %v2615_v50 = vpop.f32.mrb[43].mxu0 }
 0x14e   : > { %v1026_v41 = vadd.f32 %v2701_v35, %v3230_v18  ;;  %v2704_v42 = vadd.f32 %v2703_v38, %v2702_v37  ;;  %2808 = vmatmul.mubr.bf16.gmra.mrb[56].mxu0 %v1432_v58  ;;  %v2616_v49 = vadd.f32 %v2615_v50, %v2614_v45  ;;  %v1318_v29 = vpop.permute.xlu0 %1317 }
 0x150   : > { %v1029_v48 = vadd.f32 %v2704_v42, %v3233_v26  ;;  %v1407_v54 = vmul.f32 %v1298_v51, %v1026_v41 }
 0x152   : > { %v1408_v21 = vmul.f32 %v1303_v53, %v1029_v48  ;;  %v2705_v56 = vpop.f32.mrb[44].mxu1  ;;  %v2617_v63 = vpop.f32.mrb[44].mxu0 }
 0x153   : > { %v2706_v57 = vpop.f32.mrb[45].mxu1  ;;  %v2618_v5 = vpop.f32.mrb[45].mxu0 }
 0x154   : > { %v2707_v52 = vadd.f32 %v2706_v57, %v2705_v56  ;;  %v2708_v60 = vpop.f32.mrb[46].mxu1  ;;  %v1433_v62 = vpack.c.bf16 %v1408_v21, %v1407_v54  ;;  %v2619_v6 = vadd.f32 %v2618_v5, %v2617_v63  ;;  %v2620_v26 = vpop.f32.mrb[46].mxu0 }
 0x155   : > { %v2709_v18 = vpop.f32.mrb[47].mxu1  ;;  %v2621_v11 = vpop.f32.mrb[47].mxu0 }
 0x156   : > { %v1034_v2 = vadd.f32 %v2707_v52, %v3236_v12  ;;  %v2710_v4 = vadd.f32 %v2709_v18, %v2708_v60  ;;  %2811 = vmatprep.mubr.bf16.mxu0 %v1433_v62  ;;  %v2622_v14 = vadd.f32 %v2621_v11, %v2620_v26  ;;  %v1328_v41 = vpop.permute.xlu0 %1327 }
 0x158   : > { %v1037_v10 = vadd.f32 %v2710_v4, %v3239_v46  ;;  %v1409_v16 = vmul.f32 %v1308_v13, %v1034_v2  ;;  %v1323_v46 = vpop.permute.xlu1 %1322 }
 0x15a   : > { %v1410_v36 = vmul.f32 %v1313_v61, %v1037_v10  ;;  %v2711_v17 = vpop.f32.mrb[48].mxu1 }
 0x15b   : > { %v2712_v0 = vpop.f32.mrb[49].mxu1 }
 0x15c   : > { %v2713_v20 = vadd.f32 %v2712_v0, %v2711_v17  ;;  %v2714_v22 = vpop.f32.mrb[50].mxu1  ;;  %v1434_v23 = vpack.c.bf16 %v1410_v36, %v1409_v16  ;;  %v1333_v42 = vpop.permute.xlu1 %1332 }
 0x15d   : > { %v2715_v24 = vpop.f32.mrb[51].mxu1 }
 0x15e   : > { %v1042_v12 = vadd.f32 %v2713_v20, %v3242_v25  ;;  %v2716_v27 = vadd.f32 %v2715_v24, %v2714_v22  ;;  %2812 = vmatmul.mubr.bf16.gmra.mrb[60].mxu0 %v1434_v23 }
 0x160   : > { %v1045_v28 = vadd.f32 %v2716_v27, %v3245_v8  ;;  %v1411_v30 = vmul.f32 %v1318_v29, %v1042_v12  ;;  %v1343_v52 = vpop.permute.xlu1 %1342 }
 0x162   : > { %v1412_v32 = vmul.f32 %v1323_v46, %v1045_v28  ;;  %v2717_v9 = vpop.f32.mrb[52].mxu1 }
 0x163   : > { %v2718_v33 = vpop.f32.mrb[53].mxu1 }
 0x164   : > { %v2719_v34 = vadd.f32 %v2718_v33, %v2717_v9  ;;  %v2720_v35 = vpop.f32.mrb[54].mxu1  ;;  %v1435_v37 = vpack.c.bf16 %v1412_v32, %v1411_v30  ;;  %v1353_v61 = vpop.permute.xlu1 %1352 }
 0x165   : > { %v2721_v58 = vpop.f32.mrb[55].mxu1 }
 0x166   : > { %v1050_v38 = vadd.f32 %v2719_v34, %v3248_v40  ;;  %v2722_v39 = vadd.f32 %v2721_v58, %v2720_v35  ;;  %2815 = vmatprep.mubr.bf16.mxu0 %v1435_v37  ;;  %v1338_v40 = vpop.permute.xlu0 %1337 }
 0x168   : > { %v1053_v25 = vadd.f32 %v2722_v39, %v3251_v31  ;;  %v1413_v44 = vmul.f32 %v1328_v41, %v1050_v38  ;;  %v1363_v27 = vpop.permute.xlu1 %1362 }
 0x16a   : > { %v1414_v8 = vmul.f32 %v1333_v42, %v1053_v25  ;;  %v2723_v45 = vpop.f32.mrb[56].mxu1  ;;  %v1348_v13 = vpop.permute.xlu0 %1347 }
 0x16b   : > { %v2724_v48 = vpop.f32.mrb[57].mxu1 }
 0x16c   : > { %v2725_v50 = vadd.f32 %v2724_v48, %v2723_v45  ;;  %v2726_v51 = vpop.f32.mrb[58].mxu1  ;;  %v1436_v53 = vpack.c.bf16 %v1414_v8, %v1413_v44  ;;  %v1373_v58 = vpop.permute.xlu1 %1372 }
 0x16d   : > { %v2727_v54 = vpop.f32.mrb[59].mxu1 }
 0x16e   : > { %v1058_v21 = vadd.f32 %v2725_v50, %v3254_v1  ;;  %v2728_v56 = vadd.f32 %v2727_v54, %v2726_v51  ;;  %2816 = vmatmul.mubr.bf16.gmra.mrb[64].mxu0 %v1436_v53 }
 0x170   : > { %v1061_v57 = vadd.f32 %v2728_v56, %v2616_v49  ;;  %v1415_v60 = vmul.f32 %v1338_v40, %v1058_v21  ;;  %v1383_v51 = vpop.permute.xlu1 %1382 }
 0x172   : > { %v1416_v62 = vmul.f32 %v1343_v52, %v1061_v57  ;;  %v2729_v31 = vpop.f32.mrb[60].mxu1 }
 0x173   : > { %v2730_v18 = vpop.f32.mrb[61].mxu1 }
 0x174   : > { %v2731_v63 = vadd.f32 %v2730_v18, %v2729_v31  ;;  %v2732_v2 = vpop.f32.mrb[62].mxu1  ;;  %v1437_v4 = vpack.c.bf16 %v1416_v62, %v1415_v60  ;;  %v1393_v18 = vpop.permute.xlu1 %1392 }
 0x175   : > { %v2733_v5 = vpop.f32.mrb[63].mxu1 }
 0x176   : > { %v1066_v26 = vadd.f32 %v2731_v63, %v2619_v6  ;;  %v2734_v10 = vadd.f32 %v2733_v5, %v2732_v2  ;;  %2819 = vmatprep.mubr.bf16.mxu0 %v1437_v4  ;;  %v1358_v6 = vpop.permute.xlu0 %1357  ;;  %v1836_v4 = vlaneseq }
 0x178   : > { %v1069_v11 = vadd.f32 %v2734_v10, %v2622_v14  ;;  %v1417_v1 = vmul.f32 %v1348_v13, %v1066_v26  ;;  %v3273_v5 = vshrl.u32 %v1836_v4, 7  ;;  %v3275_v26 = vstv %s2372_s9 }
 0x17a   : > { %v1418_v16 = vmul.f32 %v1353_v61, %v1069_v11  ;;  %v2735_v36 = vpop.f32.mrb[64].mxu1  ;;  %v1368_v37 = vpop.permute.xlu0 %1367  ;;  %v1840_v10 = vadd.s32 24, %v3273_v5  ;;  %v1838_v11 = vadd.s32 8, %v3273_v5 }
 0x17b   : > { %v2736_v49 = vpop.f32.mrb[65].mxu1 }
 0x17c   : > { %v2737_v17 = vadd.f32 %v2736_v49, %v2735_v36  ;;  %v2738_v0 = vpop.f32.mrb[66].mxu1  ;;  %v1438_v20 = vpack.c.bf16 %v1418_v16, %v1417_v1  ;;  %v1873_v13 = vadd.s32 %v3275_v26, %v1840_v10  ;;  %v1871_v1 = vadd.s32 %v3275_v26, %v1838_v11  ;;  %v3288_v16 = vld [vmem:[%s3453_s4] ss:$0 sm:$0xff] }
 0x17d   : > { %v2739_v22 = vpop.f32.mrb[67].mxu1 }
 0x17e   : > { %v1074_v23 = vadd.f32 %v2737_v17, %v3200_v43  ;;  %v2740_v24 = vadd.f32 %v2739_v22, %v2738_v0  ;;  %2820 = vmatmul.mubr.bf16.gmra.mrb[68].mxu0 %v1438_v20  ;;  %v1378_v50 = vpop.permute.xlu0 %1377  ;;  %vm1905_vm1 = vcmp.lt.s32.totalorder %v1873_v13, 512  ;;  %vm1903_vm3 = vcmp.lt.s32.totalorder %v1871_v1, 512 }
 0x17f   : > { %v2940_v17 = vmov 0.0   ;;  %v1846_v13 = vadd.s32 72, %v3273_v5 }
 0x180   : > { %v1077_v12 = vadd.f32 %v2740_v24, %v3202_v47  ;;  %v1419_v28 = vmul.f32 %v1358_v6, %v1074_v23  ;;  %v2376_v24 = vsel %vm1905_vm1, 1.0, %v2940_v17 }
 0x182   : > { %v1420_v14 = vmul.f32 %v1363_v27, %v1077_v12  ;;  %v2741_v29 = vpop.f32.mrb[68].mxu1  ;;  %v1388_v31 = vpop.permute.xlu0 %1387 }
 0x183   : > { %v2742_v46 = vpop.f32.mrb[69].mxu1 }
 0x184   : > { %v2743_v30 = vadd.f32 %v2742_v46, %v2741_v29  ;;  %v2744_v32 = vpop.f32.mrb[70].mxu1  ;;  %v1439_v9 = vpack.c.bf16 %v1420_v14, %v1419_v28  ;;  %v2374_v28 = vsel %vm1903_vm3, 1.0, %v2940_v17 }
 0x185   : > { %v2745_v33 = vpop.f32.mrb[71].mxu1 }
 0x186   : > { %v1082_v34 = vadd.f32 %v2743_v30, %v3204_v55  ;;  %v2746_v35 = vadd.f32 %v2745_v33, %v2744_v32  ;;  %2823 = vmatprep.mubr.bf16.mxu0 %v1439_v9 }
 0x188   : > { %v1085_v43 = vadd.f32 %v2746_v35, %v3206_v59  ;;  %v1421_v38 = vmul.f32 %v1368_v37, %v1082_v34  ;;  %v1841_v34 = vadd.s32 32, %v3273_v5 }
 0x18a   : > { %v1422_v47 = vmul.f32 %v1373_v58, %v1085_v43  ;;  %v2747_v39 = vpop.f32.mrb[72].mxu1  ;;  %v1843_v43 = vadd.s32 48, %v3273_v5 }
 0x18b   : > { %v2748_v25 = vpop.f32.mrb[73].mxu1 }
 0x18c   : > { %v2749_v41 = vadd.f32 %v2748_v25, %v2747_v39  ;;  %v2750_v42 = vpop.f32.mrb[74].mxu1  ;;  %v1440_v44 = vpack.c.bf16 %v1422_v47, %v1421_v38  ;;  %v1842_v47 = vadd.s32 40, %v3273_v5  ;;  %v1844_v39 = vadd.s32 56, %v3273_v5 }
 0x18d   : > { %v2751_v8 = vpop.f32.mrb[75].mxu1 }
 0x18e   : > { %v1090_v45 = vadd.f32 %v2749_v41, %v3208_v3  ;;  %v2752_v48 = vadd.f32 %v2751_v8, %v2750_v42  ;;  %2824 = vmatmul.mubr.bf16.gmra.mrb[72].mxu0 %v1440_v44  ;;  %v1874_v44 = vadd.s32 %v3275_v26, %v1841_v34  ;;  %v1876_v8 = vadd.s32 %v3275_v26, %v1843_v43 }
 0x190   : > { %v1093_v55 = vadd.f32 %v2752_v48, %v3210_v7  ;;  %v1423_v53 = vmul.f32 %v1378_v50, %v1090_v45  ;;  %vm1906_vm4 = vcmp.lt.s32.totalorder %v1874_v44, 512  ;;  %vm1908_vm5 = vcmp.lt.s32.totalorder %v1876_v8, 512 }
 0x191   : > { %v1849_v44 = vadd.s32 96, %v3273_v5 }
 0x192   : > { %v1424_v59 = vmul.f32 %v1383_v51, %v1093_v55  ;;  %v2753_v54 = vpop.f32.mrb[76].mxu1  ;;  %v1875_v55 = vadd.s32 %v3275_v26, %v1842_v47  ;;  %v1877_v51 = vadd.s32 %v3275_v26, %v1844_v39 }
 0x193   : > { %v2754_v21 = vpop.f32.mrb[77].mxu1 }
 0x194   : > { %v2755_v56 = vadd.f32 %v2754_v21, %v2753_v54  ;;  %v2756_v57 = vpop.f32.mrb[78].mxu1  ;;  %v1441_v40 = vpack.c.bf16 %v1424_v59, %v1423_v53  ;;  %vm1907_vm6 = vcmp.lt.s32.totalorder %v1875_v55, 512  ;;  %v2377_v21 = vsel %vm1906_vm4, 1.0, %v2940_v17 }
 0x195   : > { %v2757_v52 = vpop.f32.mrb[79].mxu1  ;;  %vm1909_vm7 = vcmp.lt.s32.totalorder %v1877_v51, 512  ;;  %v1850_v51 = vadd.s32 104, %v3273_v5 }
 0x196   : > { %v1098_v60 = vadd.f32 %v2755_v56, %v3214_v15  ;;  %v2758_v62 = vadd.f32 %v2757_v52, %v2756_v57  ;;  %2827 = vmatprep.mubr.bf16.mxu0 %v1441_v40  ;;  %v1839_v15 = vadd.s32 16, %v3273_v5  ;;  %v2379_v56 = vsel %vm1908_vm5, 1.0, %v2940_v17 }
 0x198   : > { %v1101_v3 = vadd.f32 %v2758_v62, %v3216_v19  ;;  %v1425_v7 = vmul.f32 %v1388_v31, %v1098_v60  ;;  %v1870_v19 = vadd.s32 %v3275_v26, %v3273_v5  ;;  %v1872_v61 = vadd.s32 %v3275_v26, %v1839_v15 }
 0x199   : > { %v2378_v62 = vsel %vm1907_vm6, 1.0, %v2940_v17 }
 0x19a   : > { %v1426_v63 = vmul.f32 %v1393_v18, %v1101_v3  ;;  %vm1902_vm0 = vcmp.lt.s32.totalorder %v1870_v19, 512  ;;  %vm1904_vm2 = vcmp.lt.s32.totalorder %v1872_v61, 512  ;;  %v1847_v19 = vadd.s32 80, %v3273_v5 }
 0x19b   : > { %v2373_v0 = vsel %vm1902_vm0, 1.0, %v2940_v17  ;;  %v2375_v12 = vsel %vm1904_vm2, 1.0, %v2940_v17 }
 0x19c   : > { %v1442_v2 = vpack.c.bf16 %v1426_v63, %v1425_v7  ;;  %v2380_v63 = vsel %vm1909_vm7, 1.0, %v2940_v17 }
 0x19e   : > { %2828 = vmatmul.mubr.bf16.gmra.mrb[76].mxu0 %v1442_v2  ;;  %v1845_v2 = vadd.s32 64, %v3273_v5 }
 0x201   : > { %v2801_v36 = vpop.f32.mrb[48].mxu0 }
 0x202   : > { %v1548_v49 = vpop.f32.mrb[49].mxu0  ;;  %v1557_v20 = vadd.f32 %v2801_v36, %v3288_v16 }
 0x203   : > { %v1549_v22 = vadd.f32 %v3288_v16, %v1548_v49  ;;  %v2802_v23 = vpop.f32.mrb[50].mxu0 }
 0x204   : > { %v1560_v6 = vadd.f32 %v2802_v23, %v3288_v16  ;;  %v1551_v27 = vpop.f32.mrb[51].mxu0  ;;  %v2000_v32 = vmul.f32 %v2375_v12, %v1557_v20  ;;  %v1880_v12 = vadd.s32 %v3275_v26, %v1847_v19 }
 0x205   : > { %v1998_v14 = vmul.f32 %v2373_v0, %v1549_v22  ;;  %v1552_v29 = vadd.f32 %v3288_v16, %v1551_v27  ;;  %v1848_v0 = vadd.s32 88, %v3273_v5 }
 0x206   : > { %v2448_v46 = vpack.c.bf16 %v1560_v6, %v1557_v20  ;;  %v2001_v30 = vmul.f32 %v2376_v24, %v1560_v6  ;;  %v2069_v25 = vmul.f32 %v2000_v32, %v1557_v20  ;;  %v1878_v24 = vadd.s32 %v3275_v26, %v1845_v2 }
 0x207   : > { %v2443_v9 = vpack.c.bf16 %v1552_v29, %v1549_v22  ;;  %v1999_v33 = vmul.f32 %v2374_v28, %v1552_v29  ;;  %v2067_v37 = vmul.f32 %v1998_v14, %v1549_v22  ;;  %vm1912_vm9 = vcmp.lt.s32.totalorder %v1880_v12, 512 }
 0x208   : > { %2520 = vst [vmem:[%s3301_s12 + $0x8] sm:$0xff] %v2448_v46   ;;  %v2070_v35 = vmul.f32 %v2001_v30, %v1560_v6  ;;  %vm1910_vm8 = vcmp.lt.s32.totalorder %v1878_v24, 512  ;;  %v1881_v46 = vadd.s32 %v3275_v26, %v1848_v0  ;;  %v2383_v34 = vsel %vm1912_vm9, 1.0, %v2940_v17 }
 0x209   : > { %2444 = vst [vmem:[%s3301_s12] sm:$0xff] %v2443_v9   ;;  %v2030_v58 = vadd.f32 %v1999_v33, %v1998_v14  ;;  %v2068_v38 = vmul.f32 %v1999_v33, %v1552_v29  ;;  %v1879_v14 = vadd.s32 %v3275_v26, %v1846_v13  ;;  %v2381_v33 = vsel %vm1910_vm8, 1.0, %v2940_v17 }
 0x20a   : > { %vm1913_vm11 = vcmp.lt.s32.totalorder %v1881_v46, 512  ;;  %v1853_v12 = vadd.s32 128, %v3273_v5  ;;  %v1854_v46 = vadd.s32 136, %v3273_v5 }
 0x20b   : > { %v2031_v41 = vadd.f32 %v2030_v58, %v2000_v32  ;;  %v2099_v42 = vadd.f32 %v2068_v38, %v2067_v37  ;;  %vm1911_vm10 = vcmp.lt.s32.totalorder %v1879_v14, 512 }
 0x20c   : > { %v2382_v38 = vsel %vm1911_vm10, 1.0, %v2940_v17 }
 0x20d   : > { %v2100_v45 = vadd.f32 %v2099_v42, %v2069_v25  ;;  %v2032_v48 = vadd.f32 %v2031_v41, %v2001_v30  ;;  %v2384_v42 = vsel %vm1913_vm11, 1.0, %v2940_v17 }
 0x20f   : > { %v2101_v50 = vadd.f32 %v2100_v45, %v2070_v35 }
 0x211   : > { %v2805_v53 = vpop.f32.mrb[52].mxu0 }
 0x212   : > { %v1573_v59 = vadd.f32 %v2805_v53, %v3288_v16  ;;  %v1564_v54 = vpop.f32.mrb[53].mxu0 }
 0x213   : > { %v1565_v57 = vadd.f32 %v3288_v16, %v1564_v54  ;;  %v2806_v40 = vpop.f32.mrb[54].mxu0 }
 0x214   : > { %v1576_v52 = vadd.f32 %v2806_v40, %v3288_v16  ;;  %v1567_v60 = vpop.f32.mrb[55].mxu0  ;;  %v2004_v18 = vmul.f32 %v2379_v56, %v1573_v59  ;;  %v1852_v56 = vadd.s32 120, %v3273_v5 }
 0x215   : > { %v2002_v3 = vmul.f32 %v2377_v21, %v1565_v57  ;;  %v1568_v31 = vadd.f32 %v3288_v16, %v1567_v60  ;;  %v1882_v60 = vadd.s32 %v3275_v26, %v1849_v44 }
 0x216   : > { %v2458_v7 = vpack.c.bf16 %v1576_v52, %v1573_v59  ;;  %v2005_v1 = vmul.f32 %v2380_v63, %v1576_v52  ;;  %v2073_v20 = vmul.f32 %v2004_v18, %v1573_v59  ;;  %v1885_v2 = vadd.s32 %v3275_v26, %v1852_v56 }
 0x217   : > { %v2033_v4 = vadd.f32 %v2032_v48, %v2002_v3  ;;  %v2071_v10 = vmul.f32 %v2002_v3, %v1565_v57  ;;  %v2453_v15 = vpack.c.bf16 %v1568_v31, %v1565_v57  ;;  %v2003_v11 = vmul.f32 %v2378_v62, %v1568_v31 }
 0x218   : > { %2522 = vst [vmem:[%s3301_s12 + $0x18] sm:$0xff] %v2458_v7   ;;  %v2074_v6 = vmul.f32 %v2005_v1, %v1576_v52  ;;  %v1883_v7 = vadd.s32 %v3275_v26, %v1850_v51  ;;  %vm1914_vm12 = vcmp.lt.s32.totalorder %v1882_v60, 512  ;;  %vm1917_vm15 = vcmp.lt.s32.totalorder %v1885_v2, 512 }
 0x219   : > { %v2102_v61 = vadd.f32 %v2101_v50, %v2071_v10  ;;  %2521 = vst [vmem:[%s3301_s12 + $0x10] sm:$0xff] %v2453_v15   ;;  %v2034_v36 = vadd.f32 %v2033_v4, %v2003_v11  ;;  %v2072_v49 = vmul.f32 %v2003_v11, %v1568_v31  ;;  %v1851_v50 = vadd.s32 112, %v3273_v5 }
 0x21a   : > { %vm1915_vm14 = vcmp.lt.s32.totalorder %v1883_v7, 512  ;;  %v2385_v11 = vsel %vm1914_vm12, 1.0, %v2940_v17  ;;  %v2388_v24 = vsel %vm1917_vm15, 1.0, %v2940_v17  ;;  %v1858_v2 = vadd.s32 168, %v3273_v5 }
 0x21b   : > { %v2035_v22 = vadd.f32 %v2034_v36, %v2004_v18  ;;  %v2103_v23 = vadd.f32 %v2102_v61, %v2072_v49  ;;  %v1884_v62 = vadd.s32 %v3275_v26, %v1851_v50  ;;  %v2386_v49 = vsel %vm1915_vm14, 1.0, %v2940_v17 }
 0x21d   : > { %v2104_v27 = vadd.f32 %v2103_v23, %v2073_v20  ;;  %v2036_v28 = vadd.f32 %v2035_v22, %v2005_v1  ;;  %vm1916_vm13 = vcmp.lt.s32.totalorder %v1884_v62, 512  ;;  %v1857_v62 = vadd.s32 160, %v3273_v5 }
 0x21e   : > { %v2387_v19 = vsel %vm1916_vm13, 1.0, %v2940_v17 }
 0x21f   : > { %v2105_v29 = vadd.f32 %v2104_v27, %v2074_v6 }
 0x221   : > { %v2809_v30 = vpop.f32.mrb[56].mxu0 }
 0x222   : > { %v1589_v32 = vadd.f32 %v2809_v30, %v3288_v16  ;;  %v1580_v9 = vpop.f32.mrb[57].mxu0 }
 0x223   : > { %v1581_v35 = vadd.f32 %v3288_v16, %v1580_v9  ;;  %v2810_v43 = vpop.f32.mrb[58].mxu0 }
 0x224   : > { %v1592_v37 = vadd.f32 %v2810_v43, %v3288_v16  ;;  %v1583_v58 = vpop.f32.mrb[59].mxu0  ;;  %v2008_v25 = vmul.f32 %v2383_v34, %v1589_v32  ;;  %v1856_v34 = vadd.s32 152, %v3273_v5 }
 0x225   : > { %v2006_v47 = vmul.f32 %v2381_v33, %v1581_v35  ;;  %v1584_v39 = vadd.f32 %v3288_v16, %v1583_v58  ;;  %v1886_v58 = vadd.s32 %v3275_v26, %v1853_v12 }
 0x226   : > { %v2468_v41 = vpack.c.bf16 %v1592_v37, %v1589_v32  ;;  %v2009_v59 = vmul.f32 %v2384_v42, %v1592_v37  ;;  %v2077_v57 = vmul.f32 %v2008_v25, %v1589_v32  ;;  %v1889_v44 = vadd.s32 %v3275_v26, %v1856_v34 }
 0x227   : > { %v2037_v8 = vadd.f32 %v2036_v28, %v2006_v47  ;;  %v2075_v45 = vmul.f32 %v2006_v47, %v1581_v35  ;;  %v2463_v48 = vpack.c.bf16 %v1584_v39, %v1581_v35  ;;  %v2007_v55 = vmul.f32 %v2382_v38, %v1584_v39 }
 0x228   : > { %2524 = vst [vmem:[%s3301_s12 + $0x28] sm:$0xff] %v2468_v41   ;;  %v2078_v3 = vmul.f32 %v2009_v59, %v1592_v37  ;;  %v1887_v41 = vadd.s32 %v3275_v26, %v1854_v46  ;;  %vm1918_vm0 = vcmp.lt.s32.totalorder %v1886_v58, 512  ;;  %vm1921_vm3 = vcmp.lt.s32.totalorder %v1889_v44, 512 }
 0x229   : > { %v2106_v53 = vadd.f32 %v2105_v29, %v2075_v45  ;;  %2523 = vst [vmem:[%s3301_s12 + $0x20] sm:$0xff] %v2463_v48   ;;  %v2038_v54 = vadd.f32 %v2037_v8, %v2007_v55  ;;  %v2076_v21 = vmul.f32 %v2007_v55, %v1584_v39  ;;  %v1855_v29 = vadd.s32 144, %v3273_v5 }
 0x22a   : > { %vm1919_vm2 = vcmp.lt.s32.totalorder %v1887_v41, 512  ;;  %v2389_v55 = vsel %vm1918_vm0, 1.0, %v2940_v17  ;;  %v2392_v60 = vsel %vm1921_vm3, 1.0, %v2940_v17  ;;  %v1862_v44 = vadd.s32 200, %v3273_v5 }
 0x22b   : > { %v2039_v40 = vadd.f32 %v2038_v54, %v2008_v25  ;;  %v2107_v52 = vadd.f32 %v2106_v53, %v2076_v21  ;;  %v1888_v38 = vadd.s32 %v3275_v26, %v1855_v29  ;;  %v2390_v21 = vsel %vm1919_vm2, 1.0, %v2940_v17 }
 0x22d   : > { %v2108_v31 = vadd.f32 %v2107_v52, %v2077_v57  ;;  %v2040_v18 = vadd.f32 %v2039_v40, %v2009_v59  ;;  %vm1920_vm1 = vcmp.lt.s32.totalorder %v1888_v38, 512  ;;  %v1861_v38 = vadd.s32 192, %v3273_v5 }
 0x22e   : > { %v2391_v50 = vsel %vm1920_vm1, 1.0, %v2940_v17 }
 0x22f   : > { %v2109_v63 = vadd.f32 %v2108_v31, %v2078_v3 }
 0x231   : > { %v2813_v4 = vpop.f32.mrb[60].mxu0 }
 0x232   : > { %v1605_v10 = vadd.f32 %v2813_v4, %v3288_v16  ;;  %v1596_v15 = vpop.f32.mrb[61].mxu0 }
 0x233   : > { %v1597_v13 = vadd.f32 %v3288_v16, %v1596_v15  ;;  %v2814_v61 = vpop.f32.mrb[62].mxu0 }
 0x234   : > { %v1608_v1 = vadd.f32 %v2814_v61, %v3288_v16  ;;  %v1599_v36 = vpop.f32.mrb[63].mxu0  ;;  %v2012_v22 = vmul.f32 %v2387_v19, %v1605_v10  ;;  %v1860_v19 = vadd.s32 184, %v3273_v5 }
 0x235   : > { %v2010_v0 = vmul.f32 %v2385_v11, %v1597_v13  ;;  %v1600_v20 = vadd.f32 %v3288_v16, %v1599_v36  ;;  %v1890_v36 = vadd.s32 %v3275_v26, %v1857_v62 }
 0x236   : > { %v2478_v23 = vpack.c.bf16 %v1608_v1, %v1605_v10  ;;  %v2013_v32 = vmul.f32 %v2388_v24, %v1608_v1  ;;  %v2081_v35 = vmul.f32 %v2012_v22, %v1605_v10  ;;  %v1893_v12 = vadd.s32 %v3275_v26, %v1860_v19 }
 0x237   : > { %v2041_v6 = vadd.f32 %v2040_v18, %v2010_v0  ;;  %v2079_v27 = vmul.f32 %v2010_v0, %v1597_v13  ;;  %v2473_v28 = vpack.c.bf16 %v1600_v20, %v1597_v13  ;;  %v2011_v14 = vmul.f32 %v2386_v49, %v1600_v20 }
 0x238   : > { %2526 = vst [vmem:[%s3301_s12 + $0x38] sm:$0xff] %v2478_v23   ;;  %v2082_v47 = vmul.f32 %v2013_v32, %v1608_v1  ;;  %v1891_v23 = vadd.s32 %v3275_v26, %v1858_v2  ;;  %vm1922_vm4 = vcmp.lt.s32.totalorder %v1890_v36, 512  ;;  %vm1925_vm7 = vcmp.lt.s32.totalorder %v1893_v12, 512 }
 0x239   : > { %v2110_v30 = vadd.f32 %v2109_v63, %v2079_v27  ;;  %2525 = vst [vmem:[%s3301_s12 + $0x30] sm:$0xff] %v2473_v28   ;;  %v2042_v9 = vadd.f32 %v2041_v6, %v2011_v14  ;;  %v2080_v33 = vmul.f32 %v2011_v14, %v1600_v20  ;;  %v1859_v63 = vadd.s32 176, %v3273_v5 }
 0x23a   : > { %vm1923_vm6 = vcmp.lt.s32.totalorder %v1891_v23, 512  ;;  %v2393_v14 = vsel %vm1922_vm4, 1.0, %v2940_v17  ;;  %v2396_v58 = vsel %vm1925_vm7, 1.0, %v2940_v17  ;;  %v1866_v12 = vadd.s32 232, %v3273_v5 }
 0x23b   : > { %v2043_v43 = vadd.f32 %v2042_v9, %v2012_v22  ;;  %v2111_v37 = vadd.f32 %v2110_v30, %v2080_v33  ;;  %v1892_v49 = vadd.s32 %v3275_v26, %v1859_v63  ;;  %v2394_v33 = vsel %vm1923_vm6, 1.0, %v2940_v17 }
 0x23d   : > { %v2112_v39 = vadd.f32 %v2111_v37, %v2081_v35  ;;  %v2044_v25 = vadd.f32 %v2043_v43, %v2013_v32  ;;  %vm1924_vm5 = vcmp.lt.s32.totalorder %v1892_v49, 512  ;;  %v1865_v49 = vadd.s32 224, %v3273_v5 }
 0x23e   : > { %v2395_v29 = vsel %vm1924_vm5, 1.0, %v2940_v17 }
 0x23f   : > { %v2113_v42 = vadd.f32 %v2112_v39, %v2082_v47 }
 0x241   : > { %v2817_v8 = vpop.f32.mrb[64].mxu0 }
 0x242   : > { %v1621_v45 = vadd.f32 %v2817_v8, %v3288_v16  ;;  %v1612_v48 = vpop.f32.mrb[65].mxu0 }
 0x243   : > { %v1613_v51 = vadd.f32 %v3288_v16, %v1612_v48  ;;  %v2818_v53 = vpop.f32.mrb[66].mxu0 }
 0x244   : > { %v1624_v59 = vadd.f32 %v2818_v53, %v3288_v16  ;;  %v1615_v54 = vpop.f32.mrb[67].mxu0  ;;  %v2016_v40 = vmul.f32 %v2391_v50, %v1621_v45  ;;  %v1864_v50 = vadd.s32 216, %v3273_v5 }
 0x245   : > { %v2014_v56 = vmul.f32 %v2389_v55, %v1613_v51  ;;  %v1616_v57 = vadd.f32 %v3288_v16, %v1615_v54  ;;  %v1894_v54 = vadd.s32 %v3275_v26, %v1861_v38 }
 0x246   : > { %v2488_v52 = vpack.c.bf16 %v1624_v59, %v1621_v45  ;;  %v2017_v10 = vmul.f32 %v2392_v60, %v1624_v59  ;;  %v2085_v13 = vmul.f32 %v2016_v40, %v1621_v45  ;;  %v1897_v62 = vadd.s32 %v3275_v26, %v1864_v50 }
 0x247   : > { %v2045_v3 = vadd.f32 %v2044_v25, %v2014_v56  ;;  %v2083_v31 = vmul.f32 %v2014_v56, %v1613_v51  ;;  %v2483_v18 = vpack.c.bf16 %v1616_v57, %v1613_v51  ;;  %v2015_v7 = vmul.f32 %v2390_v21, %v1616_v57 }
 0x248   : > { %2528 = vst [vmem:[%s3301_s12 + $0x48] sm:$0xff] %v2488_v52   ;;  %v2086_v0 = vmul.f32 %v2017_v10, %v1624_v59  ;;  %v1895_v52 = vadd.s32 %v3275_v26, %v1862_v44  ;;  %vm1926_vm8 = vcmp.lt.s32.totalorder %v1894_v54, 512  ;;  %vm1929_vm11 = vcmp.lt.s32.totalorder %v1897_v62, 512 }
 0x249   : > { %v2114_v4 = vadd.f32 %v2113_v42, %v2083_v31  ;;  %2527 = vst [vmem:[%s3301_s12 + $0x40] sm:$0xff] %v2483_v18   ;;  %v2046_v15 = vadd.f32 %v2045_v3, %v2015_v7  ;;  %v2084_v11 = vmul.f32 %v2015_v7, %v1616_v57  ;;  %v1863_v42 = vadd.s32 208, %v3273_v5 }
 0x24a   : > { %vm1927_vm10 = vcmp.lt.s32.totalorder %v1895_v52, 512  ;;  %v2397_v7 = vsel %vm1926_vm8, 1.0, %v2940_v17  ;;  %v2400_v36 = vsel %vm1929_vm11, 1.0, %v2940_v17 }
 0x24b   : > { %v2047_v61 = vadd.f32 %v2046_v15, %v2016_v40  ;;  %v2115_v1 = vadd.f32 %v2114_v4, %v2084_v11  ;;  %v1896_v21 = vadd.s32 %v3275_v26, %v1863_v42  ;;  %v2398_v11 = vsel %vm1927_vm10, 1.0, %v2940_v17 }
 0x24d   : > { %v2116_v20 = vadd.f32 %v2115_v1, %v2085_v13  ;;  %v2048_v22 = vadd.f32 %v2047_v61, %v2017_v10  ;;  %vm1928_vm9 = vcmp.lt.s32.totalorder %v1896_v21, 512 }
 0x24e   : > { %v2399_v63 = vsel %vm1928_vm9, 1.0, %v2940_v17 }
 0x24f   : > { %v2117_v24 = vadd.f32 %v2116_v20, %v2086_v0 }
 0x251   : > { %v2821_v6 = vpop.f32.mrb[68].mxu0 }
 0x252   : > { %v1637_v27 = vadd.f32 %v2821_v6, %v3288_v16  ;;  %v1628_v28 = vpop.f32.mrb[69].mxu0 }
 0x253   : > { %v1629_v46 = vadd.f32 %v3288_v16, %v1628_v28  ;;  %v2822_v30 = vpop.f32.mrb[70].mxu0 }
 0x254   : > { %v1640_v32 = vadd.f32 %v2822_v30, %v3288_v16  ;;  %v1631_v9 = vpop.f32.mrb[71].mxu0  ;;  %v2020_v43 = vmul.f32 %v2395_v29, %v1637_v27  ;;  %v1868_v29 = vadd.s32 248, %v3273_v5 }
 0x255   : > { %v2018_v34 = vmul.f32 %v2393_v14, %v1629_v46  ;;  %v1632_v35 = vadd.f32 %v3288_v16, %v1631_v9  ;;  %v1898_v9 = vadd.s32 %v3275_v26, %v1865_v49 }
 0x256   : > { %v2498_v37 = vpack.c.bf16 %v1640_v32, %v1637_v27  ;;  %v2021_v45 = vmul.f32 %v2396_v58, %v1640_v32  ;;  %v2089_v51 = vmul.f32 %v2020_v43, %v1637_v27  ;;  %v1901_v38 = vadd.s32 %v3275_v26, %v1868_v29 }
 0x257   : > { %v2049_v47 = vadd.f32 %v2048_v22, %v2018_v34  ;;  %v2087_v39 = vmul.f32 %v2018_v34, %v1629_v46  ;;  %v2493_v25 = vpack.c.bf16 %v1632_v35, %v1629_v46  ;;  %v2019_v41 = vmul.f32 %v2394_v33, %v1632_v35 }
 0x258   : > { %2530 = vst [vmem:[%s3301_s12 + $0x58] sm:$0xff] %v2498_v37   ;;  %v2090_v56 = vmul.f32 %v2021_v45, %v1640_v32  ;;  %v1899_v37 = vadd.s32 %v3275_v26, %v1866_v12  ;;  %vm1930_vm12 = vcmp.lt.s32.totalorder %v1898_v9, 512  ;;  %vm1933_vm15 = vcmp.lt.s32.totalorder %v1901_v38, 512 }
 0x259   : > { %v2118_v8 = vadd.f32 %v2117_v24, %v2087_v39  ;;  %2529 = vst [vmem:[%s3301_s12 + $0x50] sm:$0xff] %v2493_v25   ;;  %v2050_v48 = vadd.f32 %v2049_v47, %v2019_v41  ;;  %v2088_v55 = vmul.f32 %v2019_v41, %v1632_v35  ;;  %v1867_v24 = vadd.s32 240, %v3273_v5 }
 0x25a   : > { %vm1931_vm14 = vcmp.lt.s32.totalorder %v1899_v37, 512  ;;  %v2401_v25 = vsel %vm1930_vm12, 1.0, %v2940_v17 }
 0x25b   : > { %v2051_v53 = vadd.f32 %v2050_v48, %v2020_v43  ;;  %v2119_v59 = vadd.f32 %v2118_v8, %v2088_v55  ;;  %v1900_v33 = vadd.s32 %v3275_v26, %v1867_v24  ;;  %v2402_v26 = vsel %vm1931_vm14, 1.0, %v2940_v17 }
 0x25d   : > { %v2120_v57 = vadd.f32 %v2119_v59, %v2089_v51  ;;  %v2052_v40 = vadd.f32 %v2051_v53, %v2021_v45  ;;  %vm1932_vm13 = vcmp.lt.s32.totalorder %v1900_v33, 512  ;;  %v2404_v53 = vsel %vm1933_vm15, 1.0, %v2940_v17 }
 0x25e   : > { %v2403_v41 = vsel %vm1932_vm13, 1.0, %v2940_v17 }
 0x25f   : > { %v2121_v60 = vadd.f32 %v2120_v57, %v2090_v56 }
 0x261   : > { %v2825_v3 = vpop.f32.mrb[72].mxu0 }
 0x262   : > { %v1653_v31 = vadd.f32 %v2825_v3, %v3288_v16  ;;  %v1644_v18 = vpop.f32.mrb[73].mxu0 }
 0x263   : > { %v1645_v2 = vadd.f32 %v3288_v16, %v1644_v18  ;;  %v2826_v4 = vpop.f32.mrb[74].mxu0 }
 0x264   : > { %v1656_v10 = vadd.f32 %v2826_v4, %v3288_v16  ;;  %v1647_v15 = vpop.f32.mrb[75].mxu0  ;;  %v2024_v61 = vmul.f32 %v2399_v63, %v1653_v31 }
 0x265   : > { %v2022_v19 = vmul.f32 %v2397_v7, %v1645_v2  ;;  %v1648_v13 = vadd.f32 %v3288_v16, %v1647_v15 }
 0x266   : > { %v2508_v1 = vpack.c.bf16 %v1656_v10, %v1653_v31  ;;  %v2025_v27 = vmul.f32 %v2400_v36, %v1656_v10  ;;  %v2093_v46 = vmul.f32 %v2024_v61, %v1653_v31 }
 0x267   : > { %v2053_v0 = vadd.f32 %v2052_v40, %v2022_v19  ;;  %v2091_v20 = vmul.f32 %v2022_v19, %v1645_v2  ;;  %v2503_v22 = vpack.c.bf16 %v1648_v13, %v1645_v2  ;;  %v2023_v23 = vmul.f32 %v2398_v11, %v1648_v13 }
 0x268   : > { %2532 = vst [vmem:[%s3301_s12 + $0x68] sm:$0xff] %v2508_v1   ;;  %v2094_v34 = vmul.f32 %v2025_v27, %v1656_v10 }
 0x269   : > { %v2122_v6 = vadd.f32 %v2121_v60, %v2091_v20  ;;  %2531 = vst [vmem:[%s3301_s12 + $0x60] sm:$0xff] %v2503_v22   ;;  %v2054_v28 = vadd.f32 %v2053_v0, %v2023_v23  ;;  %v2092_v14 = vmul.f32 %v2023_v23, %v1648_v13 }
 0x26b   : > { %v2055_v30 = vadd.f32 %v2054_v28, %v2024_v61  ;;  %v2123_v32 = vadd.f32 %v2122_v6, %v2092_v14 }
 0x26d   : > { %v2124_v35 = vadd.f32 %v2123_v32, %v2093_v46  ;;  %v2056_v43 = vadd.f32 %v2055_v30, %v2025_v27 }
 0x26f   : > { %v2125_v58 = vadd.f32 %v2124_v35, %v2094_v34 }
 0x271   : > { %v2829_v47 = vpop.f32.mrb[76].mxu0 }
 0x272   : > { %v1669_v5 = vadd.f32 %v2829_v47, %v3288_v16  ;;  %v1660_v39 = vpop.f32.mrb[77].mxu0 }
 0x273   : > { %v1661_v42 = vadd.f32 %v3288_v16, %v1660_v39  ;;  %v2830_v44 = vpop.f32.mrb[78].mxu0 }
 0x274   : > { %v1672_v8 = vadd.f32 %v2830_v44, %v3288_v16  ;;  %v1663_v45 = vpop.f32.mrb[79].mxu0  ;;  %v2028_v50 = vmul.f32 %v2403_v41, %v1669_v5 }
 0x275   : > { %v2026_v48 = vmul.f32 %v2401_v25, %v1661_v42  ;;  %v1664_v55 = vadd.f32 %v3288_v16, %v1663_v45 }
 0x276   : > { %v2518_v51 = vpack.c.bf16 %v1672_v8, %v1669_v5  ;;  %v2029_v40 = vmul.f32 %v2404_v53, %v1672_v8  ;;  %v2097_v62 = vmul.f32 %v2028_v50, %v1669_v5 }
 0x277   : > { %v2057_v59 = vadd.f32 %v2056_v43, %v2026_v48  ;;  %v2095_v54 = vmul.f32 %v2026_v48, %v1661_v42  ;;  %v2513_v21 = vpack.c.bf16 %v1664_v55, %v1661_v42  ;;  %v2027_v56 = vmul.f32 %v2402_v26, %v1664_v55 }
 0x278   : > { %2534 = vst [vmem:[%s3301_s12 + $0x78] sm:$0xff] %v2518_v51   ;;  %v2098_v16 = vmul.f32 %v2029_v40, %v1672_v8 }
 0x279   : > { %v2126_v57 = vadd.f32 %v2125_v58, %v2095_v54  ;;  %2533 = vst [vmem:[%s3301_s12 + $0x70] sm:$0xff] %v2513_v21   ;;  %v2058_v52 = vadd.f32 %v2057_v59, %v2027_v56  ;;  %v2096_v60 = vmul.f32 %v2027_v56, %v1664_v55 }
 0x27b   : > { %v2059_v3 = vadd.f32 %v2058_v52, %v2028_v50  ;;  %v2127_v31 = vadd.f32 %v2126_v57, %v2096_v60 }
 0x27d   : > { %v2060_v18 = vadd.f32 %v2059_v3, %v2029_v40  ;;  %v2128_v7 = vadd.f32 %v2127_v31, %v2097_v62 }
 0x27f   : > { %v2061_v63 = vrot.slane %v2060_v18, 4  ;;  %v2129_v17 = vadd.f32 %v2128_v7, %v2098_v16 }
 0x281   : > { %v2062_v2 = vadd.f32 %v2061_v63, %v2060_v18  ;;  %v2130_v4 = vrot.slane %v2129_v17, 4 }
 0x283   : > { %v2063_v10 = vrot.slane %v2062_v2, 2  ;;  %v2131_v15 = vadd.f32 %v2130_v4, %v2129_v17 }
 0x285   : > { %v2064_v11 = vadd.f32 %v2063_v10, %v2062_v2  ;;  %v2132_v19 = vrot.slane %v2131_v15, 2 }
 0x287   : > { %v2065_v13 = vrot.slane %v2064_v11, 1  ;;  %v2133_v61 = vadd.f32 %v2132_v19, %v2131_v15 }
 0x289   : > { %v2066_v1 = vadd.f32 %v2065_v13, %v2064_v11  ;;  %v2134_v36 = vrot.slane %v2133_v61, 1 }
 0x28b   : > { %v2135_v49 = vadd.f32 %v2134_v36, %v2133_v61  ;;  %2136 = vst [vmem:[%s351_s15] sm:$0xff] %v2066_v1 }
 0x28d   : > { %2137 = vst [vmem:[%s355_s18] sm:$0xff] %v2135_v49 }
 0x28e PF: > { %s18_s26 = sadd.s32 1, %s2937_s26   ;;  %s3457_s24 = smov %s2933_s25 }
 0x28f   : > { %p15_p7 = scmp.ge.s32.totalorder %s18_s26, 4   ;;  %s3458_s25 = smov %s3460_s27 }
 0x291   :  { %17 = sbr.rel (!%p15_p7) target bundleno = 2 (0x2), region = 106 }

// kernel: a_call__.8
= control target key start
LH: loop header
LB: loop body
LE: loop exit
PB: predicated region body
PF: predicated region fallthrough
CT: control target
= control target key end

     0   :  { %s2637_s21 = smov 0   ;;  %s2639_s22 = smov 0   ;;  %s3035_s0 = inlined_call_operand.vmem [shape: s8[512,512], index: 0, kind: input, shape index: {}]   ;;  %s3036_s1 = inlined_call_operand.vmem [shape: bf16[512,128], index: 1, kind: input, shape index: {}]   ;;  %s3037_s2 = inlined_call_operand.vmem [shape: f32[512,1], index: 2, kind: input, shape index: {}]   ;;  %s3038_s3 = inlined_call_operand.vmem [shape: f32[1,128], index: 3, kind: input, shape index: {}]   ;;  %s3039_s4 = inlined_call_operand.vmem [shape: bf16[512,128], index: 4, kind: output, shape index: {0}]   ;;  %s3040_s5 = inlined_call_operand.vmem [shape: f32[16,128], index: 5, kind: output, shape index: {1}]   ;;  %s3041_s6 = inlined_call_operand.vmem [shape: f32[16,128], index: 6, kind: output, shape index: {2}]  }
   0x1   :  { %s2641_s23 = smov 0  }
   0x2 LB: > { %s29_s24 = sadd.s32 1, %s2594_s22  ;;  %p2053_p0 = scmp.ge.s32.totalorder %s2598_s23, 1  ;;  %s2598_s23 = sphi %s2641_s23, %s17_s23   ;;  %s2594_s22 = sphi %s2639_s22, %s3043_s22   ;;  %s2590_s21 = sphi %s2637_s21, %s3042_s21  }
   0x3   : > { %p31_p1 = scmp.ge.s32.totalorder %s29_s24, 2  ;;  %p249_p2 = scmp.lt.s32.totalorder %s2598_s23, 3 }
   0x5   : > { %s3045_s24 = smov (%p31_p1, %s29_s24), 0  ;;  %p250_p3 = pnand %p2053_p0, %p249_p2 }
   0x6   : > { %v2543_v0 = vld [vmem:[%s3036_s1 + $0x40] sm:$0xff] (!%p250_p3)   ;;  %v2600_v4 = vmov (!%p250_p3), 0   ;;  %v2547_v5 = vld [vmem:[%s3036_s1 + $0x48] sm:$0xff] (!%p250_p3)   ;;  %v2551_v9 = vld [vmem:[%s3036_s1 + $0x50] sm:$0xff] (!%p250_p3)   ;;  %s2054_s11 = sshll.u32 (!%p250_p3), %s2590_s21, 3  ;;  %s2057_s10 = sshll.u32 (!%p250_p3), %s2590_s21, 5 }
   0x7   : > { %253 = sbr.rel (%p250_p3) target bundleno = 404 (0x194), region = 36  ;;  %v2544_v1 = vld [vmem:[%s3036_s1 + $0xc0] sm:$0xff] (!%p250_p3)   ;;  %2291 = vmatprep.subr.bf16.mxu0 (!%p250_p3), %v2543_v0  ;;  %2541 = vset.pattern.permute.xlu0 (!%p250_p3), %v2600_v4  ;;  %v2548_v6 = vld [vmem:[%s3036_s1 + $0xc8] sm:$0xff] (!%p250_p3)   ;;  %v2552_v10 = vld [vmem:[%s3036_s1 + $0xd0] sm:$0xff] (!%p250_p3)   ;;  %p299_p4 = scmp.lt.s32.totalorder (!%p250_p3), %s2054_s11, 15 }
   0x8   : > { %v2545_v2 = vld [vmem:[%s3036_s1] sm:$0xff] (!%p250_p3)   ;;  %2403 = vmatprep.subr.bf16.mxu1 (!%p250_p3), %v2544_v1  ;;  %2542 = vset.pattern.permute.xlu1 (!%p250_p3), %v2600_v4  ;;  %v2549_v7 = vld [vmem:[%s3036_s1 + $0x8] sm:$0xff] (!%p250_p3)   ;;  %v2553_v11 = vld [vmem:[%s3036_s1 + $0x10] sm:$0xff] (!%p250_p3)   ;;  %p310_p5 = scmp.lt.s32.totalorder (!%p250_p3), %s2057_s10, 63  ;;  %s2128_s17 = sshll.u32 (!%p250_p3), %s2590_s21, 8 }
   0x9   : > { %v2546_v3 = vld [vmem:[%s3036_s1 + $0x80] sm:$0xff] (!%p250_p3)   ;;  %2292 = vmatpush3.bf16.msra.mxu0 (!%p250_p3), %v2545_v2  ;;  %v2550_v8 = vld [vmem:[%s3036_s1 + $0x88] sm:$0xff] (!%p250_p3)   ;;  %v2554_v12 = vld [vmem:[%s3036_s1 + $0x90] sm:$0xff] (!%p250_p3)   ;;  %p321_p6 = scmp.lt.s32.totalorder (!%p250_p3), %s2590_s21, 1 }
   0xa   : > { %2404 = vmatpush3.bf16.msra.mxu1 (!%p250_p3), %v2546_v3  ;;  %2293 = vmatprep.subr.bf16.mxu0 (!%p250_p3), %v2547_v5  ;;  %v2555_v13 = vld [vmem:[%s3036_s1 + $0x58] sm:$0xff] (!%p250_p3)   ;;  %v2559_v17 = vld [vmem:[%s3036_s1 + $0x60] sm:$0xff] (!%p250_p3)   ;;  %v2563_v21 = vld [vmem:[%s3036_s1 + $0x68] sm:$0xff] (!%p250_p3)  }
   0xb   : > { %2405 = vmatprep.subr.bf16.mxu1 (!%p250_p3), %v2548_v6  ;;  %v2556_v14 = vld [vmem:[%s3036_s1 + $0xd8] sm:$0xff] (!%p250_p3)   ;;  %v2560_v18 = vld [vmem:[%s3036_s1 + $0xe0] sm:$0xff] (!%p250_p3)   ;;  %v2564_v22 = vld [vmem:[%s3036_s1 + $0xe8] sm:$0xff] (!%p250_p3)  }
   0xc   : > { %v2557_v15 = vld [vmem:[%s3036_s1 + $0x18] sm:$0xff] (!%p250_p3)   ;;  %v2561_v19 = vld [vmem:[%s3036_s1 + $0x20] sm:$0xff] (!%p250_p3)   ;;  %v2565_v23 = vld [vmem:[%s3036_s1 + $0x28] sm:$0xff] (!%p250_p3)  }
   0xd   : > { %2294 = vmatpush3.bf16.msra.mxu0 (!%p250_p3), %v2549_v7  ;;  %v2558_v16 = vld [vmem:[%s3036_s1 + $0x98] sm:$0xff] (!%p250_p3)   ;;  %v2562_v20 = vld [vmem:[%s3036_s1 + $0xa0] sm:$0xff] (!%p250_p3)   ;;  %v2566_v24 = vld [vmem:[%s3036_s1 + $0xa8] sm:$0xff] (!%p250_p3)  }
   0xe   : > { %2406 = vmatpush3.bf16.msra.mxu1 %v2550_v8  ;;  %2295 = vmatprep.subr.bf16.mxu0 %v2551_v9  ;;  %s3047_s11 = smov (!%p299_p4, %s2054_s11), 15  ;;  %v2567_v25 = vld [vmem:[%s3036_s1 + $0x70] sm:$0xff]   ;;  %v2571_v29 = vld [vmem:[%s3036_s1 + $0x78] sm:$0xff]   ;;  %s3049_s10 = smov (!%p310_p5, %s2057_s10), 63 }
   0xf   : > { %2407 = vmatprep.subr.bf16.mxu1 %v2552_v10  ;;  %v2568_v26 = vld [vmem:[%s3036_s1 + $0xf0] sm:$0xff]   ;;  %s2163_s16 = sshll.u32 %s3047_s11, 5  ;;  %v2572_v30 = vld [vmem:[%s3036_s1 + $0xf8] sm:$0xff]   ;;  %s2058_s13 = sshll.u32 %s3049_s10, 3 }
  0x10   : > { %v2569_v27 = vld [vmem:[%s3036_s1 + $0x30] sm:$0xff]   ;;  %s2752_s30 = scalar_lea.vmem %s3035_s0, %s2163_s16  ;;  %v2573_v31 = vld [vmem:[%s3036_s1 + $0x38] sm:$0xff]   ;;  %s2770_s16 = scalar_lea.vmem %s3037_s2, %s2058_s13 }
  0x11   : > { %2296 = vmatpush3.bf16.msra.mxu0 %v2553_v11  ;;  %v2570_v28 = vld [vmem:[%s3036_s1 + $0xb0] sm:$0xff]   ;;  %v2574_v32 = vld [vmem:[%s3036_s1 + $0xb8] sm:$0xff]   ;;  %v367_v33 = vld [vmem:[%s2752_s30 + $0x8] sm:$0xff]  ;;  %s2060_s20 = sshll.u32 %s3049_s10, 2  ;;  %s3051_s21 = smov (!%p321_p6, %s2590_s21), 1 }
  0x12   : > { %2408 = vmatpush3.bf16.msra.mxu1 %v2554_v12  ;;  %2297 = vmatprep.subr.bf16.mxu0 %v2555_v13  ;;  %v369_v34 = vld [vmem:[%s2752_s30 + $0x18] sm:$0xff]  ;;  %v366_v35 = vld [vmem:[%s2752_s30] sm:$0xff]  ;;  %v399_v36 = vunpack.c.l.s8.bf16 %v367_v33  ;;  %v403_v37 = vunpack.c.h.s8.bf16 %v367_v33  ;;  %v368_v40 = vld [vmem:[%s2752_s30 + $0x10] sm:$0xff]  ;;  %s2859_s10 = scalar_lea.vmem %s3039_s4, %s2060_s20  ;;  %s2061_s11 = sshll.u32 %s3051_s21, 3 }
  0x13   : > { %2409 = vmatprep.subr.bf16.mxu1 %v2556_v14  ;;  %v401_v38 = vunpack.c.l.s8.bf16 %v369_v34  ;;  %v405_v39 = vunpack.c.h.s8.bf16 %v369_v34  ;;  %v398_v41 = vunpack.c.l.s8.bf16 %v366_v35  ;;  %v400_v42 = vunpack.c.l.s8.bf16 %v368_v40  ;;  %v371_v43 = vld [vmem:[%s2752_s30 + $0x28] sm:$0xff]  ;;  %v373_v44 = vld [vmem:[%s2752_s30 + $0x38] sm:$0xff]  ;;  %v1176_v47 = vld [vmem:[%s2770_s16] sm:$0xff]  ;;  %s324_s7 = scalar_lea.vmem %s3040_s5, %s2061_s11  ;;  %s328_s12 = scalar_lea.vmem %s3041_s6, %s2061_s11 }
  0x14   : > { %787 = vmatprep.mubr.bf16.mxu0 %v399_v36  ;;  %v402_v45 = vunpack.c.h.s8.bf16 %v366_v35  ;;  %v404_v46 = vunpack.c.h.s8.bf16 %v368_v40  ;;  %v1178_v48 = vld [vmem:[%s2770_s16 + $0x10] sm:$0xff]  ;;  %v407_v49 = vunpack.c.l.s8.bf16 %v371_v43  ;;  %v409_v50 = vunpack.c.l.s8.bf16 %v373_v44  ;;  %1210 = vperm.xlu0 %2541, %v1176_v47   ;;  %v1177_v51 = vld [vmem:[%s2770_s16 + $0x8] sm:$0xff]  ;;  %v1179_v52 = vld [vmem:[%s2770_s16 + $0x18] sm:$0xff] }
  0x15   : > { %2298 = vmatpush3.bf16.msra.mxu0 %v2557_v15  ;;  %948 = vmatprep.mubr.bf16.mxu1 %v401_v38  ;;  %v370_v53 = vld [vmem:[%s2752_s30 + $0x20] sm:$0xff]  ;;  %v372_v54 = vld [vmem:[%s2752_s30 + $0x30] sm:$0xff]  ;;  %v1181_v56 = vld [vmem:[%s2770_s16 + $0x28] sm:$0xff]  ;;  %v411_v59 = vunpack.c.h.s8.bf16 %v371_v43  ;;  %v413_v60 = vunpack.c.h.s8.bf16 %v373_v44 }
  0x16   : > { %2410 = vmatpush3.bf16.msra.mxu1 %v2558_v16  ;;  %2299 = vmatprep.subr.bf16.mxu0 %v2559_v17  ;;  %v1180_v55 = vld [vmem:[%s2770_s16 + $0x20] sm:$0xff]  ;;  %v406_v57 = vunpack.c.l.s8.bf16 %v370_v53  ;;  %v408_v58 = vunpack.c.l.s8.bf16 %v372_v54  ;;  %v1182_v61 = vld [vmem:[%s2770_s16 + $0x30] sm:$0xff]  ;;  %v1183_v62 = vld [vmem:[%s2770_s16 + $0x38] sm:$0xff]  ;;  %v410_v3 = vunpack.c.h.s8.bf16 %v370_v53  ;;  %v412_v4 = vunpack.c.h.s8.bf16 %v372_v54 }
  0x17   : > { %2411 = vmatprep.subr.bf16.mxu1 %v2560_v18  ;;  %1220 = vperm.xlu1 %2542, %v1178_v48   ;;  %v375_v63 = vld [vmem:[%s2752_s30 + $0x48] sm:$0xff]  ;;  %v377_v0 = vld [vmem:[%s2752_s30 + $0x58] sm:$0xff]  ;;  %v1184_v1 = vld [vmem:[%s2770_s16 + $0x40] sm:$0xff] }
  0x18   : > { %1215 = vperm.xlu0 %2541, %v1177_v51   ;;  %v1185_v2 = vld [vmem:[%s2770_s16 + $0x48] sm:$0xff]  ;;  %v415_v5 = vunpack.c.l.s8.bf16 %v375_v63  ;;  %v417_v6 = vunpack.c.l.s8.bf16 %v377_v0  ;;  %v1186_v7 = vld [vmem:[%s2770_s16 + $0x50] sm:$0xff]  ;;  %v1187_v8 = vld [vmem:[%s2770_s16 + $0x58] sm:$0xff]  ;;  %v419_v15 = vunpack.c.h.s8.bf16 %v375_v63  ;;  %v421_v16 = vunpack.c.h.s8.bf16 %v377_v0 }
  0x19   : > { %2300 = vmatpush3.bf16.msra.mxu0 %v2561_v19  ;;  %v374_v9 = vld [vmem:[%s2752_s30 + $0x40] sm:$0xff]  ;;  %v376_v10 = vld [vmem:[%s2752_s30 + $0x50] sm:$0xff]  ;;  %v1189_v12 = vld [vmem:[%s2770_s16 + $0x68] sm:$0xff] }
  0x1a   : > { %2412 = vmatpush3.bf16.msra.mxu1 %v2562_v20  ;;  %2301 = vmatprep.subr.bf16.mxu0 %v2563_v21  ;;  %v1188_v11 = vld [vmem:[%s2770_s16 + $0x60] sm:$0xff]  ;;  %v414_v13 = vunpack.c.l.s8.bf16 %v374_v9  ;;  %v416_v14 = vunpack.c.l.s8.bf16 %v376_v10  ;;  %v1190_v17 = vld [vmem:[%s2770_s16 + $0x70] sm:$0xff]  ;;  %v1191_v18 = vld [vmem:[%s2770_s16 + $0x78] sm:$0xff] }
  0x1b   : > { %2413 = vmatprep.subr.bf16.mxu1 %v2564_v22  ;;  %1225 = vperm.xlu1 %2542, %v1179_v52   ;;  %v379_v19 = vld [vmem:[%s2752_s30 + $0x68] sm:$0xff]  ;;  %v381_v20 = vld [vmem:[%s2752_s30 + $0x78] sm:$0xff]  ;;  %v1192_v21 = vld [vmem:[%s2770_s16 + $0x80] sm:$0xff] }
  0x1c   : > { %1230 = vperm.xlu0 %2541, %v1180_v55   ;;  %v1193_v22 = vld [vmem:[%s2770_s16 + $0x88] sm:$0xff]  ;;  %v427_v35 = vunpack.c.h.s8.bf16 %v379_v19  ;;  %v429_v36 = vunpack.c.h.s8.bf16 %v381_v20  ;;  %v1199_v38 = vld [vmem:[%s2770_s16 + $0xb8] sm:$0xff]  ;;  %v1202_v47 = vld [vmem:[%s2770_s16 + $0xd0] sm:$0xff] }
  0x1d   : > { %2302 = vmatpush3.bf16.msra.mxu0 %v2565_v23  ;;  %v418_v23 = vunpack.c.h.s8.bf16 %v374_v9  ;;  %v385_v40 = vld [vmem:[%s2752_s30 + $0x98] sm:$0xff]  ;;  %v1204_v51 = vld [vmem:[%s2770_s16 + $0xe0] sm:$0xff]  ;;  %v1205_v52 = vld [vmem:[%s2770_s16 + $0xe8] sm:$0xff] }
  0x1e   : > { %2414 = vmatpush3.bf16.msra.mxu1 %v2566_v24  ;;  %2303 = vmatprep.subr.bf16.mxu0 %v2567_v25  ;;  %v420_v24 = vunpack.c.h.s8.bf16 %v376_v10  ;;  %v423_v25 = vunpack.c.l.s8.bf16 %v379_v19  ;;  %v1203_v48 = vld [vmem:[%s2770_s16 + $0xd8] sm:$0xff]  ;;  %v395_v19 = vld [vmem:[%s2752_s30 + $0xe8] sm:$0xff] }
  0x1f   : > { %2415 = vmatprep.subr.bf16.mxu1 %v2568_v26  ;;  %1235 = vperm.xlu1 %2542, %v1181_v56   ;;  %v425_v26 = vunpack.c.l.s8.bf16 %v381_v20  ;;  %v437_v56 = vunpack.c.h.s8.bf16 %v385_v40  ;;  %v397_v20 = vld [vmem:[%s2752_s30 + $0xf8] sm:$0xff] }
  0x20   : > { %1240 = vperm.xlu0 %2541, %v1182_v61  }
  0x21   : > { %2304 = vmatpush3.bf16.msra.mxu0 %v2569_v27  ;;  %v1194_v27 = vld [vmem:[%s2770_s16 + $0x90] sm:$0xff] }
  0x22   : > { %2416 = vmatpush3.bf16.msra.mxu1 %v2570_v28  ;;  %2305 = vmatprep.subr.bf16.mxu0 %v2571_v29  ;;  %v1195_v28 = vld [vmem:[%s2770_s16 + $0x98] sm:$0xff]  ;;  %v378_v29 = vld [vmem:[%s2752_s30 + $0x60] sm:$0xff] }
  0x23   : > { %2417 = vmatprep.subr.bf16.mxu1 %v2572_v30  ;;  %1245 = vperm.xlu1 %2542, %v1183_v62   ;;  %v380_v30 = vld [vmem:[%s2752_s30 + $0x70] sm:$0xff]  ;;  %v422_v33 = vunpack.c.l.s8.bf16 %v378_v29  ;;  %v426_v43 = vunpack.c.h.s8.bf16 %v378_v29  ;;  %v459_v29 = vunpack.c.h.s8.bf16 %v395_v19 }
  0x24   : > { %1250 = vperm.xlu0 %2541, %v1184_v1   ;;  %v424_v34 = vunpack.c.l.s8.bf16 %v380_v30  ;;  %v428_v44 = vunpack.c.h.s8.bf16 %v380_v30  ;;  %v386_v1 = vld [vmem:[%s2752_s30 + $0xa0] sm:$0xff]  ;;  %v461_v30 = vunpack.c.h.s8.bf16 %v397_v20 }
  0x25   : > { %2306 = vmatpush3.bf16.msra.mxu0 %v2573_v31  ;;  %v1196_v31 = vld [vmem:[%s2770_s16 + $0xa0] sm:$0xff]  ;;  %v442_v9 = vunpack.c.h.s8.bf16 %v386_v1 }
  0x26   : > { %2418 = vmatpush3.bf16.msra.mxu1 %v2574_v32  ;;  %v1197_v32 = vld [vmem:[%s2770_s16 + $0xa8] sm:$0xff] }
  0x27   : > { %1255 = vperm.xlu1 %2542, %v1185_v2   ;;  %v388_v2 = vld [vmem:[%s2752_s30 + $0xb0] sm:$0xff] }
  0x28   : > { %788 = vmatmul.mubr.bf16.vlgmr.msra.gmra.mrb[0].mxu0 %v398_v41  ;;  %1260 = vperm.xlu0 %2541, %v1186_v7   ;;  %v1200_v41 = vld [vmem:[%s2770_s16 + $0xc0] sm:$0xff]  ;;  %v391_v7 = vld [vmem:[%s2752_s30 + $0xc8] sm:$0xff]  ;;  %v444_v10 = vunpack.c.h.s8.bf16 %v388_v2 }
  0x29   : > { %949 = vmatmul.mubr.bf16.vlgmr.msra.gmra.mrb[0].mxu1 %v400_v42  ;;  %795 = vmatprep.mubr.bf16.mxu0 %v403_v37  ;;  %v1198_v37 = vld [vmem:[%s2770_s16 + $0xb0] sm:$0xff]  ;;  %v1201_v42 = vld [vmem:[%s2770_s16 + $0xc8] sm:$0xff] }
  0x2a   : > { %956 = vmatprep.mubr.bf16.mxu1 %v405_v39  ;;  %v383_v39 = vld [vmem:[%s2752_s30 + $0x88] sm:$0xff] }
  0x2b   : > { %1265 = vperm.xlu1 %2542, %v1187_v8   ;;  %v435_v55 = vunpack.c.h.s8.bf16 %v383_v39  ;;  %v393_v8 = vld [vmem:[%s2752_s30 + $0xd8] sm:$0xff] }
  0x2c   : > { %1270 = vperm.xlu0 %2541, %v1188_v11   ;;  %v447_v11 = vunpack.c.l.s8.bf16 %v391_v7 }
  0x2f   : > { %1275 = vperm.xlu1 %2542, %v1189_v12   ;;  %v449_v12 = vunpack.c.l.s8.bf16 %v393_v8 }
  0x30   : > { %796 = vmatmul.mubr.bf16.gmra.mrb[4].mxu0 %v402_v45  ;;  %1280 = vperm.xlu0 %2541, %v1190_v17   ;;  %v431_v45 = vunpack.c.l.s8.bf16 %v383_v39  ;;  %v451_v17 = vunpack.c.h.s8.bf16 %v391_v7 }
  0x31   : > { %957 = vmatmul.mubr.bf16.gmra.mrb[4].mxu1 %v404_v46  ;;  %803 = vmatprep.mubr.bf16.mxu0 %v407_v49  ;;  %v433_v46 = vunpack.c.l.s8.bf16 %v385_v40  ;;  %v382_v49 = vld [vmem:[%s2752_s30 + $0x80] sm:$0xff] }
  0x32   : > { %964 = vmatprep.mubr.bf16.mxu1 %v409_v50  ;;  %v384_v50 = vld [vmem:[%s2752_s30 + $0x90] sm:$0xff]  ;;  %v430_v53 = vunpack.c.l.s8.bf16 %v382_v49  ;;  %v434_v61 = vunpack.c.h.s8.bf16 %v382_v49 }
  0x33   : > { %1285 = vperm.xlu1 %2542, %v1191_v18   ;;  %v432_v54 = vunpack.c.l.s8.bf16 %v384_v50  ;;  %v436_v62 = vunpack.c.h.s8.bf16 %v384_v50  ;;  %v453_v18 = vunpack.c.h.s8.bf16 %v393_v8 }
  0x34   : > { %1290 = vperm.xlu0 %2541, %v1192_v21  }
  0x37   : > { %1295 = vperm.xlu1 %2542, %v1193_v22  }
  0x38   : > { %804 = vmatmul.mubr.bf16.gmra.mrb[8].mxu0 %v406_v57  ;;  %1300 = vperm.xlu0 %2541, %v1194_v27   ;;  %v1206_v57 = vld [vmem:[%s2770_s16 + $0xf0] sm:$0xff] }
  0x39   : > { %965 = vmatmul.mubr.bf16.gmra.mrb[8].mxu1 %v408_v58  ;;  %811 = vmatprep.mubr.bf16.mxu0 %v411_v59  ;;  %v1207_v58 = vld [vmem:[%s2770_s16 + $0xf8] sm:$0xff]  ;;  %v387_v59 = vld [vmem:[%s2752_s30 + $0xa8] sm:$0xff] }
  0x3a   : > { %972 = vmatprep.mubr.bf16.mxu1 %v413_v60  ;;  %v389_v60 = vld [vmem:[%s2752_s30 + $0xb8] sm:$0xff]  ;;  %v439_v63 = vunpack.c.l.s8.bf16 %v387_v59 }
  0x3b   : > { %1305 = vperm.xlu1 %2542, %v1195_v28   ;;  %v441_v0 = vunpack.c.l.s8.bf16 %v389_v60 }
  0x3c   : > { %1310 = vperm.xlu0 %2541, %v1196_v31  }
  0x3f   : > { %1315 = vperm.xlu1 %2542, %v1197_v32  }
  0x40   : > { %812 = vmatmul.mubr.bf16.gmra.mrb[12].mxu0 %v410_v3  ;;  %1320 = vperm.xlu0 %2541, %v1198_v37   ;;  %v438_v3 = vunpack.c.l.s8.bf16 %v386_v1 }
  0x41   : > { %973 = vmatmul.mubr.bf16.gmra.mrb[12].mxu1 %v412_v4  ;;  %819 = vmatprep.mubr.bf16.mxu0 %v415_v5  ;;  %v440_v4 = vunpack.c.l.s8.bf16 %v388_v2  ;;  %v443_v5 = vunpack.c.h.s8.bf16 %v387_v59  ;;  %v2601_v59 = vmov 0.0  }
  0x42   : > { %980 = vmatprep.mubr.bf16.mxu1 %v417_v6  ;;  %v445_v6 = vunpack.c.h.s8.bf16 %v389_v60 }
  0x43   : > { %1325 = vperm.xlu1 %2542, %v1199_v38  }
  0x44   : > { %1330 = vperm.xlu0 %2541, %v1200_v41  }
  0x47   : > { %1335 = vperm.xlu1 %2542, %v1201_v42  }
  0x48   : > { %820 = vmatmul.mubr.bf16.gmra.mrb[16].mxu0 %v414_v13  ;;  %1340 = vperm.xlu0 %2541, %v1202_v47   ;;  %v390_v13 = vld [vmem:[%s2752_s30 + $0xc0] sm:$0xff] }
  0x49   : > { %981 = vmatmul.mubr.bf16.gmra.mrb[16].mxu1 %v416_v14  ;;  %827 = vmatprep.mubr.bf16.mxu0 %v419_v15  ;;  %v392_v14 = vld [vmem:[%s2752_s30 + $0xd0] sm:$0xff]  ;;  %v446_v15 = vunpack.c.l.s8.bf16 %v390_v13  ;;  %v450_v21 = vunpack.c.h.s8.bf16 %v390_v13 }
  0x4a   : > { %988 = vmatprep.mubr.bf16.mxu1 %v421_v16  ;;  %v448_v16 = vunpack.c.l.s8.bf16 %v392_v14  ;;  %v452_v22 = vunpack.c.h.s8.bf16 %v392_v14 }
  0x4b   : > { %1345 = vperm.xlu1 %2542, %v1203_v48  }
  0x4c   : > { %1350 = vperm.xlu0 %2541, %v1204_v51  }
  0x4f   : > { %1355 = vperm.xlu1 %2542, %v1205_v52  }
  0x50   : > { %828 = vmatmul.mubr.bf16.gmra.mrb[20].mxu0 %v418_v23  ;;  %1360 = vperm.xlu0 %2541, %v1206_v57   ;;  %v455_v23 = vunpack.c.l.s8.bf16 %v395_v19 }
  0x51   : > { %989 = vmatmul.mubr.bf16.gmra.mrb[20].mxu1 %v420_v24  ;;  %835 = vmatprep.mubr.bf16.mxu0 %v423_v25  ;;  %v457_v24 = vunpack.c.l.s8.bf16 %v397_v20  ;;  %v394_v25 = vld [vmem:[%s2752_s30 + $0xe0] sm:$0xff] }
  0x52   : > { %996 = vmatprep.mubr.bf16.mxu1 %v425_v26  ;;  %v396_v26 = vld [vmem:[%s2752_s30 + $0xf0] sm:$0xff]  ;;  %v454_v27 = vunpack.c.l.s8.bf16 %v394_v25  ;;  %v458_v31 = vunpack.c.h.s8.bf16 %v394_v25 }
  0x53   : > { %1365 = vperm.xlu1 %2542, %v1207_v58   ;;  %v456_v28 = vunpack.c.l.s8.bf16 %v396_v26  ;;  %v460_v32 = vunpack.c.h.s8.bf16 %v396_v26 }
  0x58   : > { %836 = vmatmul.mubr.bf16.gmra.mrb[24].mxu0 %v422_v33  ;;  %v1600_v33 = vlaneseq }
  0x59   : > { %997 = vmatmul.mubr.bf16.gmra.mrb[24].mxu1 %v424_v34  ;;  %843 = vmatprep.mubr.bf16.mxu0 %v427_v35  ;;  %v2835_v35 = vstv %s2128_s17 }
  0x5a   : > { %1004 = vmatprep.mubr.bf16.mxu1 %v429_v36  ;;  %v2833_v34 = vshrl.u32 %v1600_v33, 7 }
  0x5c   : > { %v1602_v36 = vadd.s32 8, %v2833_v34  ;;  %v1634_v40 = vadd.s32 %v2835_v35, %v2833_v34  ;;  %v1603_v50 = vadd.s32 16, %v2833_v34 }
  0x5e   : > { %v1635_v47 = vadd.s32 %v2835_v35, %v1602_v36  ;;  %vm1666_vm0 = vcmp.lt.s32.totalorder %v1634_v40, 512 }
  0x5f   : > { %v2129_v60 = vsel %vm1666_vm0, 1.0, %v2601_v59 }
  0x60   : > { %844 = vmatmul.mubr.bf16.gmra.mrb[28].mxu0 %v426_v43  ;;  %vm1667_vm1 = vcmp.lt.s32.totalorder %v1635_v47, 512  ;;  %v1608_v47 = vadd.s32 56, %v2833_v34 }
  0x61   : > { %1005 = vmatmul.mubr.bf16.gmra.mrb[28].mxu1 %v428_v44  ;;  %851 = vmatprep.mubr.bf16.mxu0 %v431_v45 }
  0x62   : > { %1012 = vmatprep.mubr.bf16.mxu1 %v433_v46 }
  0x68   : > { %852 = vmatmul.mubr.bf16.gmra.mrb[32].mxu0 %v430_v53 }
  0x69   : > { %1013 = vmatmul.mubr.bf16.gmra.mrb[32].mxu1 %v432_v54  ;;  %859 = vmatprep.mubr.bf16.mxu0 %v435_v55  ;;  %v2845_v54 = vld [vmem:[%s3038_s3] ss:$0 sm:$0xff] }
  0x6a   : > { %1020 = vmatprep.mubr.bf16.mxu1 %v437_v56  ;;  %v1604_v56 = vadd.s32 24, %v2833_v34 }
  0x6c   : > { %v1637_v7 = vadd.s32 %v2835_v35, %v1604_v56 }
  0x6e   : > { %vm1669_vm3 = vcmp.lt.s32.totalorder %v1637_v7, 512 }
  0x70   : > { %860 = vmatmul.mubr.bf16.gmra.mrb[36].mxu0 %v434_v61 }
  0x71   : > { %1021 = vmatmul.mubr.bf16.gmra.mrb[36].mxu1 %v436_v62  ;;  %867 = vmatprep.mubr.bf16.mxu0 %v439_v63  ;;  %v1636_v62 = vadd.s32 %v2835_v35, %v1603_v50  ;;  %v1605_v63 = vadd.s32 32, %v2833_v34 }
  0x72   : > { %1028 = vmatprep.mubr.bf16.mxu1 %v441_v0 }
  0x73   : > { %vm1668_vm2 = vcmp.lt.s32.totalorder %v1636_v62, 512 }
  0x78   : > { %868 = vmatmul.mubr.bf16.gmra.mrb[40].mxu0 %v438_v3 }
  0x79   : > { %1029 = vmatmul.mubr.bf16.gmra.mrb[40].mxu1 %v440_v4  ;;  %875 = vmatprep.mubr.bf16.mxu0 %v443_v5  ;;  %v2130_v4 = vsel %vm1667_vm1, 1.0, %v2601_v59 }
  0x7a   : > { %1036 = vmatprep.mubr.bf16.mxu1 %v445_v6 }
  0x80   : > { %876 = vmatmul.mubr.bf16.gmra.mrb[44].mxu0 %v442_v9 }
  0x81   : > { %1037 = vmatmul.mubr.bf16.gmra.mrb[44].mxu1 %v444_v10  ;;  %883 = vmatprep.mubr.bf16.mxu0 %v447_v11 }
  0x82   : > { %1044 = vmatprep.mubr.bf16.mxu1 %v449_v12 }
  0x88   : > { %884 = vmatmul.mubr.bf16.gmra.mrb[48].mxu0 %v446_v15 }
  0x89   : > { %1045 = vmatmul.mubr.bf16.gmra.mrb[48].mxu1 %v448_v16  ;;  %891 = vmatprep.mubr.bf16.mxu0 %v451_v17  ;;  %v1638_v16 = vadd.s32 %v2835_v35, %v1605_v63 }
  0x8a   : > { %1052 = vmatprep.mubr.bf16.mxu1 %v453_v18 }
  0x8b   : > { %vm1670_vm4 = vcmp.lt.s32.totalorder %v1638_v16, 512 }
  0x90   : > { %892 = vmatmul.mubr.bf16.gmra.mrb[52].mxu0 %v450_v21 }
  0x91   : > { %1053 = vmatmul.mubr.bf16.gmra.mrb[52].mxu1 %v452_v22  ;;  %899 = vmatprep.mubr.bf16.mxu0 %v455_v23  ;;  %v1606_v23 = vadd.s32 40, %v2833_v34 }
  0x92   : > { %1060 = vmatprep.mubr.bf16.mxu1 %v457_v24 }
  0x93   : > { %v1211_v37 = vpop.permute.xlu0 %1210  ;;  %v1639_v40 = vadd.s32 %v2835_v35, %v1606_v23 }
  0x95   : > { %vm1671_vm5 = vcmp.lt.s32.totalorder %v1639_v40, 512 }
  0x96   : > { %v1221_v61 = vpop.permute.xlu1 %1220 }
  0x97   : > { %v1216_v55 = vpop.permute.xlu0 %1215 }
  0x98   : > { %900 = vmatmul.mubr.bf16.gmra.mrb[56].mxu0 %v454_v27  ;;  %v2131_v27 = vsel %vm1668_vm2, 1.0, %v2601_v59 }
  0x99   : > { %1061 = vmatmul.mubr.bf16.gmra.mrb[56].mxu1 %v456_v28  ;;  %907 = vmatprep.mubr.bf16.mxu0 %v459_v29 }
  0x9a   : > { %1068 = vmatprep.mubr.bf16.mxu1 %v461_v30  ;;  %v1226_v28 = vpop.permute.xlu1 %1225 }
  0xa0   : > { %908 = vmatmul.mubr.bf16.gmra.mrb[60].mxu0 %v458_v31 }
  0xa1   : > { %1069 = vmatmul.mubr.bf16.gmra.mrb[60].mxu1 %v460_v32 }
  0xfb   : > { %v2307_v38 = vpop.f32.mrb[0].mxu0 }
  0xfc   : > { %v2419_v39 = vpop.f32.mrb[0].mxu1  ;;  %v2308_v41 = vpop.f32.mrb[1].mxu0 }
  0xfd   : > { %v2420_v42 = vpop.f32.mrb[1].mxu1  ;;  %v2309_v43 = vadd.f32 %v2308_v41, %v2307_v38  ;;  %v2310_v45 = vpop.f32.mrb[2].mxu0  ;;  %v1607_v41 = vadd.s32 48, %v2833_v34 }
  0xfe   : > { %v2421_v44 = vadd.f32 %v2420_v42, %v2419_v39  ;;  %v2422_v46 = vpop.f32.mrb[2].mxu1  ;;  %v2311_v48 = vpop.f32.mrb[3].mxu0 }
  0xff   : > { %v2423_v49 = vpop.f32.mrb[3].mxu1  ;;  %v2312_v52 = vadd.f32 %v2311_v48, %v2310_v45 }
 0x100   : > { %v951_v51 = vadd.f32 %v2421_v44, %v2309_v43  ;;  %v2424_v53 = vadd.f32 %v2423_v49, %v2422_v46  ;;  %v2133_v49 = vsel %vm1670_vm4, 1.0, %v2601_v59 }
 0x102   : > { %v1368_v57 = vmul.f32 %v1211_v37, %v951_v51  ;;  %v954_v58 = vadd.f32 %v2424_v53, %v2312_v52  ;;  %v2132_v37 = vsel %vm1669_vm3, 1.0, %v2601_v59 }
 0x103   : > { %v2313_v2 = vpop.f32.mrb[4].mxu0 }
 0x104   : > { %v1407_v0 = vadd.f32 %v2845_v54, %v1368_v57  ;;  %v1369_v1 = vmul.f32 %v1216_v55, %v954_v58  ;;  %v2425_v3 = vpop.f32.mrb[4].mxu1  ;;  %v2314_v5 = vpop.f32.mrb[5].mxu0 }
 0x105   : > { %v2426_v6 = vpop.f32.mrb[5].mxu1  ;;  %v2315_v10 = vadd.f32 %v2314_v5, %v2313_v2  ;;  %v2316_v12 = vpop.f32.mrb[6].mxu0 }
 0x106   : > { %v1762_v8 = vmul.f32 %v2129_v60, %v1407_v0  ;;  %v1408_v9 = vadd.f32 %v2845_v54, %v1369_v1  ;;  %v2427_v11 = vadd.f32 %v2426_v6, %v2425_v3  ;;  %v2428_v13 = vpop.f32.mrb[6].mxu1  ;;  %v2317_v14 = vpop.f32.mrb[7].mxu0  ;;  %v1641_v1 = vadd.s32 %v2835_v35, %v1608_v47 }
 0x107   : > { %v2429_v15 = vpop.f32.mrb[7].mxu1  ;;  %v2318_v21 = vadd.f32 %v2317_v14, %v2316_v12  ;;  %v1231_v57 = vpop.permute.xlu0 %1230  ;;  %v1609_v6 = vadd.s32 64, %v2833_v34 }
 0x108   : > { %v1831_v17 = vmul.f32 %v1762_v8, %v1407_v0  ;;  %v2199_v18 = vpack.c.bf16 %v1408_v9, %v1407_v0  ;;  %v1763_v19 = vmul.f32 %v2130_v4, %v1408_v9  ;;  %v959_v20 = vadd.f32 %v2427_v11, %v2315_v10  ;;  %v1236_v4 = vpop.permute.xlu1 %1235 }
 0x109   : > { %v2430_v22 = vadd.f32 %v2429_v15, %v2428_v13  ;;  %v1640_v0 = vadd.s32 %v2835_v35, %v1607_v41  ;;  %v2134_v15 = vsel %vm1671_vm5, 1.0, %v2601_v59  ;;  %vm1673_vm7 = vcmp.lt.s32.totalorder %v1641_v1, 512 }
 0x10a   : > { %2200 = vst [vmem:[%s2859_s10] sm:$0xff] %v2199_v18   ;;  %v1794_v24 = vadd.f32 %v1763_v19, %v1762_v8  ;;  %v1832_v25 = vmul.f32 %v1763_v19, %v1408_v9  ;;  %v1370_v26 = vmul.f32 %v1221_v61, %v959_v20  ;;  %v1642_v23 = vadd.s32 %v2835_v35, %v1609_v6 }
 0x10b   : > { %v962_v29 = vadd.f32 %v2430_v22, %v2318_v21  ;;  %v2319_v32 = vpop.f32.mrb[8].mxu0  ;;  %vm1672_vm6 = vcmp.lt.s32.totalorder %v1640_v0, 512 }
 0x10c   : > { %v1863_v30 = vadd.f32 %v1832_v25, %v1831_v17  ;;  %v1409_v31 = vadd.f32 %v2845_v54, %v1370_v26  ;;  %v2431_v33 = vpop.f32.mrb[8].mxu1  ;;  %v2320_v38 = vpop.f32.mrb[9].mxu0  ;;  %v2135_v40 = vsel %vm1672_vm6, 1.0, %v2601_v59  ;;  %vm1674_vm8 = vcmp.lt.s32.totalorder %v1642_v23, 512 }
 0x10d   : > { %v1371_v36 = vmul.f32 %v1226_v28, %v962_v29  ;;  %v2432_v39 = vpop.f32.mrb[9].mxu1  ;;  %v2321_v43 = vadd.f32 %v2320_v38, %v2319_v32  ;;  %v2322_v45 = vpop.f32.mrb[10].mxu0  ;;  %v1610_v32 = vadd.s32 72, %v2833_v34 }
 0x10e   : > { %v1764_v42 = vmul.f32 %v2131_v27, %v1409_v31  ;;  %v2433_v44 = vadd.f32 %v2432_v39, %v2431_v33  ;;  %v2434_v46 = vpop.f32.mrb[10].mxu1  ;;  %v2323_v50 = vpop.f32.mrb[11].mxu0 }
 0x10f   : > { %v1410_v48 = vadd.f32 %v2845_v54, %v1371_v36  ;;  %v2435_v51 = vpop.f32.mrb[11].mxu1  ;;  %v2324_v56 = vadd.f32 %v2323_v50, %v2322_v45  ;;  %v1241_v28 = vpop.permute.xlu0 %1240  ;;  %v1643_v50 = vadd.s32 %v2835_v35, %v1610_v32 }
 0x110   : > { %v1795_v52 = vadd.f32 %v1794_v24, %v1764_v42  ;;  %v1833_v53 = vmul.f32 %v1764_v42, %v1409_v31  ;;  %v967_v55 = vadd.f32 %v2433_v44, %v2321_v43  ;;  %v2436_v61 = vadd.f32 %v2435_v51, %v2434_v46 }
 0x111   : > { %v2204_v58 = vpack.c.bf16 %v1410_v48, %v1409_v31  ;;  %v1765_v60 = vmul.f32 %v2132_v37, %v1410_v48  ;;  %v1246_v37 = vpop.permute.xlu1 %1245  ;;  %v2136_v43 = vsel %vm1673_vm7, 1.0, %v2601_v59  ;;  %v1611_v51 = vadd.s32 80, %v2833_v34 }
 0x112   : > { %v1864_v62 = vadd.f32 %v1863_v30, %v1833_v53  ;;  %v1372_v63 = vmul.f32 %v1231_v57, %v967_v55  ;;  %v970_v5 = vadd.f32 %v2436_v61, %v2324_v56  ;;  %v2137_v61 = vsel %vm1674_vm8, 1.0, %v2601_v59 }
 0x113   : > { %2276 = vst [vmem:[%s2859_s10 + $0x8] sm:$0xff] %v2204_v58   ;;  %v1796_v2 = vadd.f32 %v1795_v52, %v1765_v60  ;;  %v1834_v3 = vmul.f32 %v1765_v60, %v1410_v48  ;;  %v2325_v8 = vpop.f32.mrb[12].mxu0  ;;  %v1612_v58 = vadd.s32 88, %v2833_v34  ;;  %vm1675_vm9 = vcmp.lt.s32.totalorder %v1643_v50, 512 }
 0x114   : > { %v1411_v7 = vadd.f32 %v2845_v54, %v1372_v63  ;;  %v2437_v9 = vpop.f32.mrb[12].mxu1  ;;  %v1373_v11 = vmul.f32 %v1236_v4, %v970_v5  ;;  %v2326_v12 = vpop.f32.mrb[13].mxu0 }
 0x115   : > { %v1865_v10 = vadd.f32 %v1864_v62, %v1834_v3  ;;  %v2438_v13 = vpop.f32.mrb[13].mxu1  ;;  %v2327_v16 = vadd.f32 %v2326_v12, %v2325_v8  ;;  %v2328_v18 = vpop.f32.mrb[14].mxu0 }
 0x116   : > { %v1766_v14 = vmul.f32 %v2133_v49, %v1411_v7  ;;  %v2439_v17 = vadd.f32 %v2438_v13, %v2437_v9  ;;  %v2440_v19 = vpop.f32.mrb[14].mxu1  ;;  %v1412_v20 = vadd.f32 %v2845_v54, %v1373_v11  ;;  %v2329_v21 = vpop.f32.mrb[15].mxu0  ;;  %v1645_v11 = vadd.s32 %v2835_v35, %v1612_v58 }
 0x117   : > { %v2441_v22 = vpop.f32.mrb[15].mxu1  ;;  %v2330_v27 = vadd.f32 %v2329_v21, %v2328_v18  ;;  %v1251_v4 = vpop.permute.xlu0 %1250 }
 0x118   : > { %v1797_v24 = vadd.f32 %v1796_v2, %v1766_v14  ;;  %v1835_v25 = vmul.f32 %v1766_v14, %v1411_v7  ;;  %v975_v26 = vadd.f32 %v2439_v17, %v2327_v16  ;;  %v2209_v29 = vpack.c.bf16 %v1412_v20, %v1411_v7  ;;  %v1256_v12 = vpop.permute.xlu1 %1255 }
 0x119   : > { %v1767_v30 = vmul.f32 %v2134_v15, %v1412_v20  ;;  %v2442_v31 = vadd.f32 %v2441_v22, %v2440_v19  ;;  %v1613_v16 = vadd.s32 96, %v2833_v34  ;;  %vm1677_vm11 = vcmp.lt.s32.totalorder %v1645_v11, 512 }
 0x11a   : > { %v1866_v33 = vadd.f32 %v1865_v10, %v1835_v25  ;;  %v1374_v36 = vmul.f32 %v1241_v28, %v975_v26  ;;  %2277 = vst [vmem:[%s2859_s10 + $0x10] sm:$0xff] %v2209_v29   ;;  %v1644_v10 = vadd.s32 %v2835_v35, %v1611_v51  ;;  %v2138_v25 = vsel %vm1675_vm9, 1.0, %v2601_v59 }
 0x11b   : > { %v1798_v38 = vadd.f32 %v1797_v24, %v1767_v30  ;;  %v1836_v39 = vmul.f32 %v1767_v30, %v1412_v20  ;;  %v978_v41 = vadd.f32 %v2442_v31, %v2330_v27  ;;  %v2331_v44 = vpop.f32.mrb[16].mxu0 }
 0x11c   : > { %v1413_v42 = vadd.f32 %v2845_v54, %v1374_v36  ;;  %v2443_v45 = vpop.f32.mrb[16].mxu1  ;;  %v2332_v48 = vpop.f32.mrb[17].mxu0  ;;  %vm1676_vm10 = vcmp.lt.s32.totalorder %v1644_v10, 512 }
 0x11d   : > { %v1867_v46 = vadd.f32 %v1866_v33, %v1836_v39  ;;  %v1375_v47 = vmul.f32 %v1246_v37, %v978_v41  ;;  %v2444_v49 = vpop.f32.mrb[17].mxu1  ;;  %v2333_v53 = vadd.f32 %v2332_v48, %v2331_v44  ;;  %v2334_v56 = vpop.f32.mrb[18].mxu0  ;;  %v1646_v33 = vadd.s32 %v2835_v35, %v1613_v16 }
 0x11e   : > { %v1768_v52 = vmul.f32 %v2135_v40, %v1413_v42  ;;  %v2445_v55 = vadd.f32 %v2444_v49, %v2443_v45  ;;  %v2446_v57 = vpop.f32.mrb[18].mxu1  ;;  %v2335_v62 = vpop.f32.mrb[19].mxu0  ;;  %v1614_v44 = vadd.s32 104, %v2833_v34  ;;  %v2139_v50 = vsel %vm1676_vm10, 1.0, %v2601_v59 }
 0x11f   : > { %v1414_v60 = vadd.f32 %v2845_v54, %v1375_v47  ;;  %v2447_v63 = vpop.f32.mrb[19].mxu1  ;;  %v2336_v3 = vadd.f32 %v2335_v62, %v2334_v56  ;;  %v1261_v40 = vpop.permute.xlu0 %1260  ;;  %vm1678_vm12 = vcmp.lt.s32.totalorder %v1646_v33, 512 }
 0x120   : > { %v1799_v0 = vadd.f32 %v1798_v38, %v1768_v52  ;;  %v1837_v1 = vmul.f32 %v1768_v52, %v1413_v42  ;;  %v983_v2 = vadd.f32 %v2445_v55, %v2333_v53  ;;  %v2448_v7 = vadd.f32 %v2447_v63, %v2446_v57  ;;  %v1266_v47 = vpop.permute.xlu1 %1265 }
 0x121   : > { %v2214_v5 = vpack.c.bf16 %v1414_v60, %v1413_v42  ;;  %v1769_v6 = vmul.f32 %v2136_v43, %v1414_v60  ;;  %v2140_v53 = vsel %vm1677_vm11, 1.0, %v2601_v59  ;;  %v1647_v62 = vadd.s32 %v2835_v35, %v1614_v44 }
 0x122   : > { %v1868_v8 = vadd.f32 %v1867_v46, %v1837_v1  ;;  %v1376_v9 = vmul.f32 %v1251_v4, %v983_v2  ;;  %v986_v15 = vadd.f32 %v2448_v7, %v2336_v3  ;;  %v1615_v63 = vadd.s32 112, %v2833_v34 }
 0x123   : > { %2278 = vst [vmem:[%s2859_s10 + $0x18] sm:$0xff] %v2214_v5   ;;  %v1800_v13 = vadd.f32 %v1799_v0, %v1769_v6  ;;  %v1838_v14 = vmul.f32 %v1769_v6, %v1414_v60  ;;  %v2337_v18 = vpop.f32.mrb[20].mxu0  ;;  %v1616_v5 = vadd.s32 120, %v2833_v34  ;;  %v2141_v7 = vsel %vm1678_vm12, 1.0, %v2601_v59 }
 0x124   : > { %v1415_v17 = vadd.f32 %v2845_v54, %v1376_v9  ;;  %v2449_v19 = vpop.f32.mrb[20].mxu1  ;;  %v1377_v21 = vmul.f32 %v1256_v12, %v986_v15  ;;  %v2338_v22 = vpop.f32.mrb[21].mxu0  ;;  %vm1679_vm13 = vcmp.lt.s32.totalorder %v1647_v62, 512 }
 0x125   : > { %v1869_v20 = vadd.f32 %v1868_v8, %v1838_v14  ;;  %v2450_v23 = vpop.f32.mrb[21].mxu1  ;;  %v2339_v26 = vadd.f32 %v2338_v22, %v2337_v18  ;;  %v2340_v28 = vpop.f32.mrb[22].mxu0 }
 0x126   : > { %v1770_v24 = vmul.f32 %v2137_v61, %v1415_v17  ;;  %v2451_v27 = vadd.f32 %v2450_v23, %v2449_v19  ;;  %v2452_v29 = vpop.f32.mrb[22].mxu1  ;;  %v1416_v30 = vadd.f32 %v2845_v54, %v1377_v21  ;;  %v2341_v31 = vpop.f32.mrb[23].mxu0  ;;  %v1649_v21 = vadd.s32 %v2835_v35, %v1616_v5 }
 0x127   : > { %v2453_v32 = vpop.f32.mrb[23].mxu1  ;;  %v2342_v39 = vadd.f32 %v2341_v31, %v2340_v28  ;;  %v1271_v14 = vpop.permute.xlu0 %1270 }
 0x128   : > { %v1801_v36 = vadd.f32 %v1800_v13, %v1770_v24  ;;  %v1839_v37 = vmul.f32 %v1770_v24, %v1415_v17  ;;  %v991_v38 = vadd.f32 %v2451_v27, %v2339_v26  ;;  %v2219_v41 = vpack.c.bf16 %v1416_v30, %v1415_v17  ;;  %v1276_v22 = vpop.permute.xlu1 %1275 }
 0x129   : > { %v1771_v42 = vmul.f32 %v2138_v25, %v1416_v30  ;;  %v2454_v43 = vadd.f32 %v2453_v32, %v2452_v29  ;;  %v1617_v26 = vadd.s32 128, %v2833_v34  ;;  %vm1681_vm15 = vcmp.lt.s32.totalorder %v1649_v21, 512 }
 0x12a   : > { %v1870_v45 = vadd.f32 %v1869_v20, %v1839_v37  ;;  %v1378_v46 = vmul.f32 %v1261_v40, %v991_v38  ;;  %2279 = vst [vmem:[%s2859_s10 + $0x20] sm:$0xff] %v2219_v41   ;;  %v1648_v20 = vadd.s32 %v2835_v35, %v1615_v63  ;;  %v2142_v37 = vsel %vm1679_vm13, 1.0, %v2601_v59 }
 0x12b   : > { %v1802_v48 = vadd.f32 %v1801_v36, %v1771_v42  ;;  %v1840_v49 = vmul.f32 %v1771_v42, %v1416_v30  ;;  %v994_v51 = vadd.f32 %v2454_v43, %v2342_v39  ;;  %v2343_v55 = vpop.f32.mrb[24].mxu0 }
 0x12c   : > { %v1417_v52 = vadd.f32 %v2845_v54, %v1378_v46  ;;  %v2455_v56 = vpop.f32.mrb[24].mxu1  ;;  %v2344_v60 = vpop.f32.mrb[25].mxu0  ;;  %vm1680_vm14 = vcmp.lt.s32.totalorder %v1648_v20, 512 }
 0x12d   : > { %v1871_v57 = vadd.f32 %v1870_v45, %v1840_v49  ;;  %v1379_v58 = vmul.f32 %v1266_v47, %v994_v51  ;;  %v2456_v61 = vpop.f32.mrb[25].mxu1  ;;  %v2345_v1 = vadd.f32 %v2344_v60, %v2343_v55  ;;  %v2346_v3 = vpop.f32.mrb[26].mxu0  ;;  %v1650_v45 = vadd.s32 %v2835_v35, %v1617_v26 }
 0x12e   : > { %v1772_v0 = vmul.f32 %v2139_v50, %v1417_v52  ;;  %v2457_v2 = vadd.f32 %v2456_v61, %v2455_v56  ;;  %v2458_v4 = vpop.f32.mrb[26].mxu1  ;;  %v2347_v8 = vpop.f32.mrb[27].mxu0  ;;  %v1618_v55 = vadd.s32 136, %v2833_v34  ;;  %v2143_v62 = vsel %vm1680_vm14, 1.0, %v2601_v59 }
 0x12f   : > { %v1418_v6 = vadd.f32 %v2845_v54, %v1379_v58  ;;  %v2459_v9 = vpop.f32.mrb[27].mxu1  ;;  %v2348_v13 = vadd.f32 %v2347_v8, %v2346_v3  ;;  %v1281_v50 = vpop.permute.xlu0 %1280  ;;  %vm1682_vm0 = vcmp.lt.s32.totalorder %v1650_v45, 512 }
 0x130   : > { %v1803_v10 = vadd.f32 %v1802_v48, %v1772_v0  ;;  %v1841_v11 = vmul.f32 %v1772_v0, %v1417_v52  ;;  %v999_v12 = vadd.f32 %v2457_v2, %v2345_v1  ;;  %v2460_v17 = vadd.f32 %v2459_v9, %v2458_v4  ;;  %v1286_v58 = vpop.permute.xlu1 %1285 }
 0x131   : > { %v2224_v15 = vpack.c.bf16 %v1418_v6, %v1417_v52  ;;  %v1773_v16 = vmul.f32 %v2140_v53, %v1418_v6  ;;  %v2144_v1 = vsel %vm1681_vm15, 1.0, %v2601_v59  ;;  %v1651_v8 = vadd.s32 %v2835_v35, %v1618_v55 }
 0x132   : > { %v1872_v18 = vadd.f32 %v1871_v57, %v1841_v11  ;;  %v1380_v19 = vmul.f32 %v1271_v14, %v999_v12  ;;  %v1002_v25 = vadd.f32 %v2460_v17, %v2348_v13  ;;  %v1619_v9 = vadd.s32 144, %v2833_v34 }
 0x133   : > { %2280 = vst [vmem:[%s2859_s10 + $0x28] sm:$0xff] %v2224_v15   ;;  %v1804_v23 = vadd.f32 %v1803_v10, %v1773_v16  ;;  %v1842_v24 = vmul.f32 %v1773_v16, %v1418_v6  ;;  %v2349_v28 = vpop.f32.mrb[28].mxu0  ;;  %v1620_v15 = vadd.s32 152, %v2833_v34  ;;  %v2145_v17 = vsel %vm1682_vm0, 1.0, %v2601_v59 }
 0x134   : > { %v1419_v27 = vadd.f32 %v2845_v54, %v1380_v19  ;;  %v2461_v29 = vpop.f32.mrb[28].mxu1  ;;  %v1381_v31 = vmul.f32 %v1276_v22, %v1002_v25  ;;  %v2350_v32 = vpop.f32.mrb[29].mxu0  ;;  %vm1683_vm1 = vcmp.lt.s32.totalorder %v1651_v8, 512 }
 0x135   : > { %v1873_v30 = vadd.f32 %v1872_v18, %v1842_v24  ;;  %v2462_v33 = vpop.f32.mrb[29].mxu1  ;;  %v2351_v38 = vadd.f32 %v2350_v32, %v2349_v28  ;;  %v2352_v40 = vpop.f32.mrb[30].mxu0 }
 0x136   : > { %v1774_v36 = vmul.f32 %v2141_v7, %v1419_v27  ;;  %v2463_v39 = vadd.f32 %v2462_v33, %v2461_v29  ;;  %v2464_v41 = vpop.f32.mrb[30].mxu1  ;;  %v1420_v42 = vadd.f32 %v2845_v54, %v1381_v31  ;;  %v2353_v43 = vpop.f32.mrb[31].mxu0  ;;  %v1653_v31 = vadd.s32 %v2835_v35, %v1620_v15 }
 0x137   : > { %v2465_v44 = vpop.f32.mrb[31].mxu1  ;;  %v2354_v49 = vadd.f32 %v2353_v43, %v2352_v40  ;;  %v1291_v24 = vpop.permute.xlu0 %1290 }
 0x138   : > { %v1805_v46 = vadd.f32 %v1804_v23, %v1774_v36  ;;  %v1843_v47 = vmul.f32 %v1774_v36, %v1419_v27  ;;  %v1007_v48 = vadd.f32 %v2463_v39, %v2351_v38  ;;  %v2229_v51 = vpack.c.bf16 %v1420_v42, %v1419_v27  ;;  %v1296_v32 = vpop.permute.xlu1 %1295 }
 0x139   : > { %v1775_v52 = vmul.f32 %v2142_v37, %v1420_v42  ;;  %v2466_v53 = vadd.f32 %v2465_v44, %v2464_v41  ;;  %v1621_v38 = vadd.s32 160, %v2833_v34  ;;  %vm1685_vm3 = vcmp.lt.s32.totalorder %v1653_v31, 512 }
 0x13a   : > { %v1874_v56 = vadd.f32 %v1873_v30, %v1843_v47  ;;  %v1382_v57 = vmul.f32 %v1281_v50, %v1007_v48  ;;  %2281 = vst [vmem:[%s2859_s10 + $0x30] sm:$0xff] %v2229_v51   ;;  %v1652_v30 = vadd.s32 %v2835_v35, %v1619_v9  ;;  %v2146_v47 = vsel %vm1683_vm1, 1.0, %v2601_v59 }
 0x13b   : > { %v1806_v60 = vadd.f32 %v1805_v46, %v1775_v52  ;;  %v1844_v61 = vmul.f32 %v1775_v52, %v1420_v42  ;;  %v1010_v63 = vadd.f32 %v2466_v53, %v2354_v49  ;;  %v2355_v2 = vpop.f32.mrb[32].mxu0 }
 0x13c   : > { %v1421_v0 = vadd.f32 %v2845_v54, %v1382_v57  ;;  %v2467_v3 = vpop.f32.mrb[32].mxu1  ;;  %v2356_v6 = vpop.f32.mrb[33].mxu0  ;;  %vm1684_vm2 = vcmp.lt.s32.totalorder %v1652_v30, 512 }
 0x13d   : > { %v1875_v4 = vadd.f32 %v1874_v56, %v1844_v61  ;;  %v1383_v5 = vmul.f32 %v1286_v58, %v1010_v63  ;;  %v2468_v7 = vpop.f32.mrb[33].mxu1  ;;  %v2357_v11 = vadd.f32 %v2356_v6, %v2355_v2  ;;  %v2358_v13 = vpop.f32.mrb[34].mxu0  ;;  %v1654_v56 = vadd.s32 %v2835_v35, %v1621_v38 }
 0x13e   : > { %v1776_v10 = vmul.f32 %v2143_v62, %v1421_v0  ;;  %v2469_v12 = vadd.f32 %v2468_v7, %v2467_v3  ;;  %v2470_v14 = vpop.f32.mrb[34].mxu1  ;;  %v2359_v18 = vpop.f32.mrb[35].mxu0  ;;  %v1622_v2 = vadd.s32 168, %v2833_v34  ;;  %v2147_v8 = vsel %vm1684_vm2, 1.0, %v2601_v59 }
 0x13f   : > { %v1422_v16 = vadd.f32 %v2845_v54, %v1383_v5  ;;  %v2471_v19 = vpop.f32.mrb[35].mxu1  ;;  %v2360_v23 = vadd.f32 %v2359_v18, %v2358_v13  ;;  %v1301_v62 = vpop.permute.xlu0 %1300  ;;  %vm1686_vm4 = vcmp.lt.s32.totalorder %v1654_v56, 512 }
 0x140   : > { %v1807_v20 = vadd.f32 %v1806_v60, %v1776_v10  ;;  %v1845_v21 = vmul.f32 %v1776_v10, %v1421_v0  ;;  %v1015_v22 = vadd.f32 %v2469_v12, %v2357_v11  ;;  %v2472_v27 = vadd.f32 %v2471_v19, %v2470_v14  ;;  %v1306_v5 = vpop.permute.xlu1 %1305 }
 0x141   : > { %v2234_v25 = vpack.c.bf16 %v1422_v16, %v1421_v0  ;;  %v1777_v26 = vmul.f32 %v2144_v1, %v1422_v16  ;;  %v2148_v11 = vsel %vm1685_vm3, 1.0, %v2601_v59  ;;  %v1655_v18 = vadd.s32 %v2835_v35, %v1622_v2 }
 0x142   : > { %v1876_v28 = vadd.f32 %v1875_v4, %v1845_v21  ;;  %v1384_v29 = vmul.f32 %v1291_v24, %v1015_v22  ;;  %v1018_v37 = vadd.f32 %v2472_v27, %v2360_v23  ;;  %v1623_v19 = vadd.s32 176, %v2833_v34 }
 0x143   : > { %2282 = vst [vmem:[%s2859_s10 + $0x38] sm:$0xff] %v2234_v25   ;;  %v1808_v33 = vadd.f32 %v1807_v20, %v1777_v26  ;;  %v1846_v36 = vmul.f32 %v1777_v26, %v1422_v16  ;;  %v2361_v40 = vpop.f32.mrb[36].mxu0  ;;  %v1624_v25 = vadd.s32 184, %v2833_v34  ;;  %v2149_v27 = vsel %vm1686_vm4, 1.0, %v2601_v59 }
 0x144   : > { %v1423_v39 = vadd.f32 %v2845_v54, %v1384_v29  ;;  %v2473_v41 = vpop.f32.mrb[36].mxu1  ;;  %v1385_v43 = vmul.f32 %v1296_v32, %v1018_v37  ;;  %v2362_v44 = vpop.f32.mrb[37].mxu0  ;;  %vm1687_vm5 = vcmp.lt.s32.totalorder %v1655_v18, 512 }
 0x145   : > { %v1877_v42 = vadd.f32 %v1876_v28, %v1846_v36  ;;  %v2474_v45 = vpop.f32.mrb[37].mxu1  ;;  %v2363_v48 = vadd.f32 %v2362_v44, %v2361_v40  ;;  %v2364_v50 = vpop.f32.mrb[38].mxu0 }
 0x146   : > { %v1778_v46 = vmul.f32 %v2145_v17, %v1423_v39  ;;  %v2475_v49 = vadd.f32 %v2474_v45, %v2473_v41  ;;  %v2476_v51 = vpop.f32.mrb[38].mxu1  ;;  %v1424_v52 = vadd.f32 %v2845_v54, %v1385_v43  ;;  %v2365_v53 = vpop.f32.mrb[39].mxu0  ;;  %v1657_v43 = vadd.s32 %v2835_v35, %v1624_v25 }
 0x147   : > { %v2477_v55 = vpop.f32.mrb[39].mxu1  ;;  %v2366_v61 = vadd.f32 %v2365_v53, %v2364_v50  ;;  %v1311_v36 = vpop.permute.xlu0 %1310 }
 0x148   : > { %v1809_v57 = vadd.f32 %v1808_v33, %v1778_v46  ;;  %v1847_v58 = vmul.f32 %v1778_v46, %v1423_v39  ;;  %v1023_v60 = vadd.f32 %v2475_v49, %v2363_v48  ;;  %v2239_v63 = vpack.c.bf16 %v1424_v52, %v1423_v39  ;;  %v1316_v44 = vpop.permute.xlu1 %1315 }
 0x149   : > { %v1779_v0 = vmul.f32 %v2146_v47, %v1424_v52  ;;  %v2478_v1 = vadd.f32 %v2477_v55, %v2476_v51  ;;  %v1625_v48 = vadd.s32 192, %v2833_v34  ;;  %vm1689_vm7 = vcmp.lt.s32.totalorder %v1657_v43, 512 }
 0x14a   : > { %v1878_v3 = vadd.f32 %v1877_v42, %v1847_v58  ;;  %v1386_v4 = vmul.f32 %v1301_v62, %v1023_v60  ;;  %2283 = vst [vmem:[%s2859_s10 + $0x40] sm:$0xff] %v2239_v63   ;;  %v1656_v42 = vadd.s32 %v2835_v35, %v1623_v19  ;;  %v2150_v58 = vsel %vm1687_vm5, 1.0, %v2601_v59 }
 0x14b   : > { %v1810_v6 = vadd.f32 %v1809_v57, %v1779_v0  ;;  %v1848_v7 = vmul.f32 %v1779_v0, %v1424_v52  ;;  %v1026_v9 = vadd.f32 %v2478_v1, %v2366_v61  ;;  %v2367_v12 = vpop.f32.mrb[40].mxu0 }
 0x14c   : > { %v1425_v10 = vadd.f32 %v2845_v54, %v1386_v4  ;;  %v2479_v13 = vpop.f32.mrb[40].mxu1  ;;  %v2368_v16 = vpop.f32.mrb[41].mxu0  ;;  %vm1688_vm6 = vcmp.lt.s32.totalorder %v1656_v42, 512 }
 0x14d   : > { %v1879_v14 = vadd.f32 %v1878_v3, %v1848_v7  ;;  %v1387_v15 = vmul.f32 %v1306_v5, %v1026_v9  ;;  %v2480_v17 = vpop.f32.mrb[41].mxu1  ;;  %v2369_v21 = vadd.f32 %v2368_v16, %v2367_v12  ;;  %v2370_v23 = vpop.f32.mrb[42].mxu0  ;;  %v1658_v3 = vadd.s32 %v2835_v35, %v1625_v48 }
 0x14e   : > { %v1780_v20 = vmul.f32 %v2147_v8, %v1425_v10  ;;  %v2481_v22 = vadd.f32 %v2480_v17, %v2479_v13  ;;  %v2482_v24 = vpop.f32.mrb[42].mxu1  ;;  %v2371_v28 = vpop.f32.mrb[43].mxu0  ;;  %v1626_v12 = vadd.s32 200, %v2833_v34  ;;  %v2151_v18 = vsel %vm1688_vm6, 1.0, %v2601_v59 }
 0x14f   : > { %v1426_v26 = vadd.f32 %v2845_v54, %v1387_v15  ;;  %v2483_v29 = vpop.f32.mrb[43].mxu1  ;;  %v2372_v33 = vadd.f32 %v2371_v28, %v2370_v23  ;;  %v1321_v8 = vpop.permute.xlu0 %1320  ;;  %vm1690_vm8 = vcmp.lt.s32.totalorder %v1658_v3, 512 }
 0x150   : > { %v1811_v30 = vadd.f32 %v1810_v6, %v1780_v20  ;;  %v1849_v31 = vmul.f32 %v1780_v20, %v1425_v10  ;;  %v1031_v32 = vadd.f32 %v2481_v22, %v2369_v21  ;;  %v2484_v39 = vadd.f32 %v2483_v29, %v2482_v24  ;;  %v1326_v15 = vpop.permute.xlu1 %1325 }
 0x151   : > { %v2244_v37 = vpack.c.bf16 %v1426_v26, %v1425_v10  ;;  %v1781_v38 = vmul.f32 %v2148_v11, %v1426_v26  ;;  %v2152_v21 = vsel %vm1689_vm7, 1.0, %v2601_v59  ;;  %v1659_v28 = vadd.s32 %v2835_v35, %v1626_v12 }
 0x152   : > { %v1880_v40 = vadd.f32 %v1879_v14, %v1849_v31  ;;  %v1388_v41 = vmul.f32 %v1311_v36, %v1031_v32  ;;  %v1034_v47 = vadd.f32 %v2484_v39, %v2372_v33  ;;  %v1627_v29 = vadd.s32 208, %v2833_v34 }
 0x153   : > { %2284 = vst [vmem:[%s2859_s10 + $0x48] sm:$0xff] %v2244_v37   ;;  %v1812_v45 = vadd.f32 %v1811_v30, %v1781_v38  ;;  %v1850_v46 = vmul.f32 %v1781_v38, %v1426_v26  ;;  %v2373_v50 = vpop.f32.mrb[44].mxu0  ;;  %v1628_v37 = vadd.s32 216, %v2833_v34  ;;  %v2153_v39 = vsel %vm1690_vm8, 1.0, %v2601_v59 }
 0x154   : > { %v1427_v49 = vadd.f32 %v2845_v54, %v1388_v41  ;;  %v2485_v51 = vpop.f32.mrb[44].mxu1  ;;  %v1389_v53 = vmul.f32 %v1316_v44, %v1034_v47  ;;  %v2374_v55 = vpop.f32.mrb[45].mxu0  ;;  %vm1691_vm9 = vcmp.lt.s32.totalorder %v1659_v28, 512 }
 0x155   : > { %v1881_v52 = vadd.f32 %v1880_v40, %v1850_v46  ;;  %v2486_v56 = vpop.f32.mrb[45].mxu1  ;;  %v2375_v60 = vadd.f32 %v2374_v55, %v2373_v50  ;;  %v2376_v62 = vpop.f32.mrb[46].mxu0 }
 0x156   : > { %v1782_v57 = vmul.f32 %v2149_v27, %v1427_v49  ;;  %v2487_v61 = vadd.f32 %v2486_v56, %v2485_v51  ;;  %v2488_v63 = vpop.f32.mrb[46].mxu1  ;;  %v1428_v0 = vadd.f32 %v2845_v54, %v1389_v53  ;;  %v2377_v1 = vpop.f32.mrb[47].mxu0  ;;  %v1661_v53 = vadd.s32 %v2835_v35, %v1628_v37 }
 0x157   : > { %v2489_v2 = vpop.f32.mrb[47].mxu1  ;;  %v2378_v7 = vadd.f32 %v2377_v1, %v2376_v62  ;;  %v1331_v46 = vpop.permute.xlu0 %1330 }
 0x158   : > { %v1813_v4 = vadd.f32 %v1812_v45, %v1782_v57  ;;  %v1851_v5 = vmul.f32 %v1782_v57, %v1427_v49  ;;  %v1039_v6 = vadd.f32 %v2487_v61, %v2375_v60  ;;  %v2249_v9 = vpack.c.bf16 %v1428_v0, %v1427_v49  ;;  %v1336_v55 = vpop.permute.xlu1 %1335 }
 0x159   : > { %v1783_v10 = vmul.f32 %v2150_v58, %v1428_v0  ;;  %v2490_v11 = vadd.f32 %v2489_v2, %v2488_v63  ;;  %v1629_v60 = vadd.s32 224, %v2833_v34  ;;  %vm1693_vm11 = vcmp.lt.s32.totalorder %v1661_v53, 512 }
 0x15a   : > { %v1882_v13 = vadd.f32 %v1881_v52, %v1851_v5  ;;  %v1390_v14 = vmul.f32 %v1321_v8, %v1039_v6  ;;  %2285 = vst [vmem:[%s2859_s10 + $0x50] sm:$0xff] %v2249_v9   ;;  %v1660_v52 = vadd.s32 %v2835_v35, %v1627_v29  ;;  %v2154_v5 = vsel %vm1691_vm9, 1.0, %v2601_v59 }
 0x15b   : > { %v1814_v16 = vadd.f32 %v1813_v4, %v1783_v10  ;;  %v1852_v17 = vmul.f32 %v1783_v10, %v1428_v0  ;;  %v1042_v19 = vadd.f32 %v2490_v11, %v2378_v7  ;;  %v2379_v22 = vpop.f32.mrb[48].mxu0 }
 0x15c   : > { %v1429_v20 = vadd.f32 %v2845_v54, %v1390_v14  ;;  %v2491_v23 = vpop.f32.mrb[48].mxu1  ;;  %v2380_v26 = vpop.f32.mrb[49].mxu0  ;;  %vm1692_vm10 = vcmp.lt.s32.totalorder %v1660_v52, 512 }
 0x15d   : > { %v1883_v24 = vadd.f32 %v1882_v13, %v1852_v17  ;;  %v1391_v25 = vmul.f32 %v1326_v15, %v1042_v19  ;;  %v2492_v27 = vpop.f32.mrb[49].mxu1  ;;  %v2381_v31 = vadd.f32 %v2380_v26, %v2379_v22  ;;  %v2382_v33 = vpop.f32.mrb[50].mxu0  ;;  %v1662_v13 = vadd.s32 %v2835_v35, %v1629_v60 }
 0x15e   : > { %v1784_v30 = vmul.f32 %v2151_v18, %v1429_v20  ;;  %v2493_v32 = vadd.f32 %v2492_v27, %v2491_v23  ;;  %v2494_v36 = vpop.f32.mrb[50].mxu1  ;;  %v2383_v40 = vpop.f32.mrb[51].mxu0  ;;  %v1630_v22 = vadd.s32 232, %v2833_v34  ;;  %v2155_v28 = vsel %vm1692_vm10, 1.0, %v2601_v59 }
 0x15f   : > { %v1430_v38 = vadd.f32 %v2845_v54, %v1391_v25  ;;  %v2495_v41 = vpop.f32.mrb[51].mxu1  ;;  %v2384_v45 = vadd.f32 %v2383_v40, %v2382_v33  ;;  %v1341_v18 = vpop.permute.xlu0 %1340  ;;  %vm1694_vm12 = vcmp.lt.s32.totalorder %v1662_v13, 512 }
 0x160   : > { %v1815_v42 = vadd.f32 %v1814_v16, %v1784_v30  ;;  %v1853_v43 = vmul.f32 %v1784_v30, %v1429_v20  ;;  %v1047_v44 = vadd.f32 %v2493_v32, %v2381_v31  ;;  %v2496_v49 = vadd.f32 %v2495_v41, %v2494_v36  ;;  %v1346_v25 = vpop.permute.xlu1 %1345 }
 0x161   : > { %v2254_v47 = vpack.c.bf16 %v1430_v38, %v1429_v20  ;;  %v1785_v48 = vmul.f32 %v2152_v21, %v1430_v38  ;;  %v2156_v31 = vsel %vm1693_vm11, 1.0, %v2601_v59  ;;  %v1663_v40 = vadd.s32 %v2835_v35, %v1630_v22 }
 0x162   : > { %v1884_v50 = vadd.f32 %v1883_v24, %v1853_v43  ;;  %v1392_v51 = vmul.f32 %v1331_v46, %v1047_v44  ;;  %v1050_v58 = vadd.f32 %v2496_v49, %v2384_v45  ;;  %v1631_v46 = vadd.s32 240, %v2833_v34 }
 0x163   : > { %2286 = vst [vmem:[%s2859_s10 + $0x58] sm:$0xff] %v2254_v47   ;;  %v1816_v56 = vadd.f32 %v1815_v42, %v1785_v48  ;;  %v1854_v57 = vmul.f32 %v1785_v48, %v1430_v38  ;;  %v2385_v62 = vpop.f32.mrb[52].mxu0  ;;  %vm1695_vm13 = vcmp.lt.s32.totalorder %v1663_v40, 512 }
 0x164   : > { %v1431_v61 = vadd.f32 %v2845_v54, %v1392_v51  ;;  %v2497_v63 = vpop.f32.mrb[52].mxu1  ;;  %v1393_v1 = vmul.f32 %v1336_v55, %v1050_v58  ;;  %v2386_v2 = vpop.f32.mrb[53].mxu0  ;;  %v2157_v58 = vsel %vm1694_vm12, 1.0, %v2601_v59  ;;  %v2158_v13 = vsel %vm1695_vm13, 1.0, %v2601_v59 }
 0x165   : > { %v1885_v0 = vadd.f32 %v1884_v50, %v1854_v57  ;;  %v2498_v3 = vpop.f32.mrb[53].mxu1  ;;  %v2387_v6 = vadd.f32 %v2386_v2, %v2385_v62  ;;  %v2388_v8 = vpop.f32.mrb[54].mxu0 }
 0x166   : > { %v1786_v4 = vmul.f32 %v2153_v39, %v1431_v61  ;;  %v2499_v7 = vadd.f32 %v2498_v3, %v2497_v63  ;;  %v2500_v9 = vpop.f32.mrb[54].mxu1  ;;  %v1432_v10 = vadd.f32 %v2845_v54, %v1393_v1  ;;  %v2389_v11 = vpop.f32.mrb[55].mxu0  ;;  %v1664_v63 = vadd.s32 %v2835_v35, %v1631_v46 }
 0x167   : > { %v2501_v12 = vpop.f32.mrb[55].mxu1  ;;  %v2390_v17 = vadd.f32 %v2389_v11, %v2388_v8  ;;  %v1351_v55 = vpop.permute.xlu0 %1350 }
 0x168   : > { %v1817_v14 = vadd.f32 %v1816_v56, %v1786_v4  ;;  %v1855_v15 = vmul.f32 %v1786_v4, %v1431_v61  ;;  %v1055_v16 = vadd.f32 %v2499_v7, %v2387_v6  ;;  %v2259_v19 = vpack.c.bf16 %v1432_v10, %v1431_v61 }
 0x169   : > { %v1787_v20 = vmul.f32 %v2154_v5, %v1432_v10  ;;  %v2502_v21 = vadd.f32 %v2501_v12, %v2500_v9  ;;  %v1632_v4 = vadd.s32 248, %v2833_v34  ;;  %vm1696_vm14 = vcmp.lt.s32.totalorder %v1664_v63, 512 }
 0x16a   : > { %v1886_v23 = vadd.f32 %v1885_v0, %v1855_v15  ;;  %v1394_v24 = vmul.f32 %v1341_v18, %v1055_v16  ;;  %2287 = vst [vmem:[%s2859_s10 + $0x60] sm:$0xff] %v2259_v19   ;;  %v1356_v0 = vpop.permute.xlu1 %1355 }
 0x16b   : > { %v1818_v26 = vadd.f32 %v1817_v14, %v1787_v20  ;;  %v1856_v27 = vmul.f32 %v1787_v20, %v1432_v10  ;;  %v1058_v29 = vadd.f32 %v2502_v21, %v2390_v17  ;;  %v2391_v32 = vpop.f32.mrb[56].mxu0  ;;  %v1665_v20 = vadd.s32 %v2835_v35, %v1632_v4 }
 0x16c   : > { %v1433_v30 = vadd.f32 %v2845_v54, %v1394_v24  ;;  %v2503_v33 = vpop.f32.mrb[56].mxu1  ;;  %v2392_v38 = vpop.f32.mrb[57].mxu0  ;;  %v2999_v54 = vld [vmem:[%s3038_s3] ss:$0 sm:$0xff] }
 0x16d   : > { %v1887_v36 = vadd.f32 %v1886_v23, %v1856_v27  ;;  %v1395_v37 = vmul.f32 %v1346_v25, %v1058_v29  ;;  %v2504_v39 = vpop.f32.mrb[57].mxu1  ;;  %v2393_v42 = vadd.f32 %v2392_v38, %v2391_v32  ;;  %v2394_v44 = vpop.f32.mrb[58].mxu0  ;;  %vm1697_vm15 = vcmp.lt.s32.totalorder %v1665_v20, 512 }
 0x16e   : > { %v1788_v41 = vmul.f32 %v2155_v28, %v1433_v30  ;;  %v2505_v43 = vadd.f32 %v2504_v39, %v2503_v33  ;;  %v2506_v45 = vpop.f32.mrb[58].mxu1  ;;  %v2395_v48 = vpop.f32.mrb[59].mxu0 }
 0x16f   : > { %v1434_v47 = vadd.f32 %v2999_v54, %v1395_v37  ;;  %v2507_v49 = vpop.f32.mrb[59].mxu1  ;;  %v2396_v53 = vadd.f32 %v2395_v48, %v2394_v44  ;;  %v1361_v25 = vpop.permute.xlu0 %1360 }
 0x170   : > { %v1819_v50 = vadd.f32 %v1818_v26, %v1788_v41  ;;  %v1857_v51 = vmul.f32 %v1788_v41, %v1433_v30  ;;  %v1063_v52 = vadd.f32 %v2505_v43, %v2393_v42  ;;  %v2508_v60 = vadd.f32 %v2507_v49, %v2506_v45  ;;  %v1366_v35 = vpop.permute.xlu1 %1365 }
 0x171   : > { %v2264_v56 = vpack.c.bf16 %v1434_v47, %v1433_v30  ;;  %v1789_v57 = vmul.f32 %v2156_v31, %v1434_v47  ;;  %v2159_v31 = vsel %vm1696_vm14, 1.0, %v2601_v59  ;;  %v2160_v41 = vsel %vm1697_vm15, 1.0, %v2601_v59 }
 0x172   : > { %v1888_v61 = vadd.f32 %v1887_v36, %v1857_v51  ;;  %v1396_v62 = vmul.f32 %v1351_v55, %v1063_v52  ;;  %v1066_v3 = vadd.f32 %v2508_v60, %v2396_v53 }
 0x173   : > { %2288 = vst [vmem:[%s2859_s10 + $0x68] sm:$0xff] %v2264_v56   ;;  %v1820_v1 = vadd.f32 %v1819_v50, %v1789_v57  ;;  %v1858_v2 = vmul.f32 %v1789_v57, %v1434_v47  ;;  %v2397_v6 = vpop.f32.mrb[60].mxu0 }
 0x174   : > { %v1435_v5 = vadd.f32 %v2999_v54, %v1396_v62  ;;  %v2509_v7 = vpop.f32.mrb[60].mxu1  ;;  %v1397_v9 = vmul.f32 %v1356_v0, %v1066_v3  ;;  %v2398_v10 = vpop.f32.mrb[61].mxu0 }
 0x175   : > { %v1889_v8 = vadd.f32 %v1888_v61, %v1858_v2  ;;  %v2510_v11 = vpop.f32.mrb[61].mxu1  ;;  %v2399_v14 = vadd.f32 %v2398_v10, %v2397_v6  ;;  %v2400_v16 = vpop.f32.mrb[62].mxu0 }
 0x176   : > { %v1790_v12 = vmul.f32 %v2157_v58, %v1435_v5  ;;  %v2511_v15 = vadd.f32 %v2510_v11, %v2509_v7  ;;  %v2512_v17 = vpop.f32.mrb[62].mxu1  ;;  %v1436_v18 = vadd.f32 %v2999_v54, %v1397_v9  ;;  %v2401_v34 = vpop.f32.mrb[63].mxu0 }
 0x177   : > { %v2513_v19 = vpop.f32.mrb[63].mxu1  ;;  %v2402_v24 = vadd.f32 %v2401_v34, %v2400_v16 }
 0x178   : > { %v1821_v21 = vadd.f32 %v1820_v1, %v1790_v12  ;;  %v1859_v22 = vmul.f32 %v1790_v12, %v1435_v5  ;;  %v1071_v23 = vadd.f32 %v2511_v15, %v2399_v14  ;;  %v2269_v26 = vpack.c.bf16 %v1436_v18, %v1435_v5 }
 0x179   : > { %v1791_v27 = vmul.f32 %v2158_v13, %v1436_v18  ;;  %v2514_v28 = vadd.f32 %v2513_v19, %v2512_v17 }
 0x17a   : > { %v1890_v29 = vadd.f32 %v1889_v8, %v1859_v22  ;;  %v1398_v30 = vmul.f32 %v1361_v25, %v1071_v23  ;;  %2289 = vst [vmem:[%s2859_s10 + $0x70] sm:$0xff] %v2269_v26  }
 0x17b   : > { %v1822_v32 = vadd.f32 %v1821_v21, %v1791_v27  ;;  %v1860_v33 = vmul.f32 %v1791_v27, %v1436_v18  ;;  %v1074_v36 = vadd.f32 %v2514_v28, %v2402_v24 }
 0x17c   : > { %v1437_v37 = vadd.f32 %v2999_v54, %v1398_v30 }
 0x17d   : > { %v1891_v38 = vadd.f32 %v1890_v29, %v1860_v33  ;;  %v1399_v39 = vmul.f32 %v1366_v35, %v1074_v36 }
 0x17e   : > { %v1792_v40 = vmul.f32 %v2159_v31, %v1437_v37 }
 0x17f   : > { %v1438_v42 = vadd.f32 %v2999_v54, %v1399_v39 }
 0x180   : > { %v1823_v43 = vadd.f32 %v1822_v32, %v1792_v40  ;;  %v1861_v44 = vmul.f32 %v1792_v40, %v1437_v37 }
 0x181   : > { %v2274_v45 = vpack.c.bf16 %v1438_v42, %v1437_v37  ;;  %v1793_v46 = vmul.f32 %v2160_v41, %v1438_v42 }
 0x182   : > { %v1892_v47 = vadd.f32 %v1891_v38, %v1861_v44 }
 0x183   : > { %2290 = vst [vmem:[%s2859_s10 + $0x78] sm:$0xff] %v2274_v45   ;;  %v1824_v48 = vadd.f32 %v1823_v43, %v1793_v46  ;;  %v1862_v49 = vmul.f32 %v1793_v46, %v1438_v42 }
 0x185   : > { %v1825_v50 = vrot.slane %v1824_v48, 4  ;;  %v1893_v51 = vadd.f32 %v1892_v47, %v1862_v49 }
 0x187   : > { %v1826_v52 = vadd.f32 %v1825_v50, %v1824_v48  ;;  %v1894_v53 = vrot.slane %v1893_v51, 4 }
 0x189   : > { %v1827_v55 = vrot.slane %v1826_v52, 2  ;;  %v1895_v56 = vadd.f32 %v1894_v53, %v1893_v51 }
 0x18b   : > { %v1828_v59 = vadd.f32 %v1827_v55, %v1826_v52  ;;  %v1896_v57 = vrot.slane %v1895_v56, 2 }
 0x18d   : > { %v1829_v54 = vrot.slane %v1828_v59, 1  ;;  %v1897_v58 = vadd.f32 %v1896_v57, %v1895_v56 }
 0x18f   : > { %v1830_v60 = vadd.f32 %v1829_v54, %v1828_v59  ;;  %v1898_v61 = vrot.slane %v1897_v58, 1 }
 0x191   : > { %v1899_v62 = vadd.f32 %v1898_v61, %v1897_v58  ;;  %1900 = vst [vmem:[%s324_s7] sm:$0xff] %v1830_v60 }
 0x193   : > { %1901 = vst [vmem:[%s328_s12] sm:$0xff] %v1899_v62 }
 0x194 PF: > { %s17_s23 = sadd.s32 1, %s2598_s23   ;;  %s3042_s21 = smov %s2594_s22 }
 0x195   : > { %p14_p7 = scmp.ge.s32.totalorder %s17_s23, 4   ;;  %s3043_s22 = smov %s3045_s24 }
 0x197   :  { %16 = sbr.rel (!%p14_p7) target bundleno = 2 (0x2), region = 102 }

// kernel: a_call__.9
= control target key start
LH: loop header
LB: loop body
LE: loop exit
PB: predicated region body
PF: predicated region fallthrough
CT: control target
= control target key end

     0   :  { %s959_s0 = inlined_call_operand.vmem [shape: bf16[512,128], index: 0, kind: input, shape index: {}]   ;;  %s960_s1 = inlined_call_operand.vmem [shape: f32[1,128], index: 1, kind: input, shape index: {}]   ;;  %s961_s2 = inlined_call_operand.vmem [shape: f32[1,128], index: 2, kind: input, shape index: {}]   ;;  %s962_s3 = inlined_call_operand.vmem [shape: f32[512,128], index: 3, kind: output, shape index: {}]  }
   0x1   :  { %v355_v0 = vld [vmem:[%s959_s0] sm:$0xff]   ;;  %v482_v4 = vld [vmem:[%s959_s0 + $0x8] sm:$0xff]   ;;  %v483_v5 = vld [vmem:[%s959_s0 + $0x10] sm:$0xff]  }
   0x2   :  { %v539_v1 = vld [vmem:[%s960_s1] ss:$0 sm:$0xff]  ;;  %v356_v2 = vunpack.c.l.bf16 %v355_v0  ;;  %v357_v3 = vunpack.c.h.bf16 %v355_v0  ;;  %v484_v6 = vld [vmem:[%s959_s0 + $0x18] sm:$0xff]   ;;  %v360_v8 = vunpack.c.l.bf16 %v482_v4  ;;  %v361_v9 = vunpack.c.h.bf16 %v482_v4  ;;  %v486_v25 = vld [vmem:[%s959_s0 + $0x28] sm:$0xff]  }
   0x3   :  { %v553_v7 = vld [vmem:[%s961_s2] ss:$0 sm:$0xff]  ;;  %v364_v10 = vunpack.c.l.bf16 %v483_v5  ;;  %v365_v11 = vunpack.c.h.bf16 %v483_v5  ;;  %v368_v14 = vunpack.c.l.bf16 %v484_v6  ;;  %v369_v15 = vunpack.c.h.bf16 %v484_v6  ;;  %v487_v26 = vld [vmem:[%s959_s0 + $0x30] sm:$0xff]   ;;  %v488_v31 = vld [vmem:[%s959_s0 + $0x38] sm:$0xff]  }
   0x4   :  { %v149_v12 = vmul.f32 %v356_v2, %v539_v1  ;;  %v150_v13 = vmul.f32 %v357_v3, %v539_v1  ;;  %v151_v16 = vmul.f32 %v360_v8, %v539_v1  ;;  %v152_v17 = vmul.f32 %v361_v9, %v539_v1  ;;  %v485_v20 = vld [vmem:[%s959_s0 + $0x20] sm:$0xff]   ;;  %v490_v53 = vld [vmem:[%s959_s0 + $0x48] sm:$0xff]   ;;  %v491_v54 = vld [vmem:[%s959_s0 + $0x50] sm:$0xff]  }
   0x5   :  { %v153_v18 = vmul.f32 %v364_v10, %v539_v1  ;;  %v154_v19 = vmul.f32 %v365_v11, %v539_v1  ;;  %v155_v23 = vmul.f32 %v368_v14, %v539_v1  ;;  %v156_v24 = vmul.f32 %v369_v15, %v539_v1  ;;  %v489_v48 = vld [vmem:[%s959_s0 + $0x40] sm:$0xff]   ;;  %v492_v59 = vld [vmem:[%s959_s0 + $0x58] sm:$0xff]  }
   0x6   :  { %v220_v21 = vadd.f32 %v553_v7, %v149_v12  ;;  %v221_v22 = vadd.f32 %v553_v7, %v150_v13  ;;  %v222_v27 = vadd.f32 %v553_v7, %v151_v16  ;;  %v223_v28 = vadd.f32 %v553_v7, %v152_v17  ;;  %v493_v14 = vld [vmem:[%s959_s0 + $0x60] sm:$0xff]  }
   0x7   :  { %v224_v29 = vadd.f32 %v553_v7, %v153_v18  ;;  %v225_v30 = vadd.f32 %v553_v7, %v154_v19  ;;  %v226_v32 = vadd.f32 %v553_v7, %v155_v23  ;;  %v227_v33 = vadd.f32 %v553_v7, %v156_v24  ;;  %v494_v19 = vld [vmem:[%s959_s0 + $0x68] sm:$0xff]  }
   0x8   :  { %284 = vst [vmem:[%s962_s3] sm:$0xff] %v220_v21  ;;  %285 = vst [vmem:[%s962_s3 + $0x8] sm:$0xff] %v221_v22  ;;  %v372_v34 = vunpack.c.l.bf16 %v485_v20  ;;  %v373_v35 = vunpack.c.h.bf16 %v485_v20  ;;  %v376_v36 = vunpack.c.l.bf16 %v486_v25  ;;  %v377_v37 = vunpack.c.h.bf16 %v486_v25  ;;  %v495_v20 = vld [vmem:[%s959_s0 + $0x70] sm:$0xff]   ;;  %v496_v25 = vld [vmem:[%s959_s0 + $0x78] sm:$0xff]  }
   0x9   :  { %286 = vst [vmem:[%s962_s3 + $0x10] sm:$0xff] %v222_v27  ;;  %287 = vst [vmem:[%s962_s3 + $0x18] sm:$0xff] %v223_v28  ;;  %v380_v38 = vunpack.c.l.bf16 %v487_v26  ;;  %v381_v39 = vunpack.c.h.bf16 %v487_v26  ;;  %v384_v42 = vunpack.c.l.bf16 %v488_v31  ;;  %v385_v43 = vunpack.c.h.bf16 %v488_v31 }
   0xa   :  { %288 = vst [vmem:[%s962_s3 + $0x20] sm:$0xff] %v224_v29  ;;  %289 = vst [vmem:[%s962_s3 + $0x28] sm:$0xff] %v225_v30  ;;  %v157_v40 = vmul.f32 %v372_v34, %v539_v1  ;;  %v158_v41 = vmul.f32 %v373_v35, %v539_v1  ;;  %v159_v44 = vmul.f32 %v376_v36, %v539_v1  ;;  %v388_v62 = vunpack.c.l.bf16 %v489_v48 }
   0xb   :  { %290 = vst [vmem:[%s962_s3 + $0x30] sm:$0xff] %v226_v32  ;;  %291 = vst [vmem:[%s962_s3 + $0x38] sm:$0xff] %v227_v33  ;;  %v160_v45 = vmul.f32 %v377_v37, %v539_v1  ;;  %v161_v46 = vmul.f32 %v380_v38, %v539_v1  ;;  %v162_v47 = vmul.f32 %v381_v39, %v539_v1  ;;  %v389_v63 = vunpack.c.h.bf16 %v489_v48  ;;  %v499_v48 = vld [vmem:[%s959_s0 + $0x90] sm:$0xff]  }
   0xc   :  { %v228_v49 = vadd.f32 %v553_v7, %v157_v40  ;;  %v229_v50 = vadd.f32 %v553_v7, %v158_v41  ;;  %v163_v51 = vmul.f32 %v384_v42, %v539_v1  ;;  %v164_v52 = vmul.f32 %v385_v43, %v539_v1  ;;  %v497_v42 = vld [vmem:[%s959_s0 + $0x80] sm:$0xff]  }
   0xd   :  { %v230_v55 = vadd.f32 %v553_v7, %v159_v44  ;;  %v231_v56 = vadd.f32 %v553_v7, %v160_v45  ;;  %v232_v57 = vadd.f32 %v553_v7, %v161_v46  ;;  %v233_v58 = vadd.f32 %v553_v7, %v162_v47  ;;  %v498_v47 = vld [vmem:[%s959_s0 + $0x88] sm:$0xff]  }
   0xe   :  { %292 = vst [vmem:[%s962_s3 + $0x40] sm:$0xff] %v228_v49  ;;  %293 = vst [vmem:[%s962_s3 + $0x48] sm:$0xff] %v229_v50  ;;  %v234_v60 = vadd.f32 %v553_v7, %v163_v51  ;;  %v235_v61 = vadd.f32 %v553_v7, %v164_v52  ;;  %v392_v0 = vunpack.c.l.bf16 %v490_v53  ;;  %v393_v2 = vunpack.c.h.bf16 %v490_v53  ;;  %v500_v53 = vld [vmem:[%s959_s0 + $0x98] sm:$0xff]  }
   0xf   :  { %294 = vst [vmem:[%s962_s3 + $0x50] sm:$0xff] %v230_v55  ;;  %295 = vst [vmem:[%s962_s3 + $0x58] sm:$0xff] %v231_v56  ;;  %v396_v3 = vunpack.c.l.bf16 %v491_v54  ;;  %v397_v4 = vunpack.c.h.bf16 %v491_v54  ;;  %v165_v5 = vmul.f32 %v388_v62, %v539_v1  ;;  %v166_v6 = vmul.f32 %v389_v63, %v539_v1 }
  0x10   :  { %296 = vst [vmem:[%s962_s3 + $0x60] sm:$0xff] %v232_v57  ;;  %297 = vst [vmem:[%s962_s3 + $0x68] sm:$0xff] %v233_v58  ;;  %v400_v8 = vunpack.c.l.bf16 %v492_v59  ;;  %v401_v9 = vunpack.c.h.bf16 %v492_v59  ;;  %v167_v10 = vmul.f32 %v392_v0, %v539_v1  ;;  %v168_v11 = vmul.f32 %v393_v2, %v539_v1 }
  0x11   :  { %298 = vst [vmem:[%s962_s3 + $0x70] sm:$0xff] %v234_v60  ;;  %299 = vst [vmem:[%s962_s3 + $0x78] sm:$0xff] %v235_v61  ;;  %v169_v12 = vmul.f32 %v396_v3, %v539_v1  ;;  %v170_v13 = vmul.f32 %v397_v4, %v539_v1  ;;  %v236_v15 = vadd.f32 %v553_v7, %v165_v5  ;;  %v404_v28 = vunpack.c.l.bf16 %v493_v14 }
  0x12   :  { %v237_v16 = vadd.f32 %v553_v7, %v166_v6  ;;  %v171_v17 = vmul.f32 %v400_v8, %v539_v1  ;;  %v172_v18 = vmul.f32 %v401_v9, %v539_v1  ;;  %v238_v21 = vadd.f32 %v553_v7, %v167_v10  ;;  %v501_v8 = vld [vmem:[%s959_s0 + $0xa0] sm:$0xff]  }
  0x13   :  { %v239_v22 = vadd.f32 %v553_v7, %v168_v11  ;;  %v240_v23 = vadd.f32 %v553_v7, %v169_v12  ;;  %v241_v24 = vadd.f32 %v553_v7, %v170_v13  ;;  %300 = vst [vmem:[%s962_s3 + $0x80] sm:$0xff] %v236_v15  ;;  %v405_v29 = vunpack.c.h.bf16 %v493_v14  ;;  %v502_v13 = vld [vmem:[%s959_s0 + $0xa8] sm:$0xff]   ;;  %v503_v14 = vld [vmem:[%s959_s0 + $0xb0] sm:$0xff]  }
  0x14   :  { %301 = vst [vmem:[%s962_s3 + $0x88] sm:$0xff] %v237_v16  ;;  %v242_v26 = vadd.f32 %v553_v7, %v171_v17  ;;  %v243_v27 = vadd.f32 %v553_v7, %v172_v18  ;;  %302 = vst [vmem:[%s962_s3 + $0x90] sm:$0xff] %v238_v21  ;;  %v408_v30 = vunpack.c.l.bf16 %v494_v19  ;;  %v409_v31 = vunpack.c.h.bf16 %v494_v19  ;;  %v504_v19 = vld [vmem:[%s959_s0 + $0xb8] sm:$0xff]  }
  0x15   :  { %303 = vst [vmem:[%s962_s3 + $0x98] sm:$0xff] %v239_v22  ;;  %304 = vst [vmem:[%s962_s3 + $0xa0] sm:$0xff] %v240_v23  ;;  %v412_v32 = vunpack.c.l.bf16 %v495_v20  ;;  %v413_v33 = vunpack.c.h.bf16 %v495_v20  ;;  %v173_v34 = vmul.f32 %v404_v28, %v539_v1  ;;  %v174_v35 = vmul.f32 %v405_v29, %v539_v1 }
  0x16   :  { %305 = vst [vmem:[%s962_s3 + $0xa8] sm:$0xff] %v241_v24  ;;  %306 = vst [vmem:[%s962_s3 + $0xb0] sm:$0xff] %v242_v26  ;;  %v416_v36 = vunpack.c.l.bf16 %v496_v25  ;;  %v417_v37 = vunpack.c.h.bf16 %v496_v25  ;;  %v175_v38 = vmul.f32 %v408_v30, %v539_v1  ;;  %v176_v39 = vmul.f32 %v409_v31, %v539_v1 }
  0x17   :  { %307 = vst [vmem:[%s962_s3 + $0xb8] sm:$0xff] %v243_v27  ;;  %v177_v40 = vmul.f32 %v412_v32, %v539_v1  ;;  %v178_v41 = vmul.f32 %v413_v33, %v539_v1  ;;  %v244_v43 = vadd.f32 %v553_v7, %v173_v34  ;;  %v245_v44 = vadd.f32 %v553_v7, %v174_v35 }
  0x18   :  { %v179_v45 = vmul.f32 %v416_v36, %v539_v1  ;;  %v180_v46 = vmul.f32 %v417_v37, %v539_v1  ;;  %v246_v49 = vadd.f32 %v553_v7, %v175_v38  ;;  %v247_v50 = vadd.f32 %v553_v7, %v176_v39  ;;  %v505_v36 = vld [vmem:[%s959_s0 + $0xc0] sm:$0xff]  }
  0x19   :  { %v248_v51 = vadd.f32 %v553_v7, %v177_v40  ;;  %v249_v52 = vadd.f32 %v553_v7, %v178_v41  ;;  %308 = vst [vmem:[%s962_s3 + $0xc0] sm:$0xff] %v244_v43  ;;  %309 = vst [vmem:[%s962_s3 + $0xc8] sm:$0xff] %v245_v44  ;;  %v420_v56 = vunpack.c.l.bf16 %v497_v42  ;;  %v421_v57 = vunpack.c.h.bf16 %v497_v42  ;;  %v506_v41 = vld [vmem:[%s959_s0 + $0xc8] sm:$0xff]   ;;  %v507_v42 = vld [vmem:[%s959_s0 + $0xd0] sm:$0xff]  }
  0x1a   :  { %v250_v54 = vadd.f32 %v553_v7, %v179_v45  ;;  %v251_v55 = vadd.f32 %v553_v7, %v180_v46  ;;  %310 = vst [vmem:[%s962_s3 + $0xd0] sm:$0xff] %v246_v49  ;;  %311 = vst [vmem:[%s962_s3 + $0xd8] sm:$0xff] %v247_v50  ;;  %v424_v58 = vunpack.c.l.bf16 %v498_v47  ;;  %v425_v59 = vunpack.c.h.bf16 %v498_v47  ;;  %v508_v47 = vld [vmem:[%s959_s0 + $0xd8] sm:$0xff]  }
  0x1b   :  { %312 = vst [vmem:[%s962_s3 + $0xe0] sm:$0xff] %v248_v51  ;;  %313 = vst [vmem:[%s962_s3 + $0xe8] sm:$0xff] %v249_v52  ;;  %v428_v60 = vunpack.c.l.bf16 %v499_v48  ;;  %v429_v61 = vunpack.c.h.bf16 %v499_v48  ;;  %v181_v62 = vmul.f32 %v420_v56, %v539_v1  ;;  %v182_v63 = vmul.f32 %v421_v57, %v539_v1 }
  0x1c   :  { %314 = vst [vmem:[%s962_s3 + $0xf0] sm:$0xff] %v250_v54  ;;  %315 = vst [vmem:[%s962_s3 + $0xf8] sm:$0xff] %v251_v55  ;;  %v432_v0 = vunpack.c.l.bf16 %v500_v53  ;;  %v433_v2 = vunpack.c.h.bf16 %v500_v53  ;;  %v183_v3 = vmul.f32 %v424_v58, %v539_v1  ;;  %v184_v4 = vmul.f32 %v425_v59, %v539_v1 }
  0x1d   :  { %v185_v5 = vmul.f32 %v428_v60, %v539_v1  ;;  %v186_v6 = vmul.f32 %v429_v61, %v539_v1  ;;  %v252_v9 = vadd.f32 %v553_v7, %v181_v62  ;;  %v253_v10 = vadd.f32 %v553_v7, %v182_v63 }
  0x1e   :  { %v187_v11 = vmul.f32 %v432_v0, %v539_v1  ;;  %v188_v12 = vmul.f32 %v433_v2, %v539_v1  ;;  %v254_v15 = vadd.f32 %v553_v7, %v183_v3  ;;  %v255_v16 = vadd.f32 %v553_v7, %v184_v4  ;;  %v509_v0 = vld [vmem:[%s959_s0 + $0xe0] sm:$0xff]  }
  0x1f   :  { %v256_v17 = vadd.f32 %v553_v7, %v185_v5  ;;  %v257_v18 = vadd.f32 %v553_v7, %v186_v6  ;;  %316 = vst [vmem:[%s962_s3 + $0x100] sm:$0xff] %v252_v9  ;;  %317 = vst [vmem:[%s962_s3 + $0x108] sm:$0xff] %v253_v10  ;;  %v436_v22 = vunpack.c.l.bf16 %v501_v8  ;;  %v437_v23 = vunpack.c.h.bf16 %v501_v8  ;;  %v510_v6 = vld [vmem:[%s959_s0 + $0xe8] sm:$0xff]   ;;  %v511_v8 = vld [vmem:[%s959_s0 + $0xf0] sm:$0xff]  }
  0x20   :  { %v258_v20 = vadd.f32 %v553_v7, %v187_v11  ;;  %v259_v21 = vadd.f32 %v553_v7, %v188_v12  ;;  %318 = vst [vmem:[%s962_s3 + $0x110] sm:$0xff] %v254_v15  ;;  %319 = vst [vmem:[%s962_s3 + $0x118] sm:$0xff] %v255_v16  ;;  %v440_v24 = vunpack.c.l.bf16 %v502_v13  ;;  %v441_v25 = vunpack.c.h.bf16 %v502_v13  ;;  %v512_v13 = vld [vmem:[%s959_s0 + $0xf8] sm:$0xff]  }
  0x21   :  { %320 = vst [vmem:[%s962_s3 + $0x120] sm:$0xff] %v256_v17  ;;  %321 = vst [vmem:[%s962_s3 + $0x128] sm:$0xff] %v257_v18  ;;  %v444_v26 = vunpack.c.l.bf16 %v503_v14  ;;  %v445_v27 = vunpack.c.h.bf16 %v503_v14  ;;  %v189_v28 = vmul.f32 %v436_v22, %v539_v1  ;;  %v190_v29 = vmul.f32 %v437_v23, %v539_v1 }
  0x22   :  { %322 = vst [vmem:[%s962_s3 + $0x130] sm:$0xff] %v258_v20  ;;  %323 = vst [vmem:[%s962_s3 + $0x138] sm:$0xff] %v259_v21  ;;  %v448_v30 = vunpack.c.l.bf16 %v504_v19  ;;  %v449_v31 = vunpack.c.h.bf16 %v504_v19  ;;  %v191_v32 = vmul.f32 %v440_v24, %v539_v1  ;;  %v192_v33 = vmul.f32 %v441_v25, %v539_v1 }
  0x23   :  { %v193_v34 = vmul.f32 %v444_v26, %v539_v1  ;;  %v194_v35 = vmul.f32 %v445_v27, %v539_v1  ;;  %v260_v37 = vadd.f32 %v553_v7, %v189_v28  ;;  %v261_v38 = vadd.f32 %v553_v7, %v190_v29 }
  0x24   :  { %v195_v39 = vmul.f32 %v448_v30, %v539_v1  ;;  %v196_v40 = vmul.f32 %v449_v31, %v539_v1  ;;  %v262_v43 = vadd.f32 %v553_v7, %v191_v32  ;;  %v263_v44 = vadd.f32 %v553_v7, %v192_v33 }
  0x25   :  { %v264_v45 = vadd.f32 %v553_v7, %v193_v34  ;;  %v265_v46 = vadd.f32 %v553_v7, %v194_v35  ;;  %324 = vst [vmem:[%s962_s3 + $0x140] sm:$0xff] %v260_v37  ;;  %325 = vst [vmem:[%s962_s3 + $0x148] sm:$0xff] %v261_v38  ;;  %v452_v50 = vunpack.c.l.bf16 %v505_v36  ;;  %v453_v51 = vunpack.c.h.bf16 %v505_v36 }
  0x26   :  { %v266_v48 = vadd.f32 %v553_v7, %v195_v39  ;;  %v267_v49 = vadd.f32 %v553_v7, %v196_v40  ;;  %326 = vst [vmem:[%s962_s3 + $0x150] sm:$0xff] %v262_v43  ;;  %327 = vst [vmem:[%s962_s3 + $0x158] sm:$0xff] %v263_v44  ;;  %v456_v52 = vunpack.c.l.bf16 %v506_v41  ;;  %v457_v53 = vunpack.c.h.bf16 %v506_v41 }
  0x27   :  { %328 = vst [vmem:[%s962_s3 + $0x160] sm:$0xff] %v264_v45  ;;  %329 = vst [vmem:[%s962_s3 + $0x168] sm:$0xff] %v265_v46  ;;  %v460_v54 = vunpack.c.l.bf16 %v507_v42  ;;  %v461_v55 = vunpack.c.h.bf16 %v507_v42  ;;  %v197_v56 = vmul.f32 %v452_v50, %v539_v1  ;;  %v198_v57 = vmul.f32 %v453_v51, %v539_v1 }
  0x28   :  { %330 = vst [vmem:[%s962_s3 + $0x170] sm:$0xff] %v266_v48  ;;  %331 = vst [vmem:[%s962_s3 + $0x178] sm:$0xff] %v267_v49  ;;  %v464_v58 = vunpack.c.l.bf16 %v508_v47  ;;  %v465_v59 = vunpack.c.h.bf16 %v508_v47  ;;  %v199_v60 = vmul.f32 %v456_v52, %v539_v1  ;;  %v200_v61 = vmul.f32 %v457_v53, %v539_v1 }
  0x29   :  { %v201_v62 = vmul.f32 %v460_v54, %v539_v1  ;;  %v202_v63 = vmul.f32 %v461_v55, %v539_v1  ;;  %v268_v2 = vadd.f32 %v553_v7, %v197_v56  ;;  %v269_v3 = vadd.f32 %v553_v7, %v198_v57 }
  0x2a   :  { %v203_v4 = vmul.f32 %v464_v58, %v539_v1  ;;  %v204_v5 = vmul.f32 %v465_v59, %v539_v1  ;;  %v270_v9 = vadd.f32 %v553_v7, %v199_v60  ;;  %v271_v10 = vadd.f32 %v553_v7, %v200_v61 }
  0x2b   :  { %v272_v11 = vadd.f32 %v553_v7, %v201_v62  ;;  %v273_v12 = vadd.f32 %v553_v7, %v202_v63  ;;  %332 = vst [vmem:[%s962_s3 + $0x180] sm:$0xff] %v268_v2  ;;  %333 = vst [vmem:[%s962_s3 + $0x188] sm:$0xff] %v269_v3  ;;  %v468_v16 = vunpack.c.l.bf16 %v509_v0  ;;  %v469_v17 = vunpack.c.h.bf16 %v509_v0 }
  0x2c   :  { %v274_v14 = vadd.f32 %v553_v7, %v203_v4  ;;  %v275_v15 = vadd.f32 %v553_v7, %v204_v5  ;;  %334 = vst [vmem:[%s962_s3 + $0x190] sm:$0xff] %v270_v9  ;;  %335 = vst [vmem:[%s962_s3 + $0x198] sm:$0xff] %v271_v10  ;;  %v472_v18 = vunpack.c.l.bf16 %v510_v6  ;;  %v473_v19 = vunpack.c.h.bf16 %v510_v6 }
  0x2d   :  { %336 = vst [vmem:[%s962_s3 + $0x1a0] sm:$0xff] %v272_v11  ;;  %337 = vst [vmem:[%s962_s3 + $0x1a8] sm:$0xff] %v273_v12  ;;  %v476_v20 = vunpack.c.l.bf16 %v511_v8  ;;  %v477_v21 = vunpack.c.h.bf16 %v511_v8  ;;  %v205_v22 = vmul.f32 %v468_v16, %v539_v1  ;;  %v206_v23 = vmul.f32 %v469_v17, %v539_v1 }
  0x2e   :  { %338 = vst [vmem:[%s962_s3 + $0x1b0] sm:$0xff] %v274_v14  ;;  %339 = vst [vmem:[%s962_s3 + $0x1b8] sm:$0xff] %v275_v15  ;;  %v480_v24 = vunpack.c.l.bf16 %v512_v13  ;;  %v481_v25 = vunpack.c.h.bf16 %v512_v13  ;;  %v207_v26 = vmul.f32 %v472_v18, %v539_v1  ;;  %v208_v27 = vmul.f32 %v473_v19, %v539_v1 }
  0x2f   :  { %v209_v28 = vmul.f32 %v476_v20, %v539_v1  ;;  %v210_v29 = vmul.f32 %v477_v21, %v539_v1  ;;  %v276_v30 = vadd.f32 %v553_v7, %v205_v22  ;;  %v277_v31 = vadd.f32 %v553_v7, %v206_v23 }
  0x30   :  { %v211_v32 = vmul.f32 %v480_v24, %v539_v1  ;;  %v212_v33 = vmul.f32 %v481_v25, %v539_v1  ;;  %v278_v34 = vadd.f32 %v553_v7, %v207_v26  ;;  %v279_v35 = vadd.f32 %v553_v7, %v208_v27 }
  0x31   :  { %v280_v36 = vadd.f32 %v553_v7, %v209_v28  ;;  %v281_v37 = vadd.f32 %v553_v7, %v210_v29  ;;  %340 = vst [vmem:[%s962_s3 + $0x1c0] sm:$0xff] %v276_v30  ;;  %341 = vst [vmem:[%s962_s3 + $0x1c8] sm:$0xff] %v277_v31 }
  0x32   :  { %v282_v38 = vadd.f32 %v553_v7, %v211_v32  ;;  %v283_v1 = vadd.f32 %v553_v7, %v212_v33  ;;  %342 = vst [vmem:[%s962_s3 + $0x1d0] sm:$0xff] %v278_v34  ;;  %343 = vst [vmem:[%s962_s3 + $0x1d8] sm:$0xff] %v279_v35 }
  0x33   :  { %344 = vst [vmem:[%s962_s3 + $0x1e0] sm:$0xff] %v280_v36  ;;  %345 = vst [vmem:[%s962_s3 + $0x1e8] sm:$0xff] %v281_v37 }
  0x34   :  { %346 = vst [vmem:[%s962_s3 + $0x1f0] sm:$0xff] %v282_v38  ;;  %347 = vst [vmem:[%s962_s3 + $0x1f8] sm:$0xff] %v283_v1 }

</bundles_post_ra>
